<compile_context>
chip_gen: v5e
topology: v5e:2x2
jax: 0.10.0
libtpu: 0.0.40
codegen_flags: <defaults>
</compile_context>

<pallas_src>
import jax
import jax.numpy as jnp
from jax import lax
from jax.experimental import pallas as pl
from jax.experimental.pallas import tpu as pltpu


def _cdiv(a: int, b: int) -> int:
    return -(-a // b)


def _round_up(x: int, m: int) -> int:
    return _cdiv(x, m) * m


def _make_mmd_kernel(tile: int, n_valid: int, need_mask: bool):
    """Per-(row-tile, col-tile) partial-row-sum kernel (static tile / masking)."""
    f32 = jnp.float32
    dn = (((1,), (1,)), ((), ()))   # contract feature dim of both operands: a @ b.T

    def kernel(rmap_ref, xi_ref, xj_ref, yi_ref, yj_ref,
               xsq_i_ref, ysq_i_ref, xsq_j_ref, ysq_j_ref, o_ref):
        i = pl.program_id(0)
        j = pl.program_id(1)
        ri = rmap_ref[i]                       # physical row-tile index (load balance)

        # Output block is resident across the whole j (reduction) axis:
        # accumulate partial row sums directly into it.
        @pl.when(j == 0)
        def _():
            o_ref[...] = jnp.zeros_like(o_ref)

        xi = xi_ref[...]
        xj = xj_ref[...]
        yi = yi_ref[...]
        yj = yj_ref[...]
        xsq_i = xsq_i_ref[...]                 # (tile, 1) f32, precomputed
        ysq_i = ysq_i_ref[...]                 # (tile, 1) f32
        xsq_j = xsq_j_ref[...]                 # (1, tile) f32
        ysq_j = ysq_j_ref[...]                 # (1, tile) f32

        if need_mask:
            # Padded columns are all-zero points: their distance to any point p
            # is exactly ||p||, so subtract pad_cols * ||p|| per row instead of
            # per-element masking.
            pad_cols = jnp.maximum((j + 1) * tile - n_valid, 0).astype(f32)
            xnorm_i = jnp.sqrt(xsq_i)
            ynorm_i = jnp.sqrt(ysq_i)

        def dist_tile(a, b, a_sq, b_sq):
            # MXU matmul in the input dtype, f32 accumulation, no b transpose.
            ab = lax.dot_general(a, b, dn, preferred_element_type=f32)
            return jnp.sqrt(jnp.maximum(a_sq + b_sq - 2.0 * ab, 0.0))

        # ---- cross term ST = dist(x_i, y_j): every (ri, j) tile -------------
        st_row = jnp.sum(dist_tile(xi, yj, xsq_i, ysq_j), axis=-1, keepdims=True)
        if need_mask:
            st_row = st_row - pad_cols * xnorm_i
        o_ref[...] += (-2.0) * st_row

        # ---- within-set terms SS + TT: symmetric, computed only for j >= ri -
        @pl.when(j >= ri)
        def _():
            s = (dist_tile(xi, xj, xsq_i, xsq_j)
                 + dist_tile(yi, yj, ysq_i, ysq_j))
            # Exact-zero diagonal of the full N x N matrices; the mask is
            # all-true on off-diagonal tiles (disjoint id ranges), so it can be
            # applied unconditionally (single merged branch).
            row_ids = ri * tile + lax.broadcasted_iota(jnp.int32, (tile, 1), 0)
            col_ids = j * tile + lax.broadcasted_iota(jnp.int32, (1, tile), 1)
            s = jnp.where(row_ids != col_ids, s, 0.0)
            s_row = jnp.sum(s, axis=-1, keepdims=True)
            if need_mask:
                s_row = s_row - pad_cols * (xnorm_i + ynorm_i)
            w = jnp.where(j == ri, f32(1.0), f32(2.0))   # off-diag tiles count twice
            o_ref[...] += w * s_row

    return kernel


def _mmd_loss_dense(x, y, gamma):
    """Un-tiled pure-JAX MMD: small-N fast path and correctness reference."""
    n, _ = x.shape
    xf = x.astype(jnp.float32)
    yf = y.astype(jnp.float32)

    def cdist(a, b):
        sq = (jnp.sum(a * a, axis=1)[:, None] + jnp.sum(b * b, axis=1)[None, :]
              - 2.0 * jnp.dot(a, b.T, precision=jax.lax.Precision.HIGHEST))
        return jnp.sqrt(jnp.maximum(sq, 0.0))

    off_diag = 1.0 - jnp.eye(n, dtype=jnp.float32)
    ss = cdist(xf, xf) * off_diag          # exact zeros on the diagonal
    tt = cdist(yf, yf) * off_diag
    st = cdist(xf, yf)
    return (-gamma) * (ss.mean() + tt.mean() - 2.0 * st.mean())


def mmd_loss_ref(x, y, gamma=None):
    _, d = x.shape
    if gamma is None:
        gamma = 1.0 / d
    return _mmd_loss_dense(x, y, float(gamma))


def mmd_loss(x, y, gamma=None, max_tile=None, small_n_threshold=256):
    """Pallas TPU implementation of MMDLoss.forward(x, y)."""
    assert x.shape == y.shape, "array sapes are not the same"
    n, d = x.shape
    if gamma is None:
        gamma = 1.0 / d
    gamma = float(gamma)

    # Small-N fast path: grid / padding / pipeline setup dwarfs the math.
    if n < small_n_threshold:
        return _mmd_loss_dense(x, y, gamma)

    itemsize = jnp.dtype(x.dtype).itemsize

    # Generation-aware VMEM budget (v7x: 64 MiB physical, v5e/v6e: 128 MiB).
    try:
        info = pltpu.get_tpu_info()
        vmem_phys = int(getattr(info, "vmem_capacity_bytes", 64 * 2**20))
    except Exception:
        vmem_phys = 64 * 2**20
    if vmem_phys >= 96 * 2**20:
        vmem_limit, default_max_tile = 100 * 2**20, 1024    # v5e / v6e
    else:
        vmem_limit, default_max_tile = 40 * 2**20, 512      # v7x
    if max_tile is None:
        max_tile = default_max_tile

    # Largest 128-aligned tile whose double-buffered inputs + f32 temps fit.
    tile = max(128, min(_round_up(n, 128), _round_up(max_tile, 128)))
    while tile > 128:
        inputs_bytes = 4 * 2 * tile * d * itemsize     # xi/xj/yi/yj, double-buffered
        temps_bytes = 6 * tile * tile * 4              # live f32 (tile,tile) temporaries
        if inputs_bytes + temps_bytes <= int(0.8 * vmem_limit):
            break
        tile -= 128

    n_pad = tile * _cdiv(n, tile)
    num_tiles = n_pad // tile
    need_mask = n_pad != n

    if need_mask:
        pad = n_pad - n
        x_p = jnp.pad(x, ((0, pad), (0, 0)))
        y_p = jnp.pad(y, ((0, pad), (0, 0)))
    else:
        x_p, y_p = x, y

    # Row squared-norms computed once in f32 and streamed as side inputs.
    xf = x_p.astype(jnp.float32)
    yf = y_p.astype(jnp.float32)
    x_sq = jnp.sum(xf * xf, axis=1)
    y_sq = jnp.sum(yf * yf, axis=1)
    x_sq_row, y_sq_row = x_sq[:, None], y_sq[:, None]        # (n_pad, 1)
    x_sq_col, y_sq_col = x_sq[None, :], y_sq[None, :]        # (1, n_pad)

    # Row-tile permutation: interleave heavy (low index, many j>=i tiles) and
    # light (high index) rows so a contiguous split of the 'parallel' axis
    # across v7x's 2 TensorCores is balanced.  Harmless on v5e/v6e (1 TC).
    rmap = [g // 2 if g % 2 == 0 else num_tiles - 1 - g // 2
            for g in range(num_tiles)]
    rmap = jnp.asarray(rmap, dtype=jnp.int32)

    kernel = _make_mmd_kernel(tile, n, need_mask)

    cost = pl.CostEstimate(
        flops=int(4 * n * n * d),                      # ST full + SS/TT upper triangle
        transcendentals=int(2 * n * n),                # sqrt per computed distance
        bytes_accessed=int(2 * n_pad * d * itemsize * (num_tiles + 1)
                           + 6 * n_pad * 4),
    )

    partials = pl.pallas_call(
        kernel,
        out_shape=jax.ShapeDtypeStruct((n_pad, 1), jnp.float32),
        grid_spec=pltpu.PrefetchScalarGridSpec(
            num_scalar_prefetch=1,                     # the row-tile permutation
            grid=(num_tiles, num_tiles),
            in_specs=[
                pl.BlockSpec((tile, d), lambda i, j, rm: (rm[i], 0)),   # x row tile
                pl.BlockSpec((tile, d), lambda i, j, rm: (j, 0)),       # x col tile
                pl.BlockSpec((tile, d), lambda i, j, rm: (rm[i], 0)),   # y row tile
                pl.BlockSpec((tile, d), lambda i, j, rm: (j, 0)),       # y col tile
                pl.BlockSpec((tile, 1), lambda i, j, rm: (rm[i], 0)),   # |x|^2 rows
                pl.BlockSpec((tile, 1), lambda i, j, rm: (rm[i], 0)),   # |y|^2 rows
                pl.BlockSpec((1, tile), lambda i, j, rm: (0, j)),       # |x|^2 cols
                pl.BlockSpec((1, tile), lambda i, j, rm: (0, j)),       # |y|^2 cols
            ],
            out_specs=pl.BlockSpec((tile, 1), lambda i, j, rm: (rm[i], 0)),
        ),
        compiler_params=pltpu.CompilerParams(
            dimension_semantics=("parallel", "arbitrary"),
            vmem_limit_bytes=vmem_limit,
        ),
        cost_estimate=cost,
    )(rmap, x_p, x_p, y_p, y_p, x_sq_row, y_sq_row, x_sq_col, y_sq_col)

    # Padded rows are dropped here; padded columns were corrected in-kernel.
    total = jnp.sum(partials[:n, 0])
    return (-gamma) * total / float(n * n)


if __name__ == "__main__":
    key = jax.random.PRNGKey(0)
    kx, ky = jax.random.split(key)

    # Small case matching the module's 2-D (batch, features) use.
    N, D = 8, 32
    x = jax.random.normal(kx, (N, D), dtype=jnp.float32)
    y = jax.random.normal(ky, (N, D), dtype=jnp.float32) + 0.5
    ref = mmd_loss_ref(x, y)

    # 1) Default path: small-N pure-JAX fast path.
    out_fast = jax.block_until_ready(mmd_loss(x, y))
    assert jnp.allclose(out_fast, ref, atol=1e-5, rtol=1e-4), (out_fast, ref)

    # 2) Force the Pallas kernel at the same small shape (one 128-tile,
    #    padded-column correction path, grid 1x1).
    out_k = jax.block_until_ready(mmd_loss(x, y, small_n_threshold=0))
    assert jnp.allclose(out_k, ref, atol=1e-4, rtol=1e-3), (out_k, ref)

    # 3) Multi-tile kernel path: N=300 pads to 384 -> 3x3 grid of 128-tiles,
    #    exercising the symmetry skip, the remainder correction and the
    #    row-tile load-balance permutation.
    N2, D2 = 300, 32
    x2 = jax.random.normal(kx, (N2, D2), dtype=jnp.float32) * 1.3
    y2 = jax.random.normal(ky, (N2, D2), dtype=jnp.float32) + 1.0
    out2 = jax.block_until_ready(mmd_loss(x2, y2, max_tile=128, small_n_threshold=0))
    ref2 = mmd_loss_ref(x2, y2)
    assert jnp.allclose(out2, ref2, atol=1e-4, rtol=1e-3), (out2, ref2)

    print("KERNEL_OK")
</pallas_src>

<mosaic_0001>
module attributes {stable_mosaic.version = 11 : i64} {
  func.func @kernel(%arg0: i32, %arg1: i32, %arg2: memref<1xi32, #tpu.memory_space<smem>>, %arg3: memref<128x32xf32, #tpu.memory_space<vmem>>, %arg4: memref<128x32xf32, #tpu.memory_space<vmem>>, %arg5: memref<128x32xf32, #tpu.memory_space<vmem>>, %arg6: memref<128x32xf32, #tpu.memory_space<vmem>>, %arg7: memref<128x1xf32, #tpu.memory_space<vmem>>, %arg8: memref<128x1xf32, #tpu.memory_space<vmem>>, %arg9: memref<1x128xf32, #tpu.memory_space<vmem>>, %arg10: memref<1x128xf32, #tpu.memory_space<vmem>>, %arg11: memref<128x1xf32, #tpu.memory_space<vmem>>) attributes {dimension_semantics = [#tpu.dimension_semantics<parallel>, #tpu.dimension_semantics<arbitrary>], iteration_bounds = array<i64: 1, 1>, scalar_prefetch = 1 : i64, scratch_operands = 0 : i64, tpu.core_type = #tpu.core_type<tc>, window_params = [{transform_indices = @transform_0, window_bounds = array<i64: 128, 32>}, {transform_indices = @transform_1, window_bounds = array<i64: 128, 32>}, {transform_indices = @transform_2, window_bounds = array<i64: 128, 32>}, {transform_indices = @transform_3, window_bounds = array<i64: 128, 32>}, {transform_indices = @transform_4, window_bounds = array<i64: 128, 1>}, {transform_indices = @transform_5, window_bounds = array<i64: 128, 1>}, {transform_indices = @transform_6, window_bounds = array<i64: 1, 128>}, {transform_indices = @transform_7, window_bounds = array<i64: 1, 128>}, {transform_indices = @transform_8, window_bounds = array<i64: 128, 1>}]} {
    %0 = arith.index_cast %arg0 : i32 to index
    %1 = memref.load %arg2[%0] : memref<1xi32, #tpu.memory_space<smem>>
    %c0_i32 = arith.constant 0 : i32
    %2 = arith.cmpi eq, %arg1, %c0_i32 : i32
    %3 = arith.extui %2 : i1 to i32
    %c0_i32_0 = arith.constant 0 : i32
    %4 = arith.cmpi ne, %3, %c0_i32_0 : i32
    scf.if %4 {
      %cst_26 = arith.constant 0.000000e+00 : f32
      %43 = vector.broadcast %cst_26 : f32 to vector<128x1xf32>
      %c0_27 = arith.constant 0 : index
      %c0_28 = arith.constant 0 : index
      %44 = vector.load %arg11[%c0_27, %c0_28] : memref<128x1xf32, #tpu.memory_space<vmem>>, vector<128x1xf32>
      tpu.vector_store %arg11[%c0_27, %c0_28], %43 {strides = array<i32>} : memref<128x1xf32, #tpu.memory_space<vmem>>, vector<128x1xf32>,
    } else {
    }
    %c0 = arith.constant 0 : index
    %c0_1 = arith.constant 0 : index
    %5 = vector.load %arg3[%c0, %c0_1] : memref<128x32xf32, #tpu.memory_space<vmem>>, vector<128x32xf32>
    %c0_2 = arith.constant 0 : index
    %c0_3 = arith.constant 0 : index
    %6 = vector.load %arg4[%c0_2, %c0_3] : memref<128x32xf32, #tpu.memory_space<vmem>>, vector<128x32xf32>
    %c0_4 = arith.constant 0 : index
    %c0_5 = arith.constant 0 : index
    %7 = vector.load %arg5[%c0_4, %c0_5] : memref<128x32xf32, #tpu.memory_space<vmem>>, vector<128x32xf32>
    %c0_6 = arith.constant 0 : index
    %c0_7 = arith.constant 0 : index
    %8 = vector.load %arg6[%c0_6, %c0_7] : memref<128x32xf32, #tpu.memory_space<vmem>>, vector<128x32xf32>
    %c0_8 = arith.constant 0 : index
    %c0_9 = arith.constant 0 : index
    %9 = vector.load %arg7[%c0_8, %c0_9] : memref<128x1xf32, #tpu.memory_space<vmem>>, vector<128x1xf32>
    %c0_10 = arith.constant 0 : index
    %c0_11 = arith.constant 0 : index
    %10 = vector.load %arg8[%c0_10, %c0_11] : memref<128x1xf32, #tpu.memory_space<vmem>>, vector<128x1xf32>
    %c0_12 = arith.constant 0 : index
    %c0_13 = arith.constant 0 : index
    %11 = vector.load %arg9[%c0_12, %c0_13] : memref<1x128xf32, #tpu.memory_space<vmem>>, vector<1x128xf32>
    %c0_14 = arith.constant 0 : index
    %c0_15 = arith.constant 0 : index
    %12 = vector.load %arg10[%c0_14, %c0_15] : memref<1x128xf32, #tpu.memory_space<vmem>>, vector<1x128xf32>
    %c1_i32 = arith.constant 1 : i32
    %13 = arith.addi %arg1, %c1_i32 : i32
    %c128_i32 = arith.constant 128 : i32
    %14 = arith.muli %13, %c128_i32 : i32
    %c8_i32 = arith.constant 8 : i32
    %15 = arith.subi %14, %c8_i32 : i32
    %c0_i32_16 = arith.constant 0 : i32
    %16 = arith.maxsi %15, %c0_i32_16 : i32
    %17 = arith.sitofp %16 : i32 to f32
    %18 = math.sqrt %9 : vector<128x1xf32>
    %19 = math.sqrt %10 : vector<128x1xf32>
    %cst = arith.constant dense<0.000000e+00> : vector<128x128xf32>
    %20 = tpu.matmul %5, %8, %cst {dimension_numbers = #tpu.dot_dimension_numbers<[1], [1], [0], [0], [0, 0, 1, 0], [], []>} : vector<128x32xf32>, vector<128x32xf32>, vector<128x128xf32> -> vector<128x128xf32>
    %21 = vector.broadcast %9 : vector<128x1xf32> to vector<128x128xf32>
    %22 = vector.broadcast %12 : vector<1x128xf32> to vector<128x128xf32>
    %23 = arith.addf %21, %22 : vector<128x128xf32>
    %cst_17 = arith.constant 2.000000e+00 : f32
    %24 = vector.broadcast %cst_17 : f32 to vector<128x128xf32>
    %25 = arith.mulf %24, %20 : vector<128x128xf32>
    %26 = arith.subf %23, %25 : vector<128x128xf32>
    %cst_18 = arith.constant 0.000000e+00 : f32
    %27 = vector.broadcast %cst_18 : f32 to vector<128x128xf32>
    %28 = arith.maximumf %26, %27 : vector<128x128xf32>
    %29 = math.sqrt %28 : vector<128x128xf32>
    %cst_19 = arith.constant dense<0.000000e+00> : vector<128xf32>
    %30 = vector.multi_reduction <add>, %29, %cst_19 [1] : vector<128x128xf32> to vector<128xf32>
    %31 = vector.shape_cast %30 : vector<128xf32> to vector<128x1xf32>
    %32 = vector.broadcast %17 : f32 to vector<128x1xf32>
    %33 = arith.mulf %32, %18 : vector<128x1xf32>
    %34 = arith.subf %31, %33 : vector<128x1xf32>
    %c0_20 = arith.constant 0 : index
    %c0_21 = arith.constant 0 : index
    %35 = vector.load %arg11[%c0_20, %c0_21] : memref<128x1xf32, #tpu.memory_space<vmem>>, vector<128x1xf32>
    %cst_22 = arith.constant -2.000000e+00 : f32
    %36 = vector.broadcast %cst_22 : f32 to vector<128x1xf32>
    %37 = arith.mulf %36, %34 : vector<128x1xf32>
    %38 = arith.addf %35, %37 : vector<128x1xf32>
    %c0_23 = arith.constant 0 : index
    %c0_24 = arith.constant 0 : index
    %39 = vector.load %arg11[%c0_23, %c0_24] : memref<128x1xf32, #tpu.memory_space<vmem>>, vector<128x1xf32>
    tpu.vector_store %arg11[%c0_23, %c0_24], %38 {strides = array<i32>} : memref<128x1xf32, #tpu.memory_space<vmem>>, vector<128x1xf32>,
    %40 = arith.cmpi sge, %arg1, %1 : i32
    %41 = arith.extui %40 : i1 to i32
    %c0_i32_25 = arith.constant 0 : i32
    %42 = arith.cmpi ne, %41, %c0_i32_25 : i32
    scf.if %42 {
      %cst_26 = arith.constant dense<0.000000e+00> : vector<128x128xf32>
      %43 = tpu.matmul %5, %6, %cst_26 {dimension_numbers = #tpu.dot_dimension_numbers<[1], [1], [0], [0], [0, 0, 1, 0], [], []>} : vector<128x32xf32>, vector<128x32xf32>, vector<128x128xf32> -> vector<128x128xf32>
      %44 = vector.broadcast %9 : vector<128x1xf32> to vector<128x128xf32>
      %45 = vector.broadcast %11 : vector<1x128xf32> to vector<128x128xf32>
      %46 = arith.addf %44, %45 : vector<128x128xf32>
      %cst_27 = arith.constant 2.000000e+00 : f32
      %47 = vector.broadcast %cst_27 : f32 to vector<128x128xf32>
      %48 = arith.mulf %47, %43 : vector<128x128xf32>
      %49 = arith.subf %46, %48 : vector<128x128xf32>
      %cst_28 = arith.constant 0.000000e+00 : f32
      %50 = vector.broadcast %cst_28 : f32 to vector<128x128xf32>
      %51 = arith.maximumf %49, %50 : vector<128x128xf32>
      %52 = math.sqrt %51 : vector<128x128xf32>
      %cst_29 = arith.constant dense<0.000000e+00> : vector<128x128xf32>
      %53 = tpu.matmul %7, %8, %cst_29 {dimension_numbers = #tpu.dot_dimension_numbers<[1], [1], [0], [0], [0, 0, 1, 0], [], []>} : vector<128x32xf32>, vector<128x32xf32>, vector<128x128xf32> -> vector<128x128xf32>
      %54 = vector.broadcast %10 : vector<128x1xf32> to vector<128x128xf32>
      %55 = vector.broadcast %12 : vector<1x128xf32> to vector<128x128xf32>
      %56 = arith.addf %54, %55 : vector<128x128xf32>
      %cst_30 = arith.constant 2.000000e+00 : f32
      %57 = vector.broadcast %cst_30 : f32 to vector<128x128xf32>
      %58 = arith.mulf %57, %53 : vector<128x128xf32>
      %59 = arith.subf %56, %58 : vector<128x128xf32>
      %cst_31 = arith.constant 0.000000e+00 : f32
      %60 = vector.broadcast %cst_31 : f32 to vector<128x128xf32>
      %61 = arith.maximumf %59, %60 : vector<128x128xf32>
      %62 = math.sqrt %61 : vector<128x128xf32>
      %63 = arith.addf %52, %62 : vector<128x128xf32>
      %c128_i32_32 = arith.constant 128 : i32
      %64 = arith.muli %1, %c128_i32_32 : i32
      %65 = tpu.iota {dimensions = array<i32: 0>} : vector<128x1xi32>
      %66 = vector.broadcast %64 : i32 to vector<128x1xi32>
      %67 = arith.addi %66, %65 : vector<128x1xi32>
      %c128_i32_33 = arith.constant 128 : i32
      %68 = arith.muli %arg1, %c128_i32_33 : i32
      %69 = tpu.iota {dimensions = array<i32: 1>} : vector<1x128xi32>
      %70 = vector.broadcast %68 : i32 to vector<1x128xi32>
      %71 = arith.addi %70, %69 : vector<1x128xi32>
      %72 = vector.broadcast %67 : vector<128x1xi32> to vector<128x128xi32>
      %73 = vector.broadcast %71 : vector<1x128xi32> to vector<128x128xi32>
      %74 = arith.cmpi ne, %72, %73 : vector<128x128xi32>
      %cst_34 = arith.constant 0.000000e+00 : f32
      %75 = vector.broadcast %cst_34 : f32 to vector<128x128xf32>
      %76 = arith.select %74, %63, %75 : vector<128x128xi1>, vector<128x128xf32>
      %cst_35 = arith.constant dense<0.000000e+00> : vector<128xf32>
      %77 = vector.multi_reduction <add>, %76, %cst_35 [1] : vector<128x128xf32> to vector<128xf32>
      %78 = vector.shape_cast %77 : vector<128xf32> to vector<128x1xf32>
      %79 = arith.addf %18, %19 : vector<128x1xf32>
      %80 = vector.broadcast %17 : f32 to vector<128x1xf32>
      %81 = arith.mulf %80, %79 : vector<128x1xf32>
      %82 = arith.subf %78, %81 : vector<128x1xf32>
      %83 = arith.cmpi eq, %arg1, %1 : i32
      %cst_36 = arith.constant 1.000000e+00 : f32
      %cst_37 = arith.constant 2.000000e+00 : f32
      %84 = arith.select %83, %cst_36, %cst_37 : f32
      %c0_38 = arith.constant 0 : index
      %c0_39 = arith.constant 0 : index
      %85 = vector.load %arg11[%c0_38, %c0_39] : memref<128x1xf32, #tpu.memory_space<vmem>>, vector<128x1xf32>
      %86 = vector.broadcast %84 : f32 to vector<128x1xf32>
      %87 = arith.mulf %86, %82 : vector<128x1xf32>
      %88 = arith.addf %85, %87 : vector<128x1xf32>
      %c0_40 = arith.constant 0 : index
      %c0_41 = arith.constant 0 : index
      %89 = vector.load %arg11[%c0_40, %c0_41] : memref<128x1xf32, #tpu.memory_space<vmem>>, vector<128x1xf32>
      tpu.vector_store %arg11[%c0_40, %c0_41], %88 {strides = array<i32>} : memref<128x1xf32, #tpu.memory_space<vmem>>, vector<128x1xf32>,
    } else {
    }
    return
  }
  func.func @transform_0(%arg0: i32, %arg1: i32, %arg2: memref<1xi32, #tpu.memory_space<smem>>) -> (i32, i32) {
    %0 = arith.index_cast %arg0 : i32 to index
    %1 = memref.load %arg2[%0] : memref<1xi32, #tpu.memory_space<smem>>
    %c0_i32 = arith.constant 0 : i32
    %c0_i32_0 = arith.constant 0 : i32
    return %1, %c0_i32 : i32, i32
  }
  func.func @transform_1(%arg0: i32, %arg1: i32, %arg2: memref<1xi32, #tpu.memory_space<smem>>) -> (i32, i32) {
    %c0_i32 = arith.constant 0 : i32
    %c0_i32_0 = arith.constant 0 : i32
    return %arg1, %c0_i32 : i32, i32
  }
  func.func @transform_2(%arg0: i32, %arg1: i32, %arg2: memref<1xi32, #tpu.memory_space<smem>>) -> (i32, i32) {
    %0 = arith.index_cast %arg0 : i32 to index
    %1 = memref.load %arg2[%0] : memref<1xi32, #tpu.memory_space<smem>>
    %c0_i32 = arith.constant 0 : i32
    %c0_i32_0 = arith.constant 0 : i32
    return %1, %c0_i32 : i32, i32
  }
  func.func @transform_3(%arg0: i32, %arg1: i32, %arg2: memref<1xi32, #tpu.memory_space<smem>>) -> (i32, i32) {
    %c0_i32 = arith.constant 0 : i32
    %c0_i32_0 = arith.constant 0 : i32
    return %arg1, %c0_i32 : i32, i32
  }
  func.func @transform_4(%arg0: i32, %arg1: i32, %arg2: memref<1xi32, #tpu.memory_space<smem>>) -> (i32, i32) {
    %0 = arith.index_cast %arg0 : i32 to index
    %1 = memref.load %arg2[%0] : memref<1xi32, #tpu.memory_space<smem>>
    %c0_i32 = arith.constant 0 : i32
    %c0_i32_0 = arith.constant 0 : i32
    return %1, %c0_i32 : i32, i32
  }
  func.func @transform_5(%arg0: i32, %arg1: i32, %arg2: memref<1xi32, #tpu.memory_space<smem>>) -> (i32, i32) {
    %0 = arith.index_cast %arg0 : i32 to index
    %1 = memref.load %arg2[%0] : memref<1xi32, #tpu.memory_space<smem>>
    %c0_i32 = arith.constant 0 : i32
    %c0_i32_0 = arith.constant 0 : i32
    return %1, %c0_i32 : i32, i32
  }
  func.func @transform_6(%arg0: i32, %arg1: i32, %arg2: memref<1xi32, #tpu.memory_space<smem>>) -> (i32, i32) {
    %c0_i32 = arith.constant 0 : i32
    %c0_i32_0 = arith.constant 0 : i32
    return %c0_i32, %arg1 : i32, i32
  }
  func.func @transform_7(%arg0: i32, %arg1: i32, %arg2: memref<1xi32, #tpu.memory_space<smem>>) -> (i32, i32) {
    %c0_i32 = arith.constant 0 : i32
    %c0_i32_0 = arith.constant 0 : i32
    return %c0_i32, %arg1 : i32, i32
  }
  func.func @transform_8(%arg0: i32, %arg1: i32, %arg2: memref<1xi32, #tpu.memory_space<smem>>) -> (i32, i32) {
    %0 = arith.index_cast %arg0 : i32 to index
    %1 = memref.load %arg2[%0] : memref<1xi32, #tpu.memory_space<smem>>
    %c0_i32 = arith.constant 0 : i32
    %c0_i32_0 = arith.constant 0 : i32
    return %1, %c0_i32 : i32, i32
  }
}

</mosaic_0001>

<bundles_post_ra>
// kernel: tpu_custom_call.1
= control target key start
LH: loop header
LB: loop body
LE: loop exit
PB: predicated region body
PF: predicated region fallthrough
CT: control target
= control target key end

     0   :  { %v2760_v3 = vmov 0   ;;  %vm643_vm0 = vcmask 261120   ;;  %s5196_s2 = inlined_call_operand.vmem [shape: f32[128,32], index: 2, kind: input, shape index: {}]   ;;  %s5197_s0 = inlined_call_operand.<no memory space> [shape: s32[1], index: 0, kind: input, shape index: {}]   ;;  %s5198_s4 = inlined_call_operand.vmem [shape: f32[128,32], index: 4, kind: input, shape index: {}]   ;;  %s5199_s7 = inlined_call_operand.vmem [shape: f32[1,128], index: 7, kind: input, shape index: {}]   ;;  %s5200_s5 = inlined_call_operand.vmem [shape: f32[128,1], index: 5, kind: input, shape index: {}]   ;;  %s5201_s6 = inlined_call_operand.vmem [shape: f32[128,1], index: 6, kind: input, shape index: {}]   ;;  %s5202_s8 = inlined_call_operand.vmem [shape: f32[1,128], index: 8, kind: input, shape index: {}]   ;;  %s5203_s3 = inlined_call_operand.vmem [shape: f32[128,32], index: 3, kind: input, shape index: {}]   ;;  %s5204_s1 = inlined_call_operand.vmem [shape: f32[128,32], index: 1, kind: input, shape index: {}]   ;;  %s5205_s9 = inlined_call_operand.vmem [shape: f32[128,1], index: 9, kind: output, shape index: {}]  }
   0x1   :  { %v2816_v0 = vld [vmem:[%s5196_s2] sm:$0xff]  ;;  %v2821_v1 = vld [vmem:[%s5196_s2 + $0x8] sm:$0xff]  ;;  %v2826_v2 = vld [vmem:[%s5196_s2 + $0x10] sm:$0xff]  ;;  %2577 = vset.pattern.permute.xlu0 %v2760_v3  ;;  %s2384_s17 = sshll.u32 %s5197_s0, 4  ;;  %2578 = vset.pattern.permute.xlu1 %v2760_v3  ;;  %p2427_p1 = scmp.gt.s32.totalorder %s5197_s0, 0 }
   0x2   :  { %5295 = vst [vmem:[#allocation4_spill] sm:$0xff] %v2816_v0  ;;  %v2834_v4 = vld [vmem:[%s5196_s2 + $0x18] sm:$0xff]  ;;  %v2839_v5 = vld [vmem:[%s5196_s2 + $0x20] sm:$0xff]  ;;  %v2844_v6 = vld [vmem:[%s5196_s2 + $0x28] sm:$0xff]  ;;  %p95_p0 = scmp.lt.s32.totalorder %s2384_s17, 15  ;;  %2579 = vset.pattern.permute.xlu2 %v2760_v3  ;;  %p2493_p2 = scmp.eq.s32.totalorder (!%p2427_p1), %s5197_s0, 0 }
   0x3   :  { %5296 = vst [vmem:[#allocation5_spill] sm:$0xff] %v2821_v1  ;;  %v2849_v7 = vld [vmem:[%s5196_s2 + $0x30] sm:$0xff]  ;;  %v2854_v8 = vld [vmem:[%s5196_s2 + $0x38] sm:$0xff]  ;;  %v2859_v9 = vld [vmem:[%s5196_s2 + $0x40] sm:$0xff] }
   0x4   :  { %5297 = vst [vmem:[#allocation6_spill] sm:$0xff] %v2826_v2  ;;  %v2864_v10 = vld [vmem:[%s5196_s2 + $0x48] sm:$0xff]  ;;  %v2869_v11 = vld [vmem:[%s5196_s2 + $0x50] sm:$0xff]  ;;  %v2874_v12 = vld [vmem:[%s5196_s2 + $0x58] sm:$0xff]  ;;  %s5522_s17 = smov (!%p95_p0, %s2384_s17), 15 }
   0x5   :  { %5298 = vst [vmem:[#allocation7_spill] sm:$0xff] %v2834_v4  ;;  %v2879_v13 = vld [vmem:[%s5196_s2 + $0x60] sm:$0xff]  ;;  %v2884_v14 = vld [vmem:[%s5196_s2 + $0x68] sm:$0xff]  ;;  %v2889_v15 = vld [vmem:[%s5196_s2 + $0x70] sm:$0xff]  ;;  %s2906_s28 = sshll.u32 %s5522_s17, 3 }
   0x6   :  { %5299 = vst [vmem:[#allocation8_spill] sm:$0xff] %v2839_v5  ;;  %v2894_v16 = vld [vmem:[%s5196_s2 + $0x78] sm:$0xff]  ;;  %v2904_v18 = vld [vmem:[%s5199_s7] sm:$0x1]  ;;  %s2916_s30 = scalar_lea.vmem %s5200_s5, %s2906_s28  ;;  %s2922_s7 = scalar_lea.vmem %s5201_s6, %s2906_s28  ;;  %v2931_v19 = vld [vmem:[%s5198_s4 + $0x70] sm:$0xff] }
   0x7   :  { %5300 = vst [vmem:[#allocation9_spill] sm:$0xff] %v2844_v6  ;;  %v2899_v17 = vld [vmem:[%s5198_s4 + $0x78] sm:$0xff]  ;;  %v219_v20 = vld [vmem:[%s2916_s30] sm:$0xff]  ;;  %v2938_v22 = vld [vmem:[%s2922_s7 + $0x8] sm:$0xff]  ;;  %s3115_s22 = scalar_lea.vmem %s5203_s3, %s2906_s28  ;;  %s3510_s21 = scalar_lea.vmem %s5204_s1, %s2906_s28 }
   0x8   :  { %5301 = vst [vmem:[#allocation10_spill] sm:$0xff] %v2849_v7  ;;  %2394 = vmatpush.xpose.msk.msra.mxu0 %vm643_vm0, %v2899_v17  ;;  %2494 = vmatpush.xpose.msk.msra.mxu1 %vm643_vm0, %v2899_v17  ;;  %v2935_v21 = vld [vmem:[%s2922_s7] sm:$0xff]  ;;  %v2941_v23 = vld [vmem:[%s2922_s7 + $0x10] sm:$0xff]  ;;  %v2944_v24 = vld [vmem:[%s2922_s7 + $0x18] sm:$0xff]  ;;  %v473_v39 = vand.u32 2147483648, %v2938_v22  ;;  %vm470_vm3 = vcmp.eq.f32.partialorder %v2938_v22, inf  ;;  %s3853_s23 = scalar_lea.vmem %s5205_s9, %s2906_s28 }
   0x9   :  { %5302 = vst [vmem:[#allocation11_spill] sm:$0xff] %v2854_v8  ;;  %2495 = vmatpush.xpose.msk.msra.mxu2 %vm643_vm0, %v2899_v17  ;;  %2496 = vmatpush.xpose.msk.msra.mxu3 %vm643_vm0, %v2899_v17  ;;  %2581 = vrsqrt.f32 %v2935_v21  ;;  %v2948_v25 = vld [vmem:[%s2922_s7 + $0x20] sm:$0xff]  ;;  %v2956_v26 = vld [vmem:[%s2922_s7 + $0x28] sm:$0xff]  ;;  %v2969_v28 = vld [vmem:[%s2922_s7 + $0x30] sm:$0xff]  ;;  %v461_v35 = vand.u32 2147483648, %v2935_v21  ;;  %vm458_vm1 = vcmp.eq.f32.partialorder %v2935_v21, inf }
   0xa   :  { %5303 = vst [vmem:[#allocation12_spill] sm:$0xff] %v2859_v9  ;;  %807 = vperm.xlu0 %2577, %v219_v20   ;;  %2583 = vrsqrt.f32 %v2938_v22  ;;  %v2966_v27 = vld [vmem:[%s5198_s4 + $0x68] sm:$0xff]  ;;  %v2973_v29 = vld [vmem:[%s2922_s7 + $0x38] sm:$0xff]  ;;  %v2994_v33 = vld [vmem:[%s5198_s4 + $0x60] sm:$0xff]  ;;  %v485_v40 = vand.u32 2147483648, %v2941_v23  ;;  %v497_v41 = vand.u32 2147483648, %v2944_v24 }
   0xb   :  { %5304 = vst [vmem:[#allocation13_spill] sm:$0xff] %v2904_v18  ;;  %2585 = vrsqrt.f32 %v2941_v23  ;;  %v220_v30 = vld [vmem:[%s2916_s30 + $0x8] sm:$0xff]  ;;  %v3003_v37 = vld [vmem:[%s2922_s7 + $0x40] sm:$0xff]  ;;  %vm460_vm2 = vcmp.eq.f32.partialorder %v2935_v21, 0.0  ;;  %vm472_vm4 = vcmp.eq.f32.partialorder %v2938_v22, 0.0  ;;  %vm482_vm5 = vcmp.eq.f32.partialorder %v2941_v23, inf }
   0xc   :  { %2395 = vmatpush.xpose.msk.msra.mxu0 %vm643_vm0, %v2931_v19  ;;  %2497 = vmatpush.xpose.msk.msra.mxu1 %vm643_vm0, %v2931_v19  ;;  %5305 = vst [vmem:[#allocation14_spill] sm:$0xff] %v2969_v28  ;;  %2587 = vrsqrt.f32 %v2944_v24  ;;  %v3014_v43 = vld [vmem:[%s2922_s7 + $0x48] sm:$0xff]  ;;  %v3045_v54 = vld [vmem:[%s5198_s4 + $0x58] sm:$0xff]  ;;  %vm484_vm6 = vcmp.eq.f32.partialorder %v2941_v23, 0.0  ;;  %vm494_vm7 = vcmp.eq.f32.partialorder %v2944_v24, inf  ;;  %vm496_vm8 = vcmp.eq.f32.partialorder %v2944_v24, 0.0 }
   0xd   :  { %2498 = vmatpush.xpose.msk.msra.mxu2 %vm643_vm0, %v2931_v19  ;;  %2499 = vmatpush.xpose.msk.msra.mxu3 %vm643_vm0, %v2931_v19  ;;  %5306 = vst [vmem:[#allocation15_spill] sm:$0xff] %v2973_v29  ;;  %2589 = vrsqrt.f32 %v2948_v25  ;;  %vm506_vm9 = vcmp.eq.f32.partialorder %v2948_v25, inf  ;;  %vm508_vm10 = vcmp.eq.f32.partialorder %v2948_v25, 0.0  ;;  %vm518_vm11 = vcmp.eq.f32.partialorder %v2956_v26, inf  ;;  %v222_v18 = vld [vmem:[%s2916_s30 + $0x18] sm:$0xff]  ;;  %v3391_v0 = vld [vmem:[%s2916_s30 + $0x40] sm:$0xff] }
   0xe   :  { %2591 = vrsqrt.f32 %v2956_v26  ;;  %5307 = vst [vmem:[#allocation16_spill] sm:$0xff] %v3003_v37  ;;  %vm520_vm12 = vcmp.eq.f32.partialorder %v2956_v26, 0.0  ;;  %vm530_vm13 = vcmp.eq.f32.partialorder %v2969_v28, inf  ;;  %vm532_vm14 = vcmp.eq.f32.partialorder %v2969_v28, 0.0  ;;  %s2492_s3 = sshll.u32 (!%p2427_p1), %s5197_s0, 7 }
   0xf   :  { %v2978_v31 = vpop.eup %2581  ;;  %2593 = vrsqrt.f32 %v2969_v28  ;;  %5308 = vst [vmem:[#allocation17_spill] sm:$0xff] %v3014_v43  ;;  %vm542_vm15 = vcmp.eq.f32.partialorder %v2973_v29, inf }
  0x10   :  { %2396 = vmatpush.xpose.msk.msra.mxu0 %vm643_vm0, %v2966_v27  ;;  %2500 = vmatpush.xpose.msk.msra.mxu1 %vm643_vm0, %v2966_v27  ;;  %v2985_v32 = vpop.eup %2583  ;;  %v452_v34 = vmul.f32 %v2978_v31, %v2935_v21  ;;  %2595 = vrsqrt.f32 %v2973_v29 }
  0x11   :  { %2501 = vmatpush.xpose.msk.msra.mxu2 %vm643_vm0, %v2966_v27  ;;  %2502 = vmatpush.xpose.msk.msra.mxu3 %vm643_vm0, %v2966_v27  ;;  %v3000_v36 = vpop.eup %2585  ;;  %v464_v38 = vmul.f32 %v2985_v32, %v2938_v22  ;;  %2597 = vrsqrt.f32 %v3003_v37 }
  0x12   :  { %812 = vperm.xlu0 %2577, %v220_v30   ;;  %v3011_v42 = vpop.eup %2587  ;;  %v453_v44 = vmul.f32 %v2978_v31, %v452_v34  ;;  %v476_v45 = vmul.f32 %v3000_v36, %v2941_v23  ;;  %2599 = vrsqrt.f32 %v3014_v43  ;;  %v225_v34 = vld [vmem:[%s2916_s30 + $0x30] sm:$0xff] }
  0x13   :  { %v3023_v48 = vpop.eup %2589  ;;  %v465_v49 = vmul.f32 %v2985_v32, %v464_v38  ;;  %v488_v50 = vmul.f32 %v3011_v42, %v2944_v24 }
  0x14   :  { %2397 = vmatpush.xpose.msk.msra.mxu0 %vm643_vm0, %v2994_v33  ;;  %2503 = vmatpush.xpose.msk.msra.mxu1 %vm643_vm0, %v2994_v33  ;;  %v3036_v53 = vpop.eup %2591  ;;  %v454_v55 = vmul.f32 0.5, %v453_v44  ;;  %v477_v56 = vmul.f32 %v3000_v36, %v476_v45  ;;  %v500_v57 = vmul.f32 %v3023_v48, %v2948_v25 }
  0x15   :  { %2504 = vmatpush.xpose.msk.msra.mxu2 %vm643_vm0, %v2994_v33  ;;  %2505 = vmatpush.xpose.msk.msra.mxu3 %vm643_vm0, %v2994_v33  ;;  %v3053_v58 = vpop.eup %2593  ;;  %v466_v59 = vmul.f32 0.5, %v465_v49  ;;  %v489_v60 = vmul.f32 %v3011_v42, %v488_v50  ;;  %v512_v61 = vmul.f32 %v3036_v53, %v2956_v26 }
  0x16   :  { %v3061_v62 = vpop.eup %2595  ;;  %v455_v63 = vsub.f32 1.5, %v454_v55  ;;  %v478_v3 = vmul.f32 0.5, %v477_v56  ;;  %v501_v20 = vmul.f32 %v3023_v48, %v500_v57  ;;  %v524_v30 = vmul.f32 %v3053_v58, %v2969_v28 }
  0x17   :  { %v467_v38 = vsub.f32 1.5, %v466_v59  ;;  %v490_v44 = vmul.f32 0.5, %v489_v60  ;;  %v513_v45 = vmul.f32 %v3036_v53, %v512_v61  ;;  %v536_v49 = vmul.f32 %v3061_v62, %v2973_v29  ;;  %v3088_v59 = vld [vmem:[%s5198_s4 + $0x50] sm:$0xff] }
  0x18   :  { %2398 = vmatpush.xpose.msk.msra.mxu0 %vm643_vm0, %v3045_v54  ;;  %2506 = vmatpush.xpose.msk.msra.mxu1 %vm643_vm0, %v3045_v54  ;;  %v456_v50 = vmul.f32 %v2978_v31, %v455_v63  ;;  %v479_v55 = vsub.f32 1.5, %v478_v3  ;;  %v502_v56 = vmul.f32 0.5, %v501_v20  ;;  %v525_v57 = vmul.f32 %v3053_v58, %v524_v30  ;;  %v221_v60 = vld [vmem:[%s2916_s30 + $0x10] sm:$0xff]  ;;  %v3093_v31 = vpop.eup %2597 }
  0x19   :  { %2507 = vmatpush.xpose.msk.msra.mxu2 %vm643_vm0, %v3045_v54  ;;  %2508 = vmatpush.xpose.msk.msra.mxu3 %vm643_vm0, %v3045_v54  ;;  %v468_v61 = vmul.f32 %v2985_v32, %v467_v38  ;;  %v491_v52 = vsub.f32 1.5, %v490_v44  ;;  %v514_v51 = vmul.f32 0.5, %v513_v45  ;;  %v537_v47 = vmul.f32 %v3061_v62, %v536_v49  ;;  %v3098_v46 = vpop.eup %2599 }
  0x1a   :  { %837 = vperm.xlu0 %2577, %v225_v34   ;;  %817 = vperm.xlu1 %2578, %v221_v60   ;;  %v457_v63 = vmul.f32 %v456_v50, %v2935_v21  ;;  %v480_v3 = vmul.f32 %v3000_v36, %v479_v55  ;;  %v503_v20 = vsub.f32 1.5, %v502_v56  ;;  %v526_v30 = vmul.f32 0.5, %v525_v57  ;;  %v3138_v55 = vld [vmem:[%s2922_s7 + $0x50] sm:$0xff] }
  0x1b   :  { %v469_v32 = vmul.f32 %v468_v61, %v2938_v22  ;;  %v492_v38 = vmul.f32 %v3011_v42, %v491_v52  ;;  %v515_v44 = vsub.f32 1.5, %v514_v51  ;;  %v538_v34 = vmul.f32 0.5, %v537_v47  ;;  %v3124_v42 = vld [vmem:[%s5198_s4 + $0x48] sm:$0xff]  ;;  %5311 = vst [vmem:[#allocation20_spill] sm:$0xff] %v3138_v55 }
  0x1c   :  { %2399 = vmatpush.xpose.msk.msra.mxu0 %vm643_vm0, %v3088_v59  ;;  %2509 = vmatpush.xpose.msk.msra.mxu1 %vm643_vm0, %v3088_v59  ;;  %v459_v36 = vsel %vm458_vm1, %v2935_v21, %v457_v63  ;;  %v481_v45 = vmul.f32 %v480_v3, %v2941_v23  ;;  %v504_v49 = vmul.f32 %v3023_v48, %v503_v20  ;;  %v527_v50 = vsub.f32 1.5, %v526_v30  ;;  %v228_v61 = vld [vmem:[%s2916_s30 + $0x48] sm:$0xff]  ;;  %v3158_v63 = vld [vmem:[%s2922_s7 + $0x58] sm:$0xff]  ;;  %v3171_v30 = vld [vmem:[%s3115_s22] sm:$0xff] }
  0x1d   :  { %2510 = vmatpush.xpose.msk.msra.mxu2 %vm643_vm0, %v3088_v59  ;;  %2511 = vmatpush.xpose.msk.msra.mxu3 %vm643_vm0, %v3088_v59  ;;  %5309 = vst [vmem:[#allocation18_spill] sm:$0xff] %v3124_v42  ;;  %v3130_v47 = vsel %vm460_vm2, %v461_v35, %v459_v36  ;;  %v471_v48 = vsel %vm470_vm3, %v2938_v22, %v469_v32  ;;  %v539_v20 = vsub.f32 1.5, %v538_v34  ;;  %v3174_v32 = vld [vmem:[%s3115_s22 + $0x8] sm:$0xff]  ;;  %2601 = vrsqrt.f32 %v3138_v55 }
  0x1e   :  { %5310 = vst [vmem:[#allocation19_spill] sm:$0xff] %v3130_v47  ;;  %v493_v51 = vmul.f32 %v492_v38, %v2944_v24  ;;  %v516_v52 = vmul.f32 %v3036_v53, %v515_v44  ;;  %v3144_v56 = vsel %vm472_vm4, %v473_v39, %v471_v48  ;;  %v483_v35 = vsel %vm482_vm5, %v2941_v23, %v481_v45  ;;  %v3154_v53 = vld [vmem:[%s5198_s4 + $0x40] sm:$0xff]  ;;  %v3177_v38 = vld [vmem:[%s3115_s22 + $0x10] sm:$0xff]  ;;  %v3196_v45 = vld [vmem:[%s3115_s22 + $0x18] sm:$0xff] }
  0x1f   :  { %5312 = vst [vmem:[#allocation21_spill] sm:$0xff] %v3144_v56  ;;  %v505_v57 = vmul.f32 %v504_v49, %v2948_v25  ;;  %v528_v60 = vmul.f32 %v3053_v58, %v527_v50  ;;  %v3164_v39 = vsel %vm484_vm6, %v485_v40, %v483_v35  ;;  %v548_v36 = vmul.f32 %v3093_v31, %v3003_v37  ;;  %v3199_v49 = vld [vmem:[%s3115_s22 + $0x20] sm:$0xff]  ;;  %v3202_v50 = vld [vmem:[%s3115_s22 + $0x28] sm:$0xff] }
  0x20   :  { %5313 = vst [vmem:[#allocation22_spill] sm:$0xff] %v3154_v53  ;;  %v495_v58 = vsel %vm494_vm7, %v2944_v24, %v493_v51  ;;  %v517_v3 = vmul.f32 %v516_v52, %v2956_v26  ;;  %2400 = vmatpush.xpose.msk.msra.mxu0 %vm643_vm0, %v3124_v42  ;;  %2512 = vmatpush.xpose.msk.msra.mxu1 %vm643_vm0, %v3124_v42  ;;  %v5324_v48 = vand.u32 2147483648, %v2948_v25  ;;  %vm544_vm1 = vcmp.eq.f32.partialorder %v2973_v29, 0.0  ;;  %v3265_v56 = vld [vmem:[%s3115_s22 + $0x68] sm:$0xff] }
  0x21   :  { %5314 = vst [vmem:[#allocation23_spill] sm:$0xff] %v3158_v63  ;;  %v3187_v40 = vsel %vm496_vm8, %v497_v41, %v495_v58  ;;  %v507_v44 = vsel %vm506_vm9, %v2948_v25, %v505_v57  ;;  %v529_v34 = vmul.f32 %v528_v60, %v2969_v28  ;;  %2513 = vmatpush.xpose.msk.msra.mxu2 %vm643_vm0, %v3124_v42  ;;  %v3207_v41 = vld [vmem:[%s2922_s7 + $0x60] sm:$0xff]  ;;  %v3222_v60 = vld [vmem:[%s3115_s22 + $0x30] sm:$0xff]  ;;  %v3225_v58 = vld [vmem:[%s3115_s22 + $0x38] sm:$0xff]  ;;  %2603 = vrsqrt.f32 %v3158_v63 }
  0x22   :  { %5315 = vst [vmem:[#allocation24_spill] sm:$0xff] %v3164_v39  ;;  %v3213_v51 = vsel %vm508_vm10, %v5324_v48, %v507_v44  ;;  %v519_v52 = vsel %vm518_vm11, %v2956_v26, %v517_v3  ;;  %v540_v35 = vmul.f32 %v3061_v62, %v539_v20  ;;  %v560_v57 = vmul.f32 %v3098_v46, %v3014_v43  ;;  %v3244_v48 = vld [vmem:[%s3115_s22 + $0x48] sm:$0xff]  ;;  %v3250_v39 = vld [vmem:[%s3115_s22 + $0x58] sm:$0xff] }
  0x23   :  { %5316 = vst [vmem:[#allocation25_spill] sm:$0xff] %v3171_v30  ;;  %2514 = vmatpush.xpose.msk.msra.mxu3 %vm643_vm0, %v3124_v42  ;;  %v5329_v44 = vand.u32 2147483648, %v2956_v26  ;;  %v531_v3 = vsel %vm530_vm13, %v2969_v28, %v529_v34  ;;  %v549_v20 = vmul.f32 %v3093_v31, %v548_v36  ;;  %852 = vperm.xlu0 %2577, %v228_v61   ;;  %v3268_v61 = vld [vmem:[%s3115_s22 + $0x70] sm:$0xff]  ;;  %2605 = vrsqrt.f32 %v3207_v41 }
  0x24   :  { %5317 = vst [vmem:[#allocation26_spill] sm:$0xff] %v3174_v32  ;;  %v541_v34 = vmul.f32 %v540_v35, %v2973_v29  ;;  %v561_v36 = vmul.f32 %v3098_v46, %v560_v57  ;;  %2401 = vmatpush.xpose.msk.msra.mxu0 %vm643_vm0, %v3154_v53  ;;  %2515 = vmatpush.xpose.msk.msra.mxu1 %vm643_vm0, %v3154_v53  ;;  %v3276_v35 = vld [vmem:[%s3115_s22 + $0x78] sm:$0xff]  ;;  %vm554_vm2 = vcmp.eq.f32.partialorder %v3003_v37, inf  ;;  %vm556_vm3 = vcmp.eq.f32.partialorder %v3003_v37, 0.0 }
  0x25   :  { %5318 = vst [vmem:[#allocation27_spill] sm:$0xff] %v3177_v38  ;;  %v3236_v62 = vsel %vm520_vm12, %v5329_v44, %v519_v52  ;;  %v5334_v52 = vand.u32 2147483648, %v2969_v28  ;;  %2516 = vmatpush.xpose.msk.msra.mxu2 %vm643_vm0, %v3154_v53  ;;  %v3283_v57 = vld [vmem:[%s5198_s4 + $0x38] sm:$0xff]  ;;  %822 = vperm.xlu1 %2578, %v222_v18   ;;  %v3322_v18 = vld [vmem:[%s5198_s4 + $0x30] sm:$0xff]  ;;  %vm566_vm4 = vcmp.eq.f32.partialorder %v3014_v43, inf  ;;  %vm568_vm5 = vcmp.eq.f32.partialorder %v3014_v43, 0.0 }
  0x26   :  { %5319 = vst [vmem:[#allocation28_spill] sm:$0xff] %v3187_v40  ;;  %v3228_v40 = vld [vmem:[%s3115_s22 + $0x40] sm:$0xff]  ;;  %v562_v47 = vmul.f32 0.5, %v561_v36  ;;  %v2602_v36 = vpop.eup %2601  ;;  %vm578_vm6 = vcmp.eq.f32.partialorder %v3138_v55, inf  ;;  %vm580_vm7 = vcmp.eq.f32.partialorder %v3138_v55, 0.0  ;;  %vm590_vm8 = vcmp.eq.f32.partialorder %v3158_v63, inf }
  0x27   :  { %5320 = vst [vmem:[#allocation29_spill] sm:$0xff] %v3196_v45  ;;  %v3256_v44 = vsel %vm532_vm14, %v5334_v52, %v531_v3  ;;  %v550_v3 = vmul.f32 0.5, %v549_v20  ;;  %v223_v52 = vld [vmem:[%s2916_s30 + $0x20] sm:$0xff]  ;;  %v543_v20 = vsel %vm542_vm15, %v2973_v29, %v541_v34  ;;  %2517 = vmatpush.xpose.msk.msra.mxu3 %vm643_vm0, %v3154_v53  ;;  %vm592_vm9 = vcmp.eq.f32.partialorder %v3158_v63, 0.0 }
  0x28   :  { %5321 = vst [vmem:[#allocation30_spill] sm:$0xff] %v3199_v49  ;;  %827 = vperm.xlu2 %2579, %v223_v52   ;;  %2402 = vmatpush.xpose.msk.msra.mxu0 %vm643_vm0, %v3283_v57  ;;  %v231_v34 = vld [vmem:[%s2916_s30 + $0x60] sm:$0xff]  ;;  %v3311_v52 = vld [vmem:[%s2922_s7 + $0x78] sm:$0xff]  ;;  %vm602_vm10 = vcmp.eq.f32.partialorder %v3207_v41, inf  ;;  %vm604_vm11 = vcmp.eq.f32.partialorder %v3207_v41, 0.0 }
  0x29   :  { %5322 = vst [vmem:[#allocation31_spill] sm:$0xff] %v3202_v50  ;;  %2518 = vmatpush.xpose.msk.msra.mxu1 %vm643_vm0, %v3283_v57  ;;  %2519 = vmatpush.xpose.msk.msra.mxu2 %vm643_vm0, %v3283_v57 }
  0x2a   :  { %5323 = vst [vmem:[#allocation32_spill] sm:$0xff] %v3207_v41 }
  0x2b   :  { %5325 = vst [vmem:[#allocation33_spill] sm:$0xff] %v3213_v51  ;;  %v3247_v51 = vld [vmem:[%s3115_s22 + $0x50] sm:$0xff]  ;;  %2520 = vmatpush.xpose.msk.msra.mxu3 %vm643_vm0, %v3283_v57  ;;  %867 = vperm.xlu0 %2577, %v231_v34  }
  0x2c   :  { %5326 = vst [vmem:[#allocation34_spill] sm:$0xff] %v3222_v60  ;;  %v551_v60 = vsub.f32 1.5, %v550_v3  ;;  %2403 = vmatpush.xpose.msk.msra.mxu0 %vm643_vm0, %v3322_v18 }
  0x2d   :  { %5327 = vst [vmem:[#allocation35_spill] sm:$0xff] %v3225_v58  ;;  %v5343_v58 = vand.u32 2147483648, %v2973_v29  ;;  %2521 = vmatpush.xpose.msk.msra.mxu1 %vm643_vm0, %v3322_v18  ;;  %2522 = vmatpush.xpose.msk.msra.mxu2 %vm643_vm0, %v3322_v18 }
  0x2e   :  { %5328 = vst [vmem:[#allocation36_spill] sm:$0xff] %v3228_v40  ;;  %v552_v50 = vmul.f32 %v3093_v31, %v551_v60  ;;  %v572_v31 = vmul.f32 %v2602_v36, %v3138_v55  ;;  %v2604_v60 = vpop.eup %2603 }
  0x2f   :  { %5330 = vst [vmem:[#allocation37_spill] sm:$0xff] %v3236_v62  ;;  %v3262_v62 = vld [vmem:[%s3115_s22 + $0x60] sm:$0xff]  ;;  %v2606_v49 = vpop.eup %2605  ;;  %2523 = vmatpush.xpose.msk.msra.mxu3 %vm643_vm0, %v3322_v18 }
  0x30   :  { %5331 = vst [vmem:[#allocation38_spill] sm:$0xff] %v3244_v48  ;;  %v553_v3 = vmul.f32 %v552_v50, %v3003_v37  ;;  %v226_v50 = vld [vmem:[%s2916_s30 + $0x38] sm:$0xff] }
  0x31   :  { %5332 = vst [vmem:[#allocation39_spill] sm:$0xff] %v3247_v51  ;;  %842 = vperm.xlu1 %2578, %v226_v50  }
  0x32   :  { %5333 = vst [vmem:[#allocation40_spill] sm:$0xff] %v3250_v39  ;;  %v555_v34 = vsel %vm554_vm2, %v3003_v37, %v553_v3  ;;  %vm640_vm2 = vcmp.eq.f32.partialorder %v3311_v52, 0.0 }
  0x33   :  { %5335 = vst [vmem:[#allocation41_spill] sm:$0xff] %v3256_v44  ;;  %v3287_v44 = vld [vmem:[%s2922_s7 + $0x68] sm:$0xff] }
  0x34   :  { %5336 = vst [vmem:[#allocation42_spill] sm:$0xff] %v3262_v62  ;;  %2607 = vrsqrt.f32 %v3287_v44  ;;  %v584_v62 = vmul.f32 %v2604_v60, %v3158_v63  ;;  %vm614_vm12 = vcmp.eq.f32.partialorder %v3287_v44, inf  ;;  %vm616_vm13 = vcmp.eq.f32.partialorder %v3287_v44, 0.0 }
  0x35   :  { %5337 = vst [vmem:[#allocation43_spill] sm:$0xff] %v3265_v56  ;;  %v563_v56 = vsub.f32 1.5, %v562_v47  ;;  %v557_v47 = vand.u32 2147483648, %v3003_v37 }
  0x36   :  { %5338 = vst [vmem:[#allocation44_spill] sm:$0xff] %v3268_v61  ;;  %v3302_v61 = vsel %vm544_vm1, %v5343_v58, %v543_v20  ;;  %v569_v20 = vand.u32 2147483648, %v3014_v43  ;;  %v585_v51 = vmul.f32 %v2604_v60, %v584_v62  ;;  %vm638_vm1 = vcmp.eq.f32.partialorder %v3311_v52, inf }
  0x37   :  { %5339 = vst [vmem:[#allocation45_spill] sm:$0xff] %v3276_v35  ;;  %v3296_v35 = vld [vmem:[%s2922_s7 + $0x70] sm:$0xff]  ;;  %v564_v58 = vmul.f32 %v3098_v46, %v563_v56  ;;  %v573_v56 = vmul.f32 %v2602_v36, %v572_v31  ;;  %v3355_v31 = vsel %vm556_vm3, %v557_v47, %v555_v34  ;;  %v596_v47 = vmul.f32 %v2606_v49, %v3207_v41 }
  0x38   :  { %5340 = vst [vmem:[#allocation46_spill] sm:$0xff] %v3283_v57  ;;  %2609 = vrsqrt.f32 %v3296_v35  ;;  %vm626_vm14 = vcmp.eq.f32.partialorder %v3296_v35, inf  ;;  %vm628_vm15 = vcmp.eq.f32.partialorder %v3296_v35, 0.0 }
  0x39   :  { %5341 = vst [vmem:[#allocation47_spill] sm:$0xff] %v3287_v44  ;;  %v565_v46 = vmul.f32 %v564_v58, %v3014_v43  ;;  %2611 = vrsqrt.f32 %v3311_v52  ;;  %v3351_v58 = vld [vmem:[%s5198_s4 + $0x28] sm:$0xff]  ;;  %v574_v45 = vmul.f32 0.5, %v573_v56 }
  0x3a   :  { %5342 = vst [vmem:[#allocation48_spill] sm:$0xff] %v3296_v35  ;;  %v2608_v3 = vpop.eup %2607  ;;  %2404 = vmatpush.xpose.msk.msra.mxu0 %vm643_vm0, %v3351_v58  ;;  %2524 = vmatpush.xpose.msk.msra.mxu1 %vm643_vm0, %v3351_v58 }
  0x3b   :  { %5344 = vst [vmem:[#allocation49_spill] sm:$0xff] %v3302_v61  ;;  %v224_v61 = vld [vmem:[%s2916_s30 + $0x28] sm:$0xff]  ;;  %v567_v39 = vsel %vm566_vm4, %v3014_v43, %v565_v46  ;;  %v586_v46 = vmul.f32 0.5, %v585_v51  ;;  %v608_v62 = vmul.f32 %v2608_v3, %v3287_v44  ;;  %2525 = vmatpush.xpose.msk.msra.mxu2 %vm643_vm0, %v3351_v58  ;;  %v3383_v51 = vld [vmem:[%s5198_s4 + $0x20] sm:$0xff]  ;;  %2526 = vmatpush.xpose.msk.msra.mxu3 %vm643_vm0, %v3351_v58 }
  0x3c   :  { %5345 = vst [vmem:[#allocation50_spill] sm:$0xff] %v3311_v52  ;;  %832 = vperm.xlu2 %2579, %v224_v61   ;;  %v3364_v38 = vsel %vm568_vm5, %v569_v20, %v567_v39  ;;  %v234_v39 = vld [vmem:[%s2916_s30 + $0x78] sm:$0xff]  ;;  %v581_v61 = vand.u32 2147483648, %v3138_v55  ;;  %v597_v20 = vmul.f32 %v2606_v49, %v596_v47  ;;  %v593_v47 = vand.u32 2147483648, %v3158_v63 }
  0x3d   :  { %5346 = vst [vmem:[#allocation51_spill] sm:$0xff] %v3322_v18  ;;  %v609_v48 = vmul.f32 %v2608_v3, %v608_v62  ;;  %882 = vperm.xlu0 %2577, %v234_v39  }
  0x3e   :  { %5347 = vst [vmem:[#allocation52_spill] sm:$0xff] %v3351_v58  ;;  %v2610_v34 = vpop.eup %2609  ;;  %v598_v32 = vmul.f32 0.5, %v597_v20  ;;  %2405 = vmatpush.xpose.msk.msra.mxu0 %vm643_vm0, %v3383_v51  ;;  %2527 = vmatpush.xpose.msk.msra.mxu1 %vm643_vm0, %v3383_v51 }
  0x3f   :  { %5348 = vst [vmem:[#allocation53_spill] sm:$0xff] %v3355_v31  ;;  %v575_v31 = vsub.f32 1.5, %v574_v45  ;;  %v620_v45 = vmul.f32 %v2610_v34, %v3296_v35  ;;  %v2612_v56 = vpop.eup %2611  ;;  %2528 = vmatpush.xpose.msk.msra.mxu2 %vm643_vm0, %v3383_v51  ;;  %2529 = vmatpush.xpose.msk.msra.mxu3 %vm643_vm0, %v3383_v51 }
  0x40   :  { %5349 = vst [vmem:[#allocation54_spill] sm:$0xff] %v3364_v38  ;;  %v587_v38 = vsub.f32 1.5, %v586_v46  ;;  %v632_v30 = vmul.f32 %v2612_v56, %v3311_v52  ;;  %v3400_v46 = vld [vmem:[%s2916_s30 + $0x50] sm:$0xff]  ;;  %v599_v62 = vsub.f32 1.5, %v598_v32  ;;  %v605_v32 = vand.u32 2147483648, %v3207_v41 }
  0x41   :  { %5350 = vst [vmem:[#allocation55_spill] sm:$0xff] %v3383_v51  ;;  %v576_v50 = vmul.f32 %v2602_v36, %v575_v31  ;;  %v621_v40 = vmul.f32 %v2610_v34, %v620_v45  ;;  %v610_v31 = vmul.f32 0.5, %v609_v48  ;;  %857 = vperm.xlu1 %2578, %v3400_v46  }
  0x42   :  { %v588_v36 = vmul.f32 %v2604_v60, %v587_v38  ;;  %v633_v20 = vmul.f32 %v2612_v56, %v632_v30  ;;  %v3408_v38 = vld [vmem:[%s5198_s4 + $0x18] sm:$0xff] }
  0x43   :  { %v577_v1 = vmul.f32 %v576_v50, %v3138_v55  ;;  %v622_v39 = vmul.f32 0.5, %v621_v40  ;;  %5351 = vst [vmem:[#allocation56_spill] sm:$0xff] %v3408_v38  ;;  %v611_v45 = vsub.f32 1.5, %v610_v31  ;;  %v600_v40 = vmul.f32 %v2606_v49, %v599_v62  ;;  %2406 = vmatpush.xpose.msk.msra.mxu0 %vm643_vm0, %v3408_v38  ;;  %2530 = vmatpush.xpose.msk.msra.mxu1 %vm643_vm0, %v3408_v38 }
  0x44   :  { %v589_v60 = vmul.f32 %v588_v36, %v3158_v63  ;;  %847 = vperm.xlu2 %2579, %v3391_v0   ;;  %v634_v2 = vmul.f32 0.5, %v633_v20  ;;  %v617_v31 = vand.u32 2147483648, %v3287_v44  ;;  %2531 = vmatpush.xpose.msk.msra.mxu2 %vm643_vm0, %v3408_v38 }
  0x45   :  { %v579_v48 = vsel %vm578_vm6, %v3138_v55, %v577_v1  ;;  %v623_v50 = vsub.f32 1.5, %v622_v39  ;;  %v612_v36 = vmul.f32 %v2608_v3, %v611_v45  ;;  %v3442_v3 = vld [vmem:[%s5198_s4 + $0x10] sm:$0xff]  ;;  %2532 = vmatpush.xpose.msk.msra.mxu3 %vm643_vm0, %v3408_v38 }
  0x46   :  { %v3420_v30 = vsel %vm580_vm7, %v581_v61, %v579_v48  ;;  %v591_v1 = vsel %vm590_vm8, %v3158_v63, %v589_v60  ;;  %v601_v61 = vmul.f32 %v600_v40, %v3207_v41  ;;  %v635_v39 = vsub.f32 1.5, %v634_v2  ;;  %5354 = vst [vmem:[#allocation59_spill] sm:$0xff] %v3442_v3  ;;  %v230_v60 = vld [vmem:[%s2916_s30 + $0x58] sm:$0xff] }
  0x47   :  { %5352 = vst [vmem:[#allocation57_spill] sm:$0xff] %v3420_v30  ;;  %v3434_v49 = vsel %vm592_vm9, %v593_v47, %v591_v1  ;;  %v624_v62 = vmul.f32 %v2610_v34, %v623_v50  ;;  %v613_v20 = vmul.f32 %v612_v36, %v3287_v44  ;;  %v629_v47 = vand.u32 2147483648, %v3296_v35  ;;  %2407 = vmatpush.xpose.msk.msra.mxu0 %vm643_vm0, %v3442_v3 }
  0x48   :  { %5353 = vst [vmem:[#allocation58_spill] sm:$0xff] %v3434_v49  ;;  %v603_v2 = vsel %vm602_vm10, %v3207_v41, %v601_v61  ;;  %v636_v48 = vmul.f32 %v2612_v56, %v635_v39  ;;  %v641_v50 = vand.u32 2147483648, %v3311_v52  ;;  %2533 = vmatpush.xpose.msk.msra.mxu1 %vm643_vm0, %v3442_v3  ;;  %v232_v56 = vld [vmem:[%s2916_s30 + $0x68] sm:$0xff]  ;;  %2534 = vmatpush.xpose.msk.msra.mxu2 %vm643_vm0, %v3442_v3  ;;  %v3593_v49 = vld [vmem:[%s3510_s21 + $0x78] sm:$0xff] }
  0x49   :  { %v625_v34 = vmul.f32 %v624_v62, %v3296_v35  ;;  %v3458_v45 = vsel %vm604_vm11, %v605_v32, %v603_v2  ;;  %v615_v40 = vsel %vm614_vm12, %v3287_v44, %v613_v20  ;;  %v3484_v61 = vld [vmem:[%s5198_s4 + $0x8] sm:$0xff]  ;;  %2535 = vmatpush.xpose.msk.msra.mxu3 %vm643_vm0, %v3442_v3  ;;  %872 = vperm.xlu1 %2578, %v232_v56   ;;  %v3504_v20 = vld [vmem:[%s5198_s4] sm:$0xff] }
  0x4a   :  { %5355 = vst [vmem:[#allocation60_spill] sm:$0xff] %v3458_v45  ;;  %v3472_v1 = vsel %vm616_vm13, %v617_v31, %v615_v40  ;;  %v637_v36 = vmul.f32 %v636_v48, %v3311_v52  ;;  %v3520_v2 = vld [vmem:[%s3510_s21] sm:$0xff]  ;;  %v3544_v40 = vld [vmem:[%s3510_s21 + $0x8] sm:$0xff]  ;;  %v3590_v45 = vld [vmem:[%s3510_s21 + $0x58] sm:$0xff] }
  0x4b   :  { %5356 = vst [vmem:[#allocation61_spill] sm:$0xff] %v3472_v1  ;;  %v627_v32 = vsel %vm626_vm14, %v3296_v35, %v625_v34  ;;  %2408 = vmatpush.xpose.msk.msra.mxu0 %vm643_vm0, %v3484_v61  ;;  %v3523_v34 = vld [vmem:[%s3510_s21 + $0x20] sm:$0xff]  ;;  %v3550_v56 = vld [vmem:[%s3510_s21 + $0x48] sm:$0xff]  ;;  %v3573_v1 = vld [vmem:[%s3510_s21 + $0x70] sm:$0xff] }
  0x4c   :  { %5357 = vst [vmem:[#allocation62_spill] sm:$0xff] %v3484_v61  ;;  %v3488_v31 = vsel %vm628_vm15, %v629_v47, %v627_v32  ;;  %862 = vperm.xlu2 %2579, %v230_v60   ;;  %v639_v62 = vsel %vm638_vm1, %v3311_v52, %v637_v36  ;;  %2536 = vmatpush.xpose.msk.msra.mxu1 %vm643_vm0, %v3484_v61  ;;  %v233_v47 = vld [vmem:[%s2916_s30 + $0x70] sm:$0xff]  ;;  %v3528_v48 = vld [vmem:[%s3510_s21 + $0x40] sm:$0xff]  ;;  %v3553_v32 = vld [vmem:[%s3510_s21 + $0x68] sm:$0xff] }
  0x4d   :  { %5358 = vst [vmem:[#allocation63_spill] sm:$0xff] %v3488_v31  ;;  %v3493_v39 = vsel %vm640_vm2, %v641_v50, %v639_v62  ;;  %2537 = vmatpush.xpose.msk.msra.mxu2 %vm643_vm0, %v3484_v61  ;;  %2538 = vmatpush.xpose.msk.msra.mxu3 %vm643_vm0, %v3484_v61  ;;  %v3533_v60 = vld [vmem:[%s3510_s21 + $0x60] sm:$0xff]  ;;  %v3547_v50 = vld [vmem:[%s3510_s21 + $0x28] sm:$0xff]  ;;  %v3564_v36 = vld [vmem:[%s3510_s21 + $0x10] sm:$0xff] }
  0x4e   :  { %5359 = vst [vmem:[#allocation64_spill] sm:$0xff] %v3493_v39  ;;  %v3567_v62 = vld [vmem:[%s3510_s21 + $0x30] sm:$0xff]  ;;  %v3584_v39 = vld [vmem:[%s3510_s21 + $0x18] sm:$0xff] }
  0x4f   :  { %5360 = vst [vmem:[#allocation65_spill] sm:$0xff] %v3504_v20  ;;  %2409 = vmatpush.xpose.msk.msra.mxu0 %vm643_vm0, %v3504_v20  ;;  %v3587_v31 = vld [vmem:[%s3510_s21 + $0x38] sm:$0xff] }
  0x50   :  { %2539 = vmatpush.xpose.msk.msra.mxu1 %vm643_vm0, %v3504_v20  ;;  %5361 = vst [vmem:[#allocation66_spill] sm:$0xff] %v3520_v2 }
  0x51   :  { %5362 = vst [vmem:[#allocation67_spill] sm:$0xff] %v3523_v34  ;;  %2540 = vmatpush.xpose.msk.msra.mxu2 %vm643_vm0, %v3504_v20  ;;  %2541 = vmatpush.xpose.msk.msra.mxu3 %vm643_vm0, %v3504_v20 }
  0x52   :  { %5363 = vst [vmem:[#allocation68_spill] sm:$0xff] %v3528_v48  ;;  %2410 = vmatmul.msk.f32.vlgmr.msra.gmra.mxu0 %vm643_vm0, %v3520_v2 }
  0x53   :  { %5364 = vst [vmem:[#allocation69_spill] sm:$0xff] %v3533_v60  ;;  %2414 = vmatmul.msk.f32.vlgmr.msra.gmra.mxu1 %vm643_vm0, %v3523_v34 }
  0x54   :  { %877 = vperm.xlu2 %2579, %v233_v47   ;;  %2418 = vmatmul.msk.f32.vlgmr.msra.gmra.mxu2 %vm643_vm0, %v3528_v48  ;;  %5365 = vst [vmem:[#allocation70_spill] sm:$0xff] %v3544_v40  ;;  %v3570_v47 = vld [vmem:[%s3510_s21 + $0x50] sm:$0xff] }
  0x55   :  { %2422 = vmatmul.msk.f32.vlgmr.msra.gmra.mxu3 %vm643_vm0, %v3533_v60  ;;  %5366 = vst [vmem:[#allocation71_spill] sm:$0xff] %v3547_v50 }
  0x56   :  { %5367 = vst [vmem:[#allocation72_spill] sm:$0xff] %v3550_v56 }
  0x57   :  { %5368 = vst [vmem:[#allocation73_spill] sm:$0xff] %v3553_v32 }
  0x58   :  { %5369 = vst [vmem:[#allocation74_spill] sm:$0xff] %v3564_v36 }
  0x59   :  { %5370 = vst [vmem:[#allocation75_spill] sm:$0xff] %v3567_v62 }
  0x5a   :  { %2411 = vmatmul.msk.f32.gmra.mxu0 %vm643_vm0, %v3544_v40  ;;  %5371 = vst [vmem:[#allocation76_spill] sm:$0xff] %v3570_v47 }
  0x5b   :  { %2415 = vmatmul.msk.f32.gmra.mxu1 %vm643_vm0, %v3547_v50  ;;  %5372 = vst [vmem:[#allocation77_spill] sm:$0xff] %v3573_v1 }
  0x5c   :  { %2419 = vmatmul.msk.f32.gmra.mxu2 %vm643_vm0, %v3550_v56  ;;  %5373 = vst [vmem:[#allocation78_spill] sm:$0xff] %v3584_v39 }
  0x5d   :  { %2423 = vmatmul.msk.f32.gmra.mxu3 %vm643_vm0, %v3553_v32  ;;  %5374 = vst [vmem:[#allocation79_spill] sm:$0xff] %v3587_v31 }
  0x5e   :  { %5375 = vst [vmem:[#allocation80_spill] sm:$0xff] %v3590_v45 }
  0x5f   :  { %5376 = vst [vmem:[#allocation81_spill] sm:$0xff] %v3593_v49 }
  0x62   :  { %2412 = vmatmul.msk.f32.gmra.mxu0 %vm643_vm0, %v3564_v36 }
  0x63   :  { %2416 = vmatmul.msk.f32.gmra.mxu1 %vm643_vm0, %v3567_v62 }
  0x64   :  { %2420 = vmatmul.msk.f32.gmra.mxu2 %vm643_vm0, %v3570_v47 }
  0x65   :  { %2424 = vmatmul.msk.f32.gmra.mxu3 %vm643_vm0, %v3573_v1 }
  0x6a   :  { %2413 = vmatmul.msk.f32.gmra.mxu0 %vm643_vm0, %v3584_v39 }
  0x6b   :  { %2417 = vmatmul.msk.f32.gmra.mxu1 %vm643_vm0, %v3587_v31 }
  0x6c   :  { %2421 = vmatmul.msk.f32.gmra.mxu2 %vm643_vm0, %v3590_v45 }
  0x6d   :  { %2425 = vmatmul.msk.f32.gmra.mxu3 %vm643_vm0, %v3593_v49  ;;  %v3624_v49 = vld [vmem:[%s5202_s8] ss:$0 sm:$0xff] }
  0x6e   :  { %5386 = vst [vmem:[#allocation91_spill] sm:$0xff] %v3624_v49 }
  0x7c   :  { %v3603_v30 = vpop.permute.xlu0 %807 }
  0x7d   :  { %5377 = vst [vmem:[#allocation82_spill] sm:$0xff] %v3603_v30  ;;  %v888_v56 = vadd.f32 %v3624_v49, %v3603_v30 }
  0x82   :  { %v3605_v1 = vpop.permute.xlu2 %827 }
  0x83   :  { %5378 = vst [vmem:[#allocation83_spill] sm:$0xff] %v3605_v1  ;;  %v892_v40 = vadd.f32 %v3624_v49, %v3605_v1 }
  0x84   :  { %v3607_v62 = vpop.permute.xlu0 %812 }
  0x85   :  { %5379 = vst [vmem:[#allocation84_spill] sm:$0xff] %v3607_v62  ;;  %v889_v30 = vadd.f32 %v3624_v49, %v3607_v62 }
  0x8c   :  { %v3609_v32 = vpop.permute.xlu1 %817  ;;  %v3613_v60 = vpop.permute.xlu0 %837 }
  0x8d   :  { %5380 = vst [vmem:[#allocation85_spill] sm:$0xff] %v3609_v32 }
  0x8e   :  { %5382 = vst [vmem:[#allocation87_spill] sm:$0xff] %v3613_v60 }
  0x95   :  { %v3619_v45 = vpop.permute.xlu0 %852 }
  0x96   :  { %v3611_v50 = vpop.permute.xlu2 %832  ;;  %5385 = vst [vmem:[#allocation90_spill] sm:$0xff] %v3619_v45 }
  0x97   :  { %5381 = vst [vmem:[#allocation86_spill] sm:$0xff] %v3611_v50  ;;  %v3615_v34 = vpop.permute.xlu1 %822 }
  0x98   :  { %5383 = vst [vmem:[#allocation88_spill] sm:$0xff] %v3615_v34 }
  0x9d   :  { %v3634_v52 = vpop.permute.xlu0 %867 }
  0x9e   :  { %v3617_v31 = vpop.permute.xlu2 %847  ;;  %5389 = vst [vmem:[#allocation94_spill] sm:$0xff] %v3634_v52 }
  0x9f   :  { %5384 = vst [vmem:[#allocation89_spill] sm:$0xff] %v3617_v31  ;;  %v896_v1 = vadd.f32 %v3624_v49, %v3617_v31 }
  0xa3   :  { %v3626_v39 = vpop.permute.xlu1 %842 }
  0xa4   :  { %5387 = vst [vmem:[#allocation92_spill] sm:$0xff] %v3626_v39 }
  0xa6   :  { %v3632_v3 = vpop.permute.xlu2 %862 }
  0xa7   :  { %5388 = vst [vmem:[#allocation93_spill] sm:$0xff] %v3632_v3 }
  0xae   :  { %v3654_v6 = vpop.permute.xlu2 %877 }
  0xaf   :  { %5391 = vst [vmem:[#allocation96_spill] sm:$0xff] %v3654_v6 }
  0xb3   :  { %v3640_v35 = vpop.permute.xlu1 %857 }
  0xb4   :  { %5390 = vst [vmem:[#allocation95_spill] sm:$0xff] %v3640_v35 }
  0xcf   :  { %v757_v47 = vpop.f32.mrf.mxu0 }
  0xd0   :  { %v769_v36 = vpop.f32.mrf.mxu1  ;;  %v904_v48 = vmul.f32 2.0, %v757_v47 }
  0xd1   :  { %v908_v2 = vmul.f32 2.0, %v769_v36 }
  0xd2   :  { %v920_v20 = vsub.f32 %v888_v56, %v904_v48 }
  0xd3   :  { %v924_v61 = vsub.f32 %v892_v40, %v908_v2  ;;  %v900_v2 = vadd.f32 %v3624_v49, %v3634_v52  ;;  %v3681_v52 = vpop.permute.xlu1 %872 }
  0xd4   :  { %v3636_v38 = vmax.f32 %v920_v20, 0.0  ;;  %5393 = vst [vmem:[#allocation98_spill] sm:$0xff] %v3681_v52 }
  0xd5   :  { %v3638_v4 = vmax.f32 %v924_v61, 0.0 }
  0xd6   :  { %2613 = vrsqrt.f32 %v3636_v38  ;;  %vm959_vm3 = vcmp.eq.f32.partialorder %v3636_v38, inf  ;;  %vm961_vm4 = vcmp.eq.f32.partialorder %v3636_v38, 0.0 }
  0xd7   :  { %v781_v51 = vpop.f32.mrf.mxu2  ;;  %v760_v48 = vpop.f32.mrf.mxu0  ;;  %2615 = vrsqrt.f32 %v3638_v4  ;;  %vm1007_vm5 = vcmp.eq.f32.partialorder %v3638_v4, inf  ;;  %vm1009_vm9 = vcmp.eq.f32.partialorder %v3638_v4, 0.0 }
  0xd8   :  { %v912_v47 = vmul.f32 2.0, %v781_v51  ;;  %v793_v36 = vpop.f32.mrf.mxu3  ;;  %v905_v40 = vmul.f32 2.0, %v760_v48  ;;  %v772_v61 = vpop.f32.mrf.mxu1 }
  0xd9   :  { %v916_v20 = vmul.f32 2.0, %v793_v36  ;;  %v3664_v36 = vpop.permute.xlu0 %882  ;;  %v909_v48 = vmul.f32 2.0, %v772_v61  ;;  %v3679_v61 = vadd.f32 %v3624_v49, %v3615_v34 }
  0xda   :  { %v928_v56 = vsub.f32 %v896_v1, %v912_v47  ;;  %v921_v51 = vsub.f32 %v889_v30, %v905_v40  ;;  %v3660_v1 = vadd.f32 %v3624_v49, %v3613_v60  ;;  %v893_v47 = vadd.f32 %v3624_v49, %v3611_v50  ;;  %5392 = vst [vmem:[#allocation97_spill] sm:$0xff] %v3664_v36 }
  0xdb   :  { %v932_v5 = vsub.f32 %v900_v2, %v916_v20  ;;  %v897_v30 = vadd.f32 %v3624_v49, %v3619_v45  ;;  %v3671_v2 = vadd.f32 %v3624_v49, %v3609_v32  ;;  %v3675_v50 = vadd.f32 %v3624_v49, %v3632_v3 }
  0xdc   :  { %v3650_v44 = vmax.f32 %v928_v56, 0.0  ;;  %v2614_v41 = vpop.eup %2613  ;;  %v3683_v62 = vmax.f32 %v921_v51, 0.0  ;;  %v3696_v34 = vadd.f32 %v3624_v49, %v3664_v36  ;;  %v898_v51 = vadd.f32 %v3624_v49, %v3640_v35 }
  0xdd   :  { %v3652_v31 = vmax.f32 %v932_v5, 0.0  ;;  %v2616_v58 = vpop.eup %2615  ;;  %v953_v63 = vmul.f32 %v2614_v41, %v3636_v38  ;;  %v925_v7 = vsub.f32 %v893_v47, %v909_v48  ;;  %v1010_v35 = vand.u32 2147483648, %v3638_v4 }
  0xde   :  { %2617 = vrsqrt.f32 %v3650_v44  ;;  %v1001_v32 = vmul.f32 %v2616_v58, %v3638_v4  ;;  %vm1055_vm6 = vcmp.eq.f32.partialorder %v3650_v44, inf  ;;  %vm1057_vm10 = vcmp.eq.f32.partialorder %v3650_v44, 0.0 }
  0xdf   :  { %v784_v5 = vpop.f32.mrf.mxu2  ;;  %2619 = vrsqrt.f32 %v3652_v31  ;;  %v763_v56 = vpop.f32.mrf.mxu0  ;;  %v954_v60 = vmul.f32 %v2614_v41, %v953_v63  ;;  %v3692_v63 = vadd.f32 %v3624_v49, %v3626_v39  ;;  %vm1103_vm7 = vcmp.eq.f32.partialorder %v3652_v31, inf }
  0xe0   :  { %v913_v20 = vmul.f32 2.0, %v784_v5  ;;  %v796_v40 = vpop.f32.mrf.mxu3  ;;  %v775_v45 = vpop.f32.mrf.mxu1  ;;  %v3688_v5 = vadd.f32 %v3624_v49, %v3654_v6  ;;  %v1002_v55 = vmul.f32 %v2616_v58, %v1001_v32  ;;  %v3702_v6 = vadd.f32 %v3624_v49, %v3681_v52 }
  0xe1   :  { %v955_v18 = vmul.f32 0.5, %v954_v60  ;;  %2621 = vrsqrt.f32 %v3683_v62  ;;  %v962_v32 = vand.u32 2147483648, %v3636_v38  ;;  %vm1105_vm8 = vcmp.eq.f32.partialorder %v3652_v31, 0.0 }
  0xe2   :  { %v929_v3 = vsub.f32 %v897_v30, %v913_v20  ;;  %v1003_v20 = vmul.f32 0.5, %v1002_v55  ;;  %vm971_vm11 = vcmp.eq.f32.partialorder %v3683_v62, inf  ;;  %vm973_vm14 = vcmp.eq.f32.partialorder %v3683_v62, 0.0 }
  0xe3   :  { %v956_v39 = vsub.f32 1.5, %v955_v18 }
  0xe4   :  { %v2618_v43 = vpop.eup %2617  ;;  %v3704_v57 = vmax.f32 %v929_v3, 0.0  ;;  %v3713_v3 = vmax.f32 %v925_v7, 0.0  ;;  %v1004_v52 = vsub.f32 1.5, %v1003_v20  ;;  %v1106_v7 = vand.u32 2147483648, %v3652_v31 }
  0xe5   :  { %v2620_v60 = vpop.eup %2619  ;;  %v1049_v30 = vmul.f32 %v2618_v43, %v3650_v44  ;;  %v957_v47 = vmul.f32 %v2614_v41, %v956_v39  ;;  %v906_v39 = vmul.f32 2.0, %v763_v56 }
  0xe6   :  { %v1097_v48 = vmul.f32 %v2620_v60, %v3652_v31  ;;  %2623 = vrsqrt.f32 %v3704_v57  ;;  %vm1067_vm12 = vcmp.eq.f32.partialorder %v3704_v57, inf  ;;  %vm1069_vm13 = vcmp.eq.f32.partialorder %v3704_v57, 0.0 }
  0xe7   :  { %v787_v18 = vpop.f32.mrf.mxu2  ;;  %v1050_v36 = vmul.f32 %v2618_v43, %v1049_v30  ;;  %v958_v8 = vmul.f32 %v957_v47, %v3636_v38  ;;  %v1005_v30 = vmul.f32 %v2616_v58, %v1004_v52  ;;  %v766_v9 = vpop.f32.mrf.mxu0  ;;  %v917_v47 = vmul.f32 2.0, %v796_v40 }
  0xe8   :  { %v914_v49 = vmul.f32 2.0, %v787_v18  ;;  %v799_v55 = vpop.f32.mrf.mxu3  ;;  %v1098_v41 = vmul.f32 %v2620_v60, %v1097_v48  ;;  %v778_v37 = vpop.f32.mrf.mxu1  ;;  %v910_v58 = vmul.f32 2.0, %v775_v45  ;;  %vm1019_vm2 = vcmp.eq.f32.partialorder %v3713_v3, inf }
  0xe9   :  { %v1051_v53 = vmul.f32 0.5, %v1050_v36  ;;  %v911_v29 = vmul.f32 2.0, %v778_v37  ;;  %v960_v18 = vsel %vm959_vm3, %v3636_v38, %v958_v8  ;;  %v2622_v56 = vpop.eup %2621  ;;  %v1006_v8 = vmul.f32 %v1005_v30, %v3638_v4 }
  0xea   :  { %v930_v20 = vsub.f32 %v898_v51, %v914_v49  ;;  %v1099_v28 = vmul.f32 0.5, %v1098_v41  ;;  %v963_v48 = vsel %vm961_vm4, %v962_v32, %v960_v18  ;;  %v922_v36 = vsub.f32 %v3671_v2, %v906_v39 }
  0xeb   :  { %v1052_v42 = vsub.f32 1.5, %v1051_v53  ;;  %1144 = vadd.xlane.f32.xlu1 %v963_v48  ;;  %v907_v51 = vmul.f32 2.0, %v766_v9  ;;  %v927_v38 = vsub.f32 %v3692_v63, %v911_v29  ;;  %v1058_v53 = vand.u32 2147483648, %v3650_v44 }
  0xec   :  { %v2624_v52 = vpop.eup %2623  ;;  %v3729_v37 = vmax.f32 %v930_v20, 0.0  ;;  %v1100_v49 = vsub.f32 1.5, %v1099_v28  ;;  %v965_v18 = vmul.f32 %v2622_v56, %v3683_v62  ;;  %v933_v45 = vsub.f32 %v3702_v6, %v917_v47 }
  0xed   :  { %v1053_v41 = vmul.f32 %v2618_v43, %v1052_v42  ;;  %v1061_v40 = vmul.f32 %v2624_v52, %v3704_v57  ;;  %v926_v2 = vsub.f32 %v3660_v1, %v910_v58  ;;  %v1008_v29 = vsel %vm1007_vm5, %v3638_v4, %v1006_v8 }
  0xee   :  { %v1101_v32 = vmul.f32 %v2620_v60, %v1100_v49  ;;  %2625 = vrsqrt.f32 %v3729_v37  ;;  %v966_v42 = vmul.f32 %v2622_v56, %v965_v18  ;;  %v3745_v63 = vmax.f32 %v922_v36, 0.0 }
  0xef   :  { %v1054_v20 = vmul.f32 %v1053_v41, %v3650_v44  ;;  %v1062_v28 = vmul.f32 %v2624_v52, %v1061_v40  ;;  %v923_v60 = vsub.f32 %v3679_v61, %v907_v51  ;;  %v3752_v1 = vmax.f32 %v927_v38, 0.0  ;;  %v790_v30 = vpop.f32.mrf.mxu2 }
  0xf0   :  { %v802_v9 = vpop.f32.mrf.mxu3  ;;  %v1102_v43 = vmul.f32 %v1101_v32, %v3652_v31  ;;  %v967_v58 = vmul.f32 0.5, %v966_v42  ;;  %v1011_v8 = vsel %vm1009_vm9, %v1010_v35, %v1008_v29  ;;  %v918_v51 = vmul.f32 2.0, %v799_v55 }
  0xf1   :  { %v1056_v6 = vsel %vm1055_vm6, %v3650_v44, %v1054_v20  ;;  %v1063_v39 = vmul.f32 0.5, %v1062_v28  ;;  %v919_v49 = vmul.f32 2.0, %v802_v9  ;;  %v974_v40 = vand.u32 2147483648, %v3683_v62 }
  0xf2   :  { %v1104_v47 = vsel %vm1103_vm7, %v3652_v31, %v1102_v43  ;;  %v1059_v48 = vsel %vm1057_vm10, %v1058_v53, %v1056_v6  ;;  %v968_v41 = vsub.f32 1.5, %v967_v58  ;;  %2627 = vrsqrt.f32 %v3713_v3 }
  0xf3   :  { %v1107_v61 = vsel %vm1105_vm8, %v1106_v7, %v1104_v47  ;;  %1160 = vadd.xlane.f32.xlu2 %v1059_v48  ;;  %v1064_v36 = vsub.f32 1.5, %v1063_v39  ;;  %1152 = vadd.xlane.f32.xlu1 %v1011_v8  ;;  %v3765_v38 = vmax.f32 %v933_v45, 0.0  ;;  %v3767_v32 = vmax.f32 %v926_v2, 0.0 }
  0xf4   :  { %1168 = vadd.xlane.f32.xlu0 %v1107_v61  ;;  %v2626_v44 = vpop.eup %2625  ;;  %v915_v31 = vmul.f32 2.0, %v790_v30  ;;  %v969_v4 = vmul.f32 %v2622_v56, %v968_v41  ;;  %2629 = vrsqrt.f32 %v3745_v63  ;;  %v3772_v55 = vmax.f32 %v923_v60, 0.0 }
  0xf5   :  { %v1065_v7 = vmul.f32 %v2624_v52, %v1064_v36  ;;  %v1073_v35 = vmul.f32 %v2626_v44, %v3729_v37  ;;  %v935_v53 = vsub.f32 %v3696_v34, %v919_v49  ;;  %2631 = vrsqrt.f32 %v3752_v1 }
  0xf6   :  { %v934_v45 = vsub.f32 %v3688_v5, %v918_v51  ;;  %v1070_v20 = vand.u32 2147483648, %v3704_v57  ;;  %v970_v52 = vmul.f32 %v969_v4, %v3683_v62  ;;  %v931_v56 = vsub.f32 %v3675_v50, %v915_v31 }
  0xf7   :  { %v1066_v18 = vmul.f32 %v1065_v7, %v3704_v57  ;;  %v1074_v28 = vmul.f32 %v2626_v44, %v1073_v35  ;;  %2633 = vrsqrt.f32 %v3767_v32  ;;  %v3788_v29 = vmax.f32 %v935_v53, 0.0 }
  0xf8   :  { %v2628_v34 = vpop.eup %2627  ;;  %v972_v43 = vsel %vm971_vm11, %v3683_v62, %v970_v52  ;;  %2635 = vrsqrt.f32 %v3772_v55  ;;  %vm1079_vm15 = vcmp.eq.f32.partialorder %v3729_v37, inf  ;;  %vm1081_vm1 = vcmp.eq.f32.partialorder %v3729_v37, 0.0 }
  0xf9   :  { %v1068_v2 = vsel %vm1067_vm12, %v3704_v57, %v1066_v18  ;;  %v1075_v5 = vmul.f32 0.5, %v1074_v28  ;;  %v975_v42 = vsel %vm973_vm14, %v974_v40, %v972_v43  ;;  %v1013_v50 = vmul.f32 %v2628_v34, %v3713_v3 }
  0xfa   :  { %v1071_v9 = vsel %vm1069_vm13, %v1070_v20, %v1068_v2  ;;  %v2630_v60 = vpop.eup %2629  ;;  %v3792_v57 = vmax.f32 %v934_v45, 0.0  ;;  %v3796_v62 = vmax.f32 %v931_v56, 0.0  ;;  %2637 = vrsqrt.f32 %v3765_v38 }
  0xfb   :  { %1146 = vadd.xlane.f32.xlu2 %v975_v42  ;;  %v1076_v6 = vsub.f32 1.5, %v1075_v5  ;;  %v2632_v39 = vpop.eup %2631  ;;  %v1014_v30 = vmul.f32 %v2628_v34, %v1013_v50  ;;  %v977_v47 = vmul.f32 %v2630_v60, %v3745_v63  ;;  %v1082_v58 = vand.u32 2147483648, %v3729_v37 }
  0xfc   :  { %1162 = vadd.xlane.f32.xlu0 %v1071_v9  ;;  %v1037_v49 = vmul.f32 %v2632_v39, %v3752_v1  ;;  %vm1021_vm3 = vcmp.eq.f32.partialorder %v3713_v3, 0.0  ;;  %v1022_v36 = vand.u32 2147483648, %v3713_v3  ;;  %2639 = vrsqrt.f32 %v3788_v29 }
  0xfd   :  { %v1077_v48 = vmul.f32 %v2626_v44, %v1076_v6  ;;  %v2634_v61 = vpop.eup %2633  ;;  %v1015_v8 = vmul.f32 0.5, %v1014_v30  ;;  %v978_v51 = vmul.f32 %v2630_v60, %v977_v47  ;;  %vm983_vm4 = vcmp.eq.f32.partialorder %v3745_v63, inf }
  0xfe   :  { %v1038_v40 = vmul.f32 %v2632_v39, %v1037_v49  ;;  %v1025_v44 = vmul.f32 %v2634_v61, %v3767_v32  ;;  %v2636_v31 = vpop.eup %2635  ;;  %vm985_vm5 = vcmp.eq.f32.partialorder %v3745_v63, 0.0  ;;  %v986_v35 = vand.u32 2147483648, %v3745_v63 }
  0xff   :  { %v1078_v41 = vmul.f32 %v1077_v48, %v3729_v37  ;;  %v1016_v7 = vsub.f32 1.5, %v1015_v8  ;;  %v979_v4 = vmul.f32 0.5, %v978_v51  ;;  %2641 = vrsqrt.f32 %v3796_v62 }
 0x100   :  { %v1039_v18 = vmul.f32 0.5, %v1038_v40  ;;  %v1026_v45 = vmul.f32 %v2634_v61, %v1025_v44  ;;  %v989_v20 = vmul.f32 %v2636_v31, %v3772_v55  ;;  %v2638_v52 = vpop.eup %2637  ;;  %vm1043_vm6 = vcmp.eq.f32.partialorder %v3752_v1, inf }
 0x101   :  { %v1080_v53 = vsel %vm1079_vm15, %v3729_v37, %v1078_v41  ;;  %v1017_v56 = vmul.f32 %v2628_v34, %v1016_v7  ;;  %v980_v2 = vsub.f32 1.5, %v979_v4  ;;  %v1109_v42 = vmul.f32 %v2638_v52, %v3765_v38 }
 0x102   :  { %v1083_v28 = vsel %vm1081_vm1, %v1082_v58, %v1080_v53  ;;  %v1040_v9 = vsub.f32 1.5, %v1039_v18  ;;  %v1027_v43 = vmul.f32 0.5, %v1026_v45  ;;  %v990_v5 = vmul.f32 %v2636_v31, %v989_v20  ;;  %v2640_v50 = vpop.eup %2639 }
 0x103   :  { %1164 = vadd.xlane.f32.xlu1 %v1083_v28  ;;  %v1018_v6 = vmul.f32 %v1017_v56, %v3713_v3  ;;  %v981_v30 = vmul.f32 %v2630_v60, %v980_v2  ;;  %vm1045_vm7 = vcmp.eq.f32.partialorder %v3752_v1, 0.0  ;;  %v1046_v47 = vand.u32 2147483648, %v3752_v1 }
 0x104   :  { %v1041_v37 = vmul.f32 %v2632_v39, %v1040_v9  ;;  %v1028_v48 = vsub.f32 1.5, %v1027_v43  ;;  %v991_v34 = vmul.f32 0.5, %v990_v5  ;;  %v1110_v58 = vmul.f32 %v2638_v52, %v1109_v42 }
 0x105   :  { %v2642_v49 = vpop.eup %2641  ;;  %v1020_v8 = vsel %vm1019_vm2, %v3713_v3, %v1018_v6  ;;  %v982_v51 = vmul.f32 %v981_v30, %v3745_v63  ;;  %v1133_v41 = vmul.f32 %v2640_v50, %v3788_v29  ;;  %2643 = vrsqrt.f32 %v3792_v57 }
 0x106   :  { %v1023_v60 = vsel %vm1021_vm3, %v1022_v36, %v1020_v8  ;;  %v1042_v40 = vmul.f32 %v1041_v37, %v3752_v1  ;;  %v1029_v39 = vmul.f32 %v2634_v61, %v1028_v48  ;;  %v992_v44 = vsub.f32 1.5, %v991_v34 }
 0x107   :  { %1154 = vadd.xlane.f32.xlu2 %v1023_v60  ;;  %v984_v7 = vsel %vm983_vm4, %v3745_v63, %v982_v51  ;;  %v1111_v4 = vmul.f32 0.5, %v1110_v58  ;;  %v1134_v53 = vmul.f32 %v2640_v50, %v1133_v41  ;;  %v1085_v18 = vmul.f32 %v2642_v49, %v3796_v62 }
 0x108   :  { %v987_v45 = vsel %vm985_vm5, %v986_v35, %v984_v7  ;;  %v1044_v3 = vsel %vm1043_vm6, %v3752_v1, %v1042_v40  ;;  %v1030_v36 = vmul.f32 %v1029_v39, %v3767_v32  ;;  %v993_v61 = vmul.f32 %v2636_v31, %v992_v44 }
 0x109   :  { %1148 = vadd.xlane.f32.xlu0 %v987_v45  ;;  %v1047_v20 = vsel %vm1045_vm7, %v1046_v47, %v1044_v3  ;;  %v1112_v28 = vsub.f32 1.5, %v1111_v4  ;;  %v1135_v56 = vmul.f32 0.5, %v1134_v53  ;;  %v1086_v2 = vmul.f32 %v2642_v49, %v1085_v18 }
 0x10a   :  { %vm1031_vm8 = vcmp.eq.f32.partialorder %v3767_v32, inf  ;;  %v1034_v63 = vand.u32 2147483648, %v3767_v32  ;;  %v994_v35 = vmul.f32 %v993_v61, %v3772_v55  ;;  %vm995_vm9 = vcmp.eq.f32.partialorder %v3772_v55, inf }
 0x10b   :  { %1158 = vadd.xlane.f32.xlu1 %v1047_v20  ;;  %v2644_v9 = vpop.eup %2643  ;;  %vm997_vm10 = vcmp.eq.f32.partialorder %v3772_v55, 0.0  ;;  %v1113_v31 = vmul.f32 %v2638_v52, %v1112_v28  ;;  %v1136_v43 = vsub.f32 1.5, %v1135_v56  ;;  %v1087_v5 = vmul.f32 0.5, %v1086_v2  ;;  %v3914_v2 = vld [vmem:[%s2916_s30 + $0x60] sm:$0xff] }
 0x10c   :  { %v996_v1 = vsel %vm995_vm9, %v3772_v55, %v994_v35  ;;  %v998_v42 = vand.u32 2147483648, %v3772_v55  ;;  %v1121_v6 = vmul.f32 %v2644_v9, %v3792_v57  ;;  %vm138_vm11 = vcmask 7168  }
 0x10d   :  { %v1032_v30 = vsel %vm1031_vm8, %v3767_v32, %v1030_v36  ;;  %v1114_v47 = vmul.f32 %v1113_v31, %v3765_v38  ;;  %v1137_v52 = vmul.f32 %v2640_v50, %v1136_v43  ;;  %v1088_v37 = vsub.f32 1.5, %v1087_v5  ;;  %v2677_v36 = vld [vmem:[%s2916_s30] sm:$0xff] }
 0x10e   :  { %v999_v48 = vsel %vm997_vm10, %v998_v42, %v996_v1  ;;  %vm1115_vm12 = vcmp.eq.f32.partialorder %v3765_v38, inf  ;;  %v1122_v34 = vmul.f32 %v2644_v9, %v1121_v6  ;;  %vm1033_vm13 = vcmp.eq.f32.partialorder %v3767_v32, 0.0  ;;  %v3920_v5 = vld [vmem:[%s2916_s30 + $0x20] sm:$0xff]  ;;  %v3924_v1 = vld [vmem:[%s2916_s30 + $0x48] sm:$0xff] }
 0x10f   :  { %1150 = vadd.xlane.f32.xlu2 %v999_v48  ;;  %v1116_v55 = vsel %vm1115_vm12, %v3765_v38, %v1114_v47  ;;  %v1118_v58 = vand.u32 2147483648, %v3765_v38  ;;  %v1089_v8 = vmul.f32 %v2642_v49, %v1088_v37  ;;  %v2761_v51 = vmov 0.0  }
 0x110   :  { %139 = vst.msk [vmem:[%s3853_s23] sm:$0xff] %vm138_vm11, %v2761_v51  ;;  %v1035_v50 = vsel %vm1033_vm13, %v1034_v63, %v1032_v30  ;;  %vm1117_vm14 = vcmp.eq.f32.partialorder %v3765_v38, 0.0  ;;  %v1123_v41 = vmul.f32 0.5, %v1122_v34  ;;  %v1138_v60 = vmul.f32 %v1137_v52, %v3788_v29 }
 0x111   :  { %140 = vst.msk [vmem:[%s3853_s23 + $0x8] sm:$0xff] %vm138_vm11, %v2761_v51  ;;  %1156 = vadd.xlane.f32.xlu0 %v1035_v50  ;;  %v1119_v32 = vsel %vm1117_vm14, %v1118_v58, %v1116_v55  ;;  %v1090_v40 = vmul.f32 %v1089_v8, %v3796_v62  ;;  %vm1091_vm15 = vcmp.eq.f32.partialorder %v3796_v62, inf  ;;  %vm1139_vm1 = vcmp.eq.f32.partialorder %v3788_v29, inf }
 0x112   :  { %141 = vst.msk [vmem:[%s3853_s23 + $0x10] sm:$0xff] %vm138_vm11, %v2761_v51  ;;  %v1124_v49 = vsub.f32 1.5, %v1123_v41  ;;  %v1094_v39 = vand.u32 2147483648, %v3796_v62  ;;  %v1140_v7 = vsel %vm1139_vm1, %v3788_v29, %v1138_v60  ;;  %vm1093_vm2 = vcmp.eq.f32.partialorder %v3796_v62, 0.0 }
 0x113   :  { %1170 = vadd.xlane.f32.xlu1 %v1119_v32  ;;  %142 = vst.msk [vmem:[%s3853_s23 + $0x18] sm:$0xff] %vm138_vm11, %v2761_v51  ;;  %v1092_v38 = vsel %vm1091_vm15, %v3796_v62, %v1090_v40  ;;  %v1142_v4 = vand.u32 2147483648, %v3788_v29  ;;  %vm1141_vm3 = vcmp.eq.f32.partialorder %v3788_v29, 0.0  ;;  %vm1127_vm4 = vcmp.eq.f32.partialorder %v3792_v57, inf }
 0x114   :  { %143 = vst.msk [vmem:[%s3853_s23 + $0x20] sm:$0xff] %vm138_vm11, %v2761_v51  ;;  %v1125_v44 = vmul.f32 %v2644_v9, %v1124_v49  ;;  %v1095_v53 = vsel %vm1093_vm2, %v1094_v39, %v1092_v38  ;;  %v1130_v45 = vand.u32 2147483648, %v3792_v57  ;;  %vm1129_vm5 = vcmp.eq.f32.partialorder %v3792_v57, 0.0 }
 0x115   :  { %144 = vst.msk [vmem:[%s3853_s23 + $0x28] sm:$0xff] %vm138_vm11, %v2761_v51  ;;  %v1143_v62 = vsel %vm1141_vm3, %v1142_v4, %v1140_v7  ;;  %2645 = vrsqrt.f32 %v2677_v36  ;;  %vm266_vm6 = vcmp.eq.f32.partialorder %v2677_v36, inf  ;;  %v269_v6 = vand.u32 2147483648, %v2677_v36 }
 0x116   :  { %145 = vst.msk [vmem:[%s3853_s23 + $0x30] sm:$0xff] %vm138_vm11, %v2761_v51  ;;  %v1126_v18 = vmul.f32 %v1125_v44, %v3792_v57  ;;  %2647 = vrsqrt.f32 %v3914_v2  ;;  %vm268_vm7 = vcmp.eq.f32.partialorder %v2677_v36, 0.0  ;;  %vm410_vm8 = vcmp.eq.f32.partialorder %v3914_v2, inf }
 0x117   :  { %146 = vst.msk [vmem:[%s3853_s23 + $0x38] sm:$0xff] %vm138_vm11, %v2761_v51  ;;  %1166 = vadd.xlane.f32.xlu2 %v1095_v53  ;;  %2649 = vrsqrt.f32 %v3391_v0  ;;  %vm412_vm9 = vcmp.eq.f32.partialorder %v3914_v2, 0.0  ;;  %v413_v39 = vand.u32 2147483648, %v3914_v2  ;;  %vm362_vm10 = vcmp.eq.f32.partialorder %v3391_v0, inf }
 0x118   :  { %147 = vst.msk [vmem:[%s3853_s23 + $0x40] sm:$0xff] %vm138_vm11, %v2761_v51  ;;  %v1128_v29 = vsel %vm1127_vm4, %v3792_v57, %v1126_v18  ;;  %2651 = vrsqrt.f32 %v3920_v5  ;;  %vm364_vm12 = vcmp.eq.f32.partialorder %v3391_v0, 0.0  ;;  %v365_v18 = vand.u32 2147483648, %v3391_v0 }
 0x119   :  { %148 = vst.msk [vmem:[%s3853_s23 + $0x48] sm:$0xff] %vm138_vm11, %v2761_v51  ;;  %1174 = vadd.xlane.f32.xlu0 %v1143_v62  ;;  %v1131_v3 = vsel %vm1129_vm5, %v1130_v45, %v1128_v29  ;;  %2653 = vrsqrt.f32 %v3924_v1  ;;  %vm314_vm13 = vcmp.eq.f32.partialorder %v3920_v5, inf  ;;  %vm316_vm14 = vcmp.eq.f32.partialorder %v3920_v5, 0.0 }
 0x11a   :  { %149 = vst.msk [vmem:[%s3853_s23 + $0x50] sm:$0xff] %vm138_vm11, %v2761_v51  ;;  %vm374_vm15 = vcmp.eq.f32.partialorder %v3924_v1, inf  ;;  %vm376_vm1 = vcmp.eq.f32.partialorder %v3924_v1, 0.0 }
 0x11b   :  { %150 = vst.msk [vmem:[%s3853_s23 + $0x58] sm:$0xff] %vm138_vm11, %v2761_v51  ;;  %v2646_v61 = vpop.eup %2645 }
 0x11c   :  { %151 = vst.msk [vmem:[%s3853_s23 + $0x60] sm:$0xff] %vm138_vm11, %v2761_v51  ;;  %v260_v20 = vmul.f32 %v2677_v36, %v2646_v61  ;;  %v2648_v35 = vpop.eup %2647 }
 0x11d   :  { %152 = vst.msk [vmem:[%s3853_s23 + $0x68] sm:$0xff] %vm138_vm11, %v2761_v51  ;;  %v404_v9 = vmul.f32 %v3914_v2, %v2648_v35  ;;  %v2650_v52 = vpop.eup %2649 }
 0x11e   :  { %153 = vst.msk [vmem:[%s3853_s23 + $0x70] sm:$0xff] %vm138_vm11, %v2761_v51  ;;  %v261_v28 = vmul.f32 %v2646_v61, %v260_v20  ;;  %v2652_v37 = vpop.eup %2651  ;;  %v356_v34 = vmul.f32 %v2650_v52, %v3391_v0 }
 0x11f   :  { %154 = vst.msk [vmem:[%s3853_s23 + $0x78] sm:$0xff] %vm138_vm11, %v2761_v51  ;;  %1172 = vadd.xlane.f32.xlu2 %v1131_v3  ;;  %v405_v43 = vmul.f32 %v2648_v35, %v404_v9  ;;  %v2654_v55 = vpop.eup %2653  ;;  %v308_v8 = vmul.f32 %v3920_v5, %v2652_v37  ;;  %v3932_v51 = vld [vmem:[%s2916_s30 + $0x8] sm:$0xff] }
 0x120   :  { %v262_v56 = vmul.f32 0.5, %v261_v28  ;;  %2655 = vrsqrt.f32 %v3932_v51  ;;  %v357_v50 = vmul.f32 %v2650_v52, %v356_v34  ;;  %v368_v41 = vmul.f32 %v3924_v1, %v2654_v55 }
 0x121   :  { %v406_v42 = vmul.f32 0.5, %v405_v43  ;;  %v309_v32 = vmul.f32 %v2652_v37, %v308_v8  ;;  %2657 = vrsqrt.f32 %v3400_v46  ;;  %v317_v28 = vand.u32 2147483648, %v3920_v5 }
 0x122   :  { %v263_v63 = vsub.f32 1.5, %v262_v56  ;;  %v358_v49 = vmul.f32 0.5, %v357_v50  ;;  %v369_v38 = vmul.f32 %v2654_v55, %v368_v41  ;;  %v3952_v56 = vld [vmem:[%s2916_s30 + $0x28] sm:$0xff]  ;;  %vm278_vm2 = vcmp.eq.f32.partialorder %v3932_v51, inf }
 0x123   :  { %v407_v47 = vsub.f32 1.5, %v406_v42  ;;  %v310_v44 = vmul.f32 0.5, %v309_v32  ;;  %2659 = vrsqrt.f32 %v3952_v56  ;;  %v377_v32 = vand.u32 2147483648, %v3924_v1 }
 0x124   :  { %v264_v57 = vmul.f32 %v2646_v61, %v263_v63  ;;  %v359_v7 = vsub.f32 1.5, %v358_v49  ;;  %v370_v4 = vmul.f32 0.5, %v369_v38  ;;  %vm280_vm3 = vcmp.eq.f32.partialorder %v3932_v51, 0.0 }
 0x125   :  { %v408_v48 = vmul.f32 %v2648_v35, %v407_v47  ;;  %v311_v62 = vsub.f32 1.5, %v310_v44  ;;  %v3963_v47 = vld [vmem:[%s2916_s30 + $0x10] sm:$0xff] }
 0x126   :  { %v265_v31 = vmul.f32 %v2677_v36, %v264_v57  ;;  %v2656_v53 = vpop.eup %2655  ;;  %v360_v45 = vmul.f32 %v2650_v52, %v359_v7  ;;  %v371_v3 = vsub.f32 1.5, %v370_v4  ;;  %v2683_v57 = vld [vmem:[%s2916_s30 + $0x40] sm:$0xff]  ;;  %2661 = vrsqrt.f32 %v3963_v47 }
 0x127   :  { %v409_v40 = vmul.f32 %v3914_v2, %v408_v48  ;;  %v2658_v61 = vpop.eup %2657  ;;  %v312_v20 = vmul.f32 %v2652_v37, %v311_v62  ;;  %v1209_v52 = vld [vmem:[%s3853_s23] sm:$0xff]  ;;  %v281_v62 = vand.u32 2147483648, %v3932_v51 }
 0x128   :  { %v267_v30 = vsel %vm266_vm6, %v2677_v36, %v265_v31  ;;  %v272_v36 = vmul.f32 %v3932_v51, %v2656_v53  ;;  %v361_v35 = vmul.f32 %v2683_v57, %v360_v45  ;;  %v372_v9 = vmul.f32 %v2654_v55, %v371_v3  ;;  %v3996_v45 = vld [vmem:[%s2916_s30 + $0x38] sm:$0xff] }
 0x129   :  { %v3928_v58 = vsel %vm268_vm7, %v269_v6, %v267_v30  ;;  %v411_v29 = vsel %vm410_vm8, %v3914_v2, %v409_v40  ;;  %v380_v43 = vmul.f32 %v2658_v61, %v3400_v46  ;;  %v313_v30 = vmul.f32 %v3920_v5, %v312_v20  ;;  %v2660_v0 = vpop.eup %2659 }
 0x12a   :  { %5394 = vst [vmem:[#allocation99_spill] sm:$0xff] %v3928_v58  ;;  %v1177_v60 = vmul.f32 120.0, %v3928_v58  ;;  %v273_v31 = vmul.f32 %v2656_v53, %v272_v36  ;;  %v3959_v6 = vsel %vm412_vm9, %v413_v39, %v411_v29  ;;  %v363_v37 = vsel %vm362_vm10, %v2683_v57, %v361_v35  ;;  %v1217_v35 = vld [vmem:[%s3853_s23 + $0x40] sm:$0xff] }
 0x12b   :  { %5395 = vst [vmem:[#allocation100_spill] sm:$0xff] %v3959_v6  ;;  %v373_v48 = vmul.f32 %v3924_v1, %v372_v9  ;;  %v381_v55 = vmul.f32 %v2658_v61, %v380_v43  ;;  %v3972_v2 = vsel %vm364_vm12, %v365_v18, %v363_v37  ;;  %v315_v8 = vsel %vm314_vm13, %v3920_v5, %v313_v30 }
 0x12c   :  { %v274_v34 = vmul.f32 0.5, %v273_v31  ;;  %5396 = vst [vmem:[#allocation101_spill] sm:$0xff] %v3972_v2  ;;  %v1185_v50 = vmul.f32 120.0, %v3972_v2  ;;  %v3981_v41 = vsel %vm316_vm14, %v317_v28, %v315_v8  ;;  %v1189_v49 = vmul.f32 120.0, %v3959_v6  ;;  %v2662_v4 = vpop.eup %2661 }
 0x12d   :  { %5397 = vst [vmem:[#allocation102_spill] sm:$0xff] %v3981_v41  ;;  %v1181_v38 = vmul.f32 120.0, %v3981_v41  ;;  %v382_v39 = vmul.f32 0.5, %v381_v55  ;;  %v375_v44 = vsel %vm374_vm15, %v3924_v1, %v373_v48  ;;  %v320_v5 = vmul.f32 %v3952_v56, %v2660_v0  ;;  %v2686_v1 = vld [vmem:[%s2916_s30 + $0x50] sm:$0xff] }
 0x12e   :  { %2663 = vrsqrt.f32 %v3996_v45  ;;  %v4004_v31 = vsel %vm376_vm1, %v377_v32, %v375_v44  ;;  %vm386_vm4 = vcmp.eq.f32.partialorder %v2686_v1, inf  ;;  %vm388_vm5 = vcmp.eq.f32.partialorder %v2686_v1, 0.0 }
 0x12f   :  { %v383_v29 = vsub.f32 1.5, %v382_v39  ;;  %v321_v28 = vmul.f32 %v2660_v0, %v320_v5  ;;  %5398 = vst [vmem:[#allocation103_spill] sm:$0xff] %v4004_v31  ;;  %v1186_v39 = vmul.f32 120.0, %v4004_v31  ;;  %vm326_vm6 = vcmp.eq.f32.partialorder %v3952_v56, inf }
 0x130   :  { %vm328_vm7 = vcmp.eq.f32.partialorder %v3952_v56, 0.0  ;;  %vm290_vm8 = vcmp.eq.f32.partialorder %v3963_v47, inf  ;;  %vm292_vm9 = vcmp.eq.f32.partialorder %v3963_v47, 0.0  ;;  %vm350_vm10 = vcmp.eq.f32.partialorder %v3996_v45, inf }
 0x131   :  { %v384_v43 = vmul.f32 %v2658_v61, %v383_v29  ;;  %v322_v48 = vmul.f32 0.5, %v321_v28  ;;  %v4024_v29 = vld [vmem:[%s2916_s30 + $0x30] sm:$0xff]  ;;  %vm352_vm12 = vcmp.eq.f32.partialorder %v3996_v45, 0.0 }
 0x132   :  { %2665 = vrsqrt.f32 %v4024_v29  ;;  %vm338_vm13 = vcmp.eq.f32.partialorder %v4024_v29, inf  ;;  %vm340_vm14 = vcmp.eq.f32.partialorder %v4024_v29, 0.0 }
 0x133   :  { %v323_v32 = vsub.f32 1.5, %v322_v48 }
 0x15e   :  { %v1145_v63 = vpop.xlane.xlu1 %1144 }
 0x15f   :  { %v1193_v42 = vsub.f32 %v1145_v63, %v1177_v60  ;;  %v275_v60 = vsub.f32 1.5, %v274_v34  ;;  %v284_v63 = vmul.f32 %v3963_v47, %v2662_v4 }
 0x161   :  { %v1225_v46 = vmul.f32 -2.0, %v1193_v42  ;;  %v276_v7 = vmul.f32 %v2656_v53, %v275_v60  ;;  %v1221_v42 = vld [vmem:[%s3853_s23 + $0x60] sm:$0xff]  ;;  %v285_v34 = vmul.f32 %v2662_v4, %v284_v63 }
 0x163   :  { %v1241_v40 = vadd.f32 %v1225_v46, %v1209_v52  ;;  %v277_v20 = vmul.f32 %v3932_v51, %v276_v7  ;;  %v1213_v52 = vld [vmem:[%s3853_s23 + $0x20] sm:$0xff]  ;;  %v286_v60 = vmul.f32 0.5, %v285_v34  ;;  %v324_v7 = vmul.f32 %v2660_v0, %v323_v32  ;;  %v4052_v32 = vld [vmem:[%s2916_s30 + $0x68] sm:$0xff] }
 0x164   :  { %v293_v34 = vand.u32 2147483648, %v3963_v47 }
 0x165   :  { %1258 = vst.msk [vmem:[%s3853_s23] sm:$0xff] %vm138_vm11, %v1241_v40  ;;  %v279_v37 = vsel %vm278_vm2, %v3932_v51, %v277_v20  ;;  %v2664_v40 = vpop.eup %2663  ;;  %v389_v51 = vand.u32 2147483648, %v2686_v1  ;;  %v287_v5 = vsub.f32 1.5, %v286_v60  ;;  %v325_v0 = vmul.f32 %v3952_v56, %v324_v7  ;;  %v4067_v7 = vld [vmem:[%s2916_s30 + $0x78] sm:$0xff] }
 0x166   :  { %v1161_v18 = vpop.xlane.xlu2 %1160  ;;  %v1153_v36 = vpop.xlane.xlu1 %1152  ;;  %v4013_v8 = vsel %vm280_vm3, %v281_v62, %v279_v37  ;;  %vm422_vm2 = vcmp.eq.f32.partialorder %v4052_v32, inf  ;;  %vm424_vm3 = vcmp.eq.f32.partialorder %v4052_v32, 0.0 }
 0x167   :  { %v1169_v53 = vpop.xlane.xlu0 %1168  ;;  %v1201_v3 = vsub.f32 %v1161_v18, %v1185_v50  ;;  %v1197_v9 = vsub.f32 %v1153_v36, %v1181_v38  ;;  %5399 = vst [vmem:[#allocation104_spill] sm:$0xff] %v4013_v8  ;;  %v385_v50 = vmul.f32 %v2686_v1, %v384_v43  ;;  %v1178_v44 = vmul.f32 120.0, %v4013_v8 }
 0x168   :  { %v1205_v57 = vsub.f32 %v1169_v53, %v1189_v49  ;;  %v344_v18 = vmul.f32 %v3996_v45, %v2664_v40  ;;  %v288_v36 = vmul.f32 %v2662_v4, %v287_v5  ;;  %v327_v48 = vsel %vm326_vm6, %v3952_v56, %v325_v0  ;;  %v4081_v0 = vld [vmem:[%s2916_s30 + $0x58] sm:$0xff] }
 0x169   :  { %v1233_v30 = vmul.f32 -2.0, %v1201_v3  ;;  %v1229_v46 = vmul.f32 -2.0, %v1197_v9  ;;  %v387_v62 = vsel %vm386_vm4, %v2686_v1, %v385_v50  ;;  %v1210_v9 = vld [vmem:[%s3853_s23 + $0x8] sm:$0xff]  ;;  %vm446_vm4 = vcmp.eq.f32.partialorder %v4067_v7, inf }
 0x16a   :  { %v1237_v55 = vmul.f32 -2.0, %v1205_v57  ;;  %v345_v20 = vmul.f32 %v2664_v40, %v344_v18  ;;  %v4033_v57 = vld [vmem:[%s2916_s30 + $0x18] sm:$0xff]  ;;  %v4039_v43 = vsel %vm388_vm5, %v389_v51, %v387_v62  ;;  %v353_v51 = vand.u32 2147483648, %v3996_v45 }
 0x16b   :  { %v1249_v61 = vadd.f32 %v1233_v30, %v1217_v35  ;;  %v1245_v38 = vadd.f32 %v1229_v46, %v1213_v52  ;;  %2667 = vrsqrt.f32 %v4033_v57  ;;  %v1218_v35 = vld [vmem:[%s3853_s23 + $0x48] sm:$0xff]  ;;  %5400 = vst [vmem:[#allocation105_spill] sm:$0xff] %v4039_v43  ;;  %v289_v30 = vmul.f32 %v3963_v47, %v288_v36  ;;  %v2666_v46 = vpop.eup %2665  ;;  %v1219_v36 = vld [vmem:[%s3853_s23 + $0x50] sm:$0xff] }
 0x16c   :  { %v1253_v49 = vadd.f32 %v1237_v55, %v1221_v42  ;;  %v329_v42 = vand.u32 2147483648, %v3952_v56  ;;  %v346_v4 = vmul.f32 0.5, %v345_v20  ;;  %2669 = vrsqrt.f32 %v4052_v32 }
 0x16d   :  { %1266 = vst.msk [vmem:[%s3853_s23 + $0x40] sm:$0xff] %vm138_vm11, %v1249_v61  ;;  %v1187_v61 = vmul.f32 120.0, %v4039_v43  ;;  %v291_v60 = vsel %vm290_vm8, %v3963_v47, %v289_v30  ;;  %2671 = vrsqrt.f32 %v4067_v7  ;;  %vm302_vm15 = vcmp.eq.f32.partialorder %v4033_v57, inf }
 0x16e   :  { %1270 = vst.msk [vmem:[%s3853_s23 + $0x60] sm:$0xff] %vm138_vm11, %v1253_v49  ;;  %v1147_v3 = vpop.xlane.xlu2 %1146  ;;  %v347_v55 = vsub.f32 1.5, %v346_v4  ;;  %2673 = vrsqrt.f32 %v4081_v0  ;;  %vm304_vm1 = vcmp.eq.f32.partialorder %v4033_v57, 0.0  ;;  %vm448_vm5 = vcmp.eq.f32.partialorder %v4067_v7, 0.0 }
 0x16f   :  { %1262 = vst.msk [vmem:[%s3853_s23 + $0x20] sm:$0xff] %vm138_vm11, %v1245_v38  ;;  %v1163_v53 = vpop.xlane.xlu0 %1162  ;;  %v1194_v63 = vsub.f32 %v1147_v3, %v1178_v44  ;;  %v332_v38 = vmul.f32 %v4024_v29, %v2666_v46  ;;  %v4062_v44 = vsel %vm328_vm7, %v329_v42, %v327_v48  ;;  %v341_v3 = vand.u32 2147483648, %v4024_v29 }
 0x170   :  { %v1202_v28 = vsub.f32 %v1163_v53, %v1186_v39  ;;  %v348_v49 = vmul.f32 %v2664_v40, %v347_v55  ;;  %5401 = vst [vmem:[#allocation106_spill] sm:$0xff] %v4062_v44  ;;  %v4077_v53 = vsel %vm292_vm9, %v293_v34, %v291_v60  ;;  %v1182_v20 = vmul.f32 120.0, %v4062_v44 }
 0x171   :  { %v1226_v37 = vmul.f32 -2.0, %v1194_v63  ;;  %v2668_v39 = vpop.eup %2667  ;;  %v333_v18 = vmul.f32 %v2666_v46, %v332_v38  ;;  %5402 = vst [vmem:[#allocation107_spill] sm:$0xff] %v4077_v53  ;;  %v1179_v30 = vmul.f32 120.0, %v4077_v53  ;;  %vm398_vm6 = vcmp.eq.f32.partialorder %v4081_v0, inf }
 0x172   :  { %v1234_v52 = vmul.f32 -2.0, %v1202_v28  ;;  %v349_v5 = vmul.f32 %v3996_v45, %v348_v49  ;;  %v296_v56 = vmul.f32 %v4033_v57, %v2668_v39  ;;  %vm400_vm7 = vcmp.eq.f32.partialorder %v4081_v0, 0.0 }
 0x173   :  { %v1242_v50 = vadd.f32 %v1226_v37, %v1210_v9  ;;  %v334_v63 = vmul.f32 0.5, %v333_v18  ;;  %v2670_v9 = vpop.eup %2669  ;;  %v425_v18 = vand.u32 2147483648, %v4052_v32 }
 0x174   :  { %v1250_v1 = vadd.f32 %v1234_v52, %v1218_v35  ;;  %v351_v28 = vsel %vm350_vm10, %v3996_v45, %v349_v5  ;;  %v297_v35 = vmul.f32 %v2668_v39, %v296_v56  ;;  %v416_v37 = vmul.f32 %v4052_v32, %v2670_v9  ;;  %v2672_v48 = vpop.eup %2671 }
 0x175   :  { %1259 = vst.msk [vmem:[%s3853_s23 + $0x8] sm:$0xff] %vm138_vm11, %v1242_v50  ;;  %v4091_v42 = vsel %vm352_vm12, %v353_v51, %v351_v28  ;;  %v335_v4 = vsub.f32 1.5, %v334_v63  ;;  %v305_v45 = vand.u32 2147483648, %v4033_v57  ;;  %v4100_v50 = vld [vmem:[%s2916_s30 + $0x70] sm:$0xff]  ;;  %v4103_v51 = vpop.eup %2673  ;;  %v440_v56 = vmul.f32 %v4067_v7, %v2672_v48 }
 0x176   :  { %1267 = vst.msk [vmem:[%s3853_s23 + $0x48] sm:$0xff] %vm138_vm11, %v1250_v1  ;;  %v1165_v40 = vpop.xlane.xlu1 %1164  ;;  %v298_v52 = vmul.f32 0.5, %v297_v35  ;;  %v1184_v1 = vmul.f32 120.0, %v4091_v42  ;;  %2675 = vrsqrt.f32 %v4100_v50  ;;  %v417_v38 = vmul.f32 %v2670_v9, %v416_v37  ;;  %v1211_v63 = vld [vmem:[%s3853_s23 + $0x10] sm:$0xff] }
 0x177   :  { %v1203_v62 = vsub.f32 %v1165_v40, %v1187_v61  ;;  %5403 = vst [vmem:[#allocation108_spill] sm:$0xff] %v4091_v42  ;;  %v336_v60 = vmul.f32 %v2666_v46, %v335_v4  ;;  %v1214_v40 = vld [vmem:[%s3853_s23 + $0x28] sm:$0xff]  ;;  %v441_v4 = vmul.f32 %v2672_v48, %v440_v56  ;;  %vm434_vm8 = vcmp.eq.f32.partialorder %v4100_v50, inf }
 0x178   :  { %v299_v49 = vsub.f32 1.5, %v298_v52  ;;  %v392_v52 = vmul.f32 %v4081_v0, %v4103_v51  ;;  %vm436_vm9 = vcmp.eq.f32.partialorder %v4100_v50, 0.0 }
 0x179   :  { %v1235_v47 = vmul.f32 -2.0, %v1203_v62 }
 0x17a   :  { %v1155_v55 = vpop.xlane.xlu2 %1154  ;;  %v300_v28 = vmul.f32 %v2668_v39, %v299_v49 }
 0x17b   :  { %v1251_v34 = vadd.f32 %v1235_v47, %v1219_v36  ;;  %v1198_v61 = vsub.f32 %v1155_v55, %v1182_v20  ;;  %v337_v20 = vmul.f32 %v4024_v29, %v336_v60  ;;  %v418_v47 = vmul.f32 0.5, %v417_v38  ;;  %v1216_v55 = vld [vmem:[%s3853_s23 + $0x38] sm:$0xff] }
 0x17c   :  { %v1149_v5 = vpop.xlane.xlu0 %1148  ;;  %v2676_v60 = vpop.eup %2675  ;;  %v442_v38 = vmul.f32 0.5, %v441_v4 }
 0x17d   :  { %1268 = vst.msk [vmem:[%s3853_s23 + $0x50] sm:$0xff] %vm138_vm11, %v1251_v34  ;;  %v1230_v62 = vmul.f32 -2.0, %v1198_v61  ;;  %v1195_v46 = vsub.f32 %v1149_v5, %v1179_v30  ;;  %v339_v61 = vsel %vm338_vm13, %v4024_v29, %v337_v20  ;;  %v301_v30 = vmul.f32 %v4033_v57, %v300_v28 }
 0x17e   :  { %v1159_v36 = vpop.xlane.xlu1 %1158  ;;  %v419_v49 = vsub.f32 1.5, %v418_v47  ;;  %v443_v20 = vsub.f32 1.5, %v442_v38 }
 0x17f   :  { %v1200_v35 = vsub.f32 %v1159_v36, %v1184_v1  ;;  %v1246_v37 = vadd.f32 %v1230_v62, %v1214_v40  ;;  %v1227_v34 = vmul.f32 -2.0, %v1195_v46  ;;  %v4123_v1 = vsel %vm340_vm14, %v341_v3, %v339_v61  ;;  %v1212_v61 = vld [vmem:[%s3853_s23 + $0x18] sm:$0xff] }
 0x180   :  { %5404 = vst [vmem:[#allocation109_spill] sm:$0xff] %v4123_v1  ;;  %v1183_v5 = vmul.f32 120.0, %v4123_v1  ;;  %v303_v56 = vsel %vm302_vm15, %v4033_v57, %v301_v30  ;;  %v393_v62 = vmul.f32 %v4103_v51, %v392_v52  ;;  %v420_v36 = vmul.f32 %v2670_v9, %v419_v49 }
 0x181   :  { %v1232_v39 = vmul.f32 -2.0, %v1200_v35  ;;  %1263 = vst.msk [vmem:[%s3853_s23 + $0x28] sm:$0xff] %vm138_vm11, %v1246_v37  ;;  %v1243_v40 = vadd.f32 %v1227_v34, %v1211_v63  ;;  %v4134_v29 = vsel %vm304_vm1, %v305_v45, %v303_v56  ;;  %v428_v35 = vmul.f32 %v4100_v50, %v2676_v60 }
 0x182   :  { %5405 = vst [vmem:[#allocation110_spill] sm:$0xff] %v4134_v29  ;;  %v1151_v3 = vpop.xlane.xlu2 %1150  ;;  %v1180_v28 = vmul.f32 120.0, %v4134_v29  ;;  %v394_v63 = vmul.f32 0.5, %v393_v62  ;;  %v421_v57 = vmul.f32 %v4052_v32, %v420_v36  ;;  %v444_v45 = vmul.f32 %v2672_v48, %v443_v20 }
 0x183   :  { %v1248_v46 = vadd.f32 %v1232_v39, %v1216_v55  ;;  %1260 = vst.msk [vmem:[%s3853_s23 + $0x10] sm:$0xff] %vm138_vm11, %v1243_v40  ;;  %v449_v9 = vand.u32 2147483648, %v4067_v7  ;;  %v429_v34 = vmul.f32 %v2676_v60, %v428_v35  ;;  %v1215_v55 = vld [vmem:[%s3853_s23 + $0x30] sm:$0xff] }
 0x184   :  { %v1157_v47 = vpop.xlane.xlu0 %1156  ;;  %v1196_v52 = vsub.f32 %v1151_v3, %v1180_v28  ;;  %v395_v37 = vsub.f32 1.5, %v394_v63  ;;  %v423_v30 = vsel %vm422_vm2, %v4052_v32, %v421_v57  ;;  %v445_v39 = vmul.f32 %v4067_v7, %v444_v45 }
 0x185   :  { %1265 = vst.msk [vmem:[%s3853_s23 + $0x38] sm:$0xff] %vm138_vm11, %v1248_v46  ;;  %v1199_v4 = vsub.f32 %v1157_v47, %v1183_v5  ;;  %v4156_v38 = vsel %vm424_vm3, %v425_v18, %v423_v30  ;;  %v401_v46 = vand.u32 2147483648, %v4081_v0  ;;  %v430_v3 = vmul.f32 0.5, %v429_v34  ;;  %v1222_v47 = vld [vmem:[%s3853_s23 + $0x68] sm:$0xff] }
 0x186   :  { %v1228_v49 = vmul.f32 -2.0, %v1196_v52  ;;  %5406 = vst [vmem:[#allocation111_spill] sm:$0xff] %v4156_v38  ;;  %v1171_v40 = vpop.xlane.xlu1 %1170  ;;  %v396_v5 = vmul.f32 %v4103_v51, %v395_v37  ;;  %v1190_v56 = vmul.f32 120.0, %v4156_v38  ;;  %v447_v62 = vsel %vm446_vm4, %v4067_v7, %v445_v39 }
 0x187   :  { %v1231_v48 = vmul.f32 -2.0, %v1199_v4  ;;  %v4166_v32 = vsel %vm448_vm5, %v449_v9, %v447_v62  ;;  %v431_v35 = vsub.f32 1.5, %v430_v3  ;;  %v437_v34 = vand.u32 2147483648, %v4100_v50 }
 0x188   :  { %v1244_v20 = vadd.f32 %v1228_v49, %v1212_v61  ;;  %5407 = vst [vmem:[#allocation112_spill] sm:$0xff] %v4166_v32  ;;  %v397_v18 = vmul.f32 %v4081_v0, %v396_v5  ;;  %v1206_v28 = vsub.f32 %v1171_v40, %v1190_v56  ;;  %v1192_v51 = vmul.f32 120.0, %v4166_v32  ;;  %v1224_v61 = vld [vmem:[%s3853_s23 + $0x78] sm:$0xff] }
 0x189   :  { %v1247_v36 = vadd.f32 %v1231_v48, %v1215_v55  ;;  %v432_v4 = vmul.f32 %v2676_v60, %v431_v35  ;;  %v1220_v60 = vld [vmem:[%s3853_s23 + $0x58] sm:$0xff] }
 0x18a   :  { %v1167_v63 = vpop.xlane.xlu2 %1166  ;;  %v399_v57 = vsel %vm398_vm6, %v4081_v0, %v397_v18  ;;  %1261 = vst.msk [vmem:[%s3853_s23 + $0x18] sm:$0xff] %vm138_vm11, %v1244_v20  ;;  %v1238_v7 = vmul.f32 -2.0, %v1206_v28 }
 0x18b   :  { %1264 = vst.msk [vmem:[%s3853_s23 + $0x30] sm:$0xff] %vm138_vm11, %v1247_v36  ;;  %v4180_v9 = vsel %vm400_vm7, %v401_v46, %v399_v57  ;;  %v433_v30 = vmul.f32 %v4100_v50, %v432_v4  ;;  %v1223_v36 = vld [vmem:[%s3853_s23 + $0x70] sm:$0xff] }
 0x18c   :  { %v1175_v45 = vpop.xlane.xlu0 %1174  ;;  %5408 = vst [vmem:[#allocation113_spill] sm:$0xff] %v4180_v9  ;;  %v1188_v37 = vmul.f32 120.0, %v4180_v9  ;;  %v1254_v55 = vadd.f32 %v1238_v7, %v1222_v47 }
 0x18d   :  { %v1208_v52 = vsub.f32 %v1175_v45, %v1192_v51  ;;  %v435_v48 = vsel %vm434_vm8, %v4100_v50, %v433_v30 }
 0x18e   :  { %v1204_v39 = vsub.f32 %v1167_v63, %v1188_v37  ;;  %1271 = vst.msk [vmem:[%s3853_s23 + $0x68] sm:$0xff] %vm138_vm11, %v1254_v55  ;;  %v4192_v5 = vsel %vm436_vm9, %v437_v34, %v435_v48 }
 0x18f   :  { %v1240_v0 = vmul.f32 -2.0, %v1208_v52  ;;  %5409 = vst [vmem:[#allocation114_spill] sm:$0xff] %v4192_v5  ;;  %v1191_v56 = vmul.f32 120.0, %v4192_v5 }
 0x190   :  { %v1236_v40 = vmul.f32 -2.0, %v1204_v39 }
 0x191   :  { %v1256_v49 = vadd.f32 %v1240_v0, %v1224_v61 }
 0x192   :  { %v1173_v62 = vpop.xlane.xlu2 %1172  ;;  %v1252_v46 = vadd.f32 %v1236_v40, %v1220_v60 }
 0x193   :  { %1273 = vst.msk [vmem:[%s3853_s23 + $0x78] sm:$0xff] %vm138_vm11, %v1256_v49  ;;  %v1207_v3 = vsub.f32 %v1173_v62, %v1191_v56 }
 0x194   :  { %1269 = vst.msk [vmem:[%s3853_s23 + $0x58] sm:$0xff] %vm138_vm11, %v1252_v46 }
 0x195   :  { %v1239_v20 = vmul.f32 -2.0, %v1207_v3  ;;  %1277 = sbr.rel (%p2427_p1) target bundleno = 875 (0x36b), region = 41 }
 0x197   :  { %v1255_v18 = vadd.f32 %v1239_v20, %v1223_v36 }
 0x199   :  { %1272 = vst.msk [vmem:[%s3853_s23 + $0x70] sm:$0xff] %vm138_vm11, %v1255_v18 }
 0x19a   :  { %2428 = vmatpush.xpose.msk.msra.mxu0 %vm643_vm0, %v2894_v16  ;;  %2542 = vmatpush.xpose.msk.msra.mxu2 %vm643_vm0, %v2894_v16  ;;  %v2762_v16 = vmov 0   ;;  %v5428_v50 = vld [vmem:[#allocation55_spill] sm:$0xff]  ;;  %v5429_v28 = vld [vmem:[#allocation48_spill] sm:$0xff]  ;;  %v5432_v35 = vld [vmem:[#allocation50_spill] sm:$0xff]  ;;  %s2268_s29 = scalar_select %p2493_p2, 1.0, 2.0 }
 0x19b   :  { %2460 = vmatpush.xpose.msk.msra.mxu1 %vm643_vm0, %v2899_v17  ;;  %2558 = vmatpush.xpose.msk.msra.mxu3 %vm643_vm0, %v2899_v17  ;;  %v5416_v17 = vld [vmem:[#allocation11_spill] sm:$0xff]  ;;  %v5431_v63 = vld [vmem:[#allocation56_spill] sm:$0xff]  ;;  %v5433_v47 = vld [vmem:[#allocation6_spill] sm:$0xff] }
 0x19c   :  { %2693 = vset.pattern.permute.xlu0 %v2762_v16  ;;  %2694 = vset.pattern.permute.xlu1 %v2762_v16  ;;  %v5430_v51 = vld [vmem:[#allocation7_spill] sm:$0xff]  ;;  %v5435_v7 = vld [vmem:[#allocation5_spill] sm:$0xff]  ;;  %v5436_v45 = vld [vmem:[#allocation62_spill] sm:$0xff] }
 0x19d   :  { %1765 = vperm.xlu0 %2693, %v2935_v21   ;;  %1775 = vperm.xlu1 %2694, %v2941_v23   ;;  %v5418_v21 = vld [vmem:[#allocation17_spill] sm:$0xff]  ;;  %v5420_v23 = vld [vmem:[#allocation10_spill] sm:$0xff]  ;;  %v5434_v57 = vld [vmem:[#allocation59_spill] sm:$0xff] }
 0x19e   :  { %2429 = vmatpush.xpose.msk.msra.mxu0 %vm643_vm0, %v2889_v15  ;;  %2543 = vmatpush.xpose.msk.msra.mxu2 %vm643_vm0, %v2889_v15  ;;  %v5414_v15 = vld [vmem:[#allocation22_spill] sm:$0xff]  ;;  %v5437_v4 = vld [vmem:[#allocation4_spill] sm:$0xff]  ;;  %v5438_v52 = vld [vmem:[#allocation65_spill] sm:$0xff] }
 0x19f   :  { %2461 = vmatpush.xpose.msk.msra.mxu1 %vm643_vm0, %v2931_v19  ;;  %2559 = vmatpush.xpose.msk.msra.mxu3 %vm643_vm0, %v2931_v19  ;;  %v5417_v19 = vld [vmem:[#allocation46_spill] sm:$0xff]  ;;  %v5440_v34 = vld [vmem:[#allocation68_spill] sm:$0xff]  ;;  %v5441_v55 = vld [vmem:[#allocation25_spill] sm:$0xff] }
 0x1a0   :  { %2695 = vset.pattern.permute.xlu2 %v2762_v16  ;;  %v5439_v37 = vld [vmem:[#allocation66_spill] sm:$0xff]  ;;  %v5442_v61 = vld [vmem:[#allocation36_spill] sm:$0xff]  ;;  %v5449_v40 = vld [vmem:[#allocation27_spill] sm:$0xff] }
 0x1a1   :  { %1785 = vperm.xlu2 %2695, %v2948_v25   ;;  %v5422_v25 = vld [vmem:[#allocation23_spill] sm:$0xff]  ;;  %v5443_v30 = vld [vmem:[#allocation70_spill] sm:$0xff]  ;;  %v5444_v0 = vld [vmem:[#allocation72_spill] sm:$0xff] }
 0x1a2   :  { %2430 = vmatpush.xpose.msk.msra.mxu0 %vm643_vm0, %v2884_v14  ;;  %2544 = vmatpush.xpose.msk.msra.mxu2 %vm643_vm0, %v2884_v14  ;;  %v5413_v14 = vld [vmem:[#allocation12_spill] sm:$0xff]  ;;  %v5445_v39 = vld [vmem:[#allocation26_spill] sm:$0xff]  ;;  %v5450_v56 = vld [vmem:[#allocation39_spill] sm:$0xff] }
 0x1a3   :  { %2462 = vmatpush.xpose.msk.msra.mxu1 %vm643_vm0, %v2966_v27  ;;  %2560 = vmatpush.xpose.msk.msra.mxu3 %vm643_vm0, %v2966_v27  ;;  %v5424_v27 = vld [vmem:[#allocation52_spill] sm:$0xff]  ;;  %v5446_v60 = vld [vmem:[#allocation38_spill] sm:$0xff]  ;;  %v5453_v3 = vld [vmem:[#allocation29_spill] sm:$0xff] }
 0x1a4   :  { %v5447_v48 = vld [vmem:[#allocation74_spill] sm:$0xff]  ;;  %v5448_v49 = vld [vmem:[#allocation76_spill] sm:$0xff]  ;;  %v5455_v20 = vld [vmem:[#allocation67_spill] sm:$0xff] }
 0x1a5   :  { %1770 = vperm.xlu0 %2693, %v2938_v22   ;;  %1780 = vperm.xlu1 %2694, %v2944_v24   ;;  %v5419_v22 = vld [vmem:[#allocation20_spill] sm:$0xff]  ;;  %v5421_v24 = vld [vmem:[#allocation51_spill] sm:$0xff]  ;;  %v5451_v62 = vld [vmem:[#allocation78_spill] sm:$0xff] }
 0x1a6   :  { %2431 = vmatpush.xpose.msk.msra.mxu0 %vm643_vm0, %v2879_v13  ;;  %2545 = vmatpush.xpose.msk.msra.mxu2 %vm643_vm0, %v2879_v13  ;;  %v5412_v13 = vld [vmem:[#allocation15_spill] sm:$0xff]  ;;  %v5452_v46 = vld [vmem:[#allocation80_spill] sm:$0xff]  ;;  %v5456_v18 = vld [vmem:[#allocation69_spill] sm:$0xff] }
 0x1a7   :  { %2463 = vmatpush.xpose.msk.msra.mxu1 %vm643_vm0, %v2994_v33  ;;  %2561 = vmatpush.xpose.msk.msra.mxu3 %vm643_vm0, %v2994_v33  ;;  %v5425_v33 = vld [vmem:[#allocation32_spill] sm:$0xff]  ;;  %v5457_v16 = vld [vmem:[#allocation30_spill] sm:$0xff] }
 0x1a8   :  { %v5454_v36 = vld [vmem:[#allocation40_spill] sm:$0xff] }
 0x1a9   :  { %1790 = vperm.xlu2 %2695, %v2956_v26   ;;  %v5423_v26 = vld [vmem:[#allocation9_spill] sm:$0xff] }
 0x1aa   :  { %2432 = vmatpush.xpose.msk.msra.mxu0 %vm643_vm0, %v2874_v12  ;;  %2546 = vmatpush.xpose.msk.msra.mxu2 %vm643_vm0, %v2874_v12  ;;  %v5410_v12 = vld [vmem:[#allocation18_spill] sm:$0xff] }
 0x1ab   :  { %2464 = vmatpush.xpose.msk.msra.mxu1 %vm643_vm0, %v3045_v54  ;;  %2562 = vmatpush.xpose.msk.msra.mxu3 %vm643_vm0, %v3045_v54  ;;  %v5426_v54 = vld [vmem:[#allocation47_spill] sm:$0xff] }
 0x1ad   :  { %1800 = vperm.xlu1 %2694, %v5412_v13   ;;  %v5460_v13 = vld [vmem:[#allocation73_spill] sm:$0xff] }
 0x1ae   :  { %2433 = vmatpush.xpose.msk.msra.mxu0 %vm643_vm0, %v2869_v11  ;;  %2547 = vmatpush.xpose.msk.msra.mxu2 %vm643_vm0, %v2869_v11  ;;  %v5411_v11 = vld [vmem:[#allocation14_spill] sm:$0xff] }
 0x1af   :  { %2465 = vmatpush.xpose.msk.msra.mxu1 %vm643_vm0, %v3088_v59  ;;  %2563 = vmatpush.xpose.msk.msra.mxu3 %vm643_vm0, %v3088_v59  ;;  %v5427_v59 = vld [vmem:[#allocation8_spill] sm:$0xff] }
 0x1b0   :  { %1795 = vperm.xlu0 %2693, %v5411_v11   ;;  %v5459_v11 = vld [vmem:[#allocation71_spill] sm:$0xff] }
 0x1b2   :  { %2434 = vmatpush.xpose.msk.msra.mxu0 %vm643_vm0, %v2864_v10  ;;  %2548 = vmatpush.xpose.msk.msra.mxu2 %vm643_vm0, %v2864_v10  ;;  %v5415_v10 = vld [vmem:[#allocation16_spill] sm:$0xff] }
 0x1b3   :  { %2466 = vmatpush.xpose.msk.msra.mxu1 %vm643_vm0, %v5410_v12  ;;  %2564 = vmatpush.xpose.msk.msra.mxu3 %vm643_vm0, %v5410_v12  ;;  %v5458_v12 = vld [vmem:[#allocation42_spill] sm:$0xff] }
 0x1b4   :  { %1805 = vperm.xlu2 %2695, %v5415_v10   ;;  %v5463_v10 = vld [vmem:[#allocation75_spill] sm:$0xff] }
 0x1b5   :  { %1815 = vperm.xlu1 %2694, %v5419_v22   ;;  %v5467_v22 = vld [vmem:[#allocation79_spill] sm:$0xff] }
 0x1b6   :  { %2435 = vmatpush.xpose.msk.msra.mxu0 %vm643_vm0, %v5413_v14  ;;  %2549 = vmatpush.xpose.msk.msra.mxu2 %vm643_vm0, %v5413_v14  ;;  %v5461_v14 = vld [vmem:[#allocation31_spill] sm:$0xff] }
 0x1b7   :  { %2467 = vmatpush.xpose.msk.msra.mxu1 %vm643_vm0, %v5414_v15  ;;  %2565 = vmatpush.xpose.msk.msra.mxu3 %vm643_vm0, %v5414_v15  ;;  %v5462_v15 = vld [vmem:[#allocation43_spill] sm:$0xff] }
 0x1b8   :  { %1810 = vperm.xlu0 %2693, %v5418_v21   ;;  %v5466_v21 = vld [vmem:[#allocation44_spill] sm:$0xff] }
 0x1ba   :  { %2436 = vmatpush.xpose.msk.msra.mxu0 %vm643_vm0, %v5416_v17  ;;  %2550 = vmatpush.xpose.msk.msra.mxu2 %vm643_vm0, %v5416_v17  ;;  %v5464_v17 = vld [vmem:[#allocation77_spill] sm:$0xff] }
 0x1bb   :  { %2468 = vmatpush.xpose.msk.msra.mxu1 %vm643_vm0, %v5417_v19  ;;  %2566 = vmatpush.xpose.msk.msra.mxu3 %vm643_vm0, %v5417_v19  ;;  %v5465_v19 = vld [vmem:[#allocation34_spill] sm:$0xff] }
 0x1bc   :  { %1820 = vperm.xlu2 %2695, %v5422_v25   ;;  %v5470_v25 = vld [vmem:[#allocation45_spill] sm:$0xff] }
 0x1bd   :  { %1830 = vperm.xlu1 %2694, %v5426_v54  }
 0x1be   :  { %2437 = vmatpush.xpose.msk.msra.mxu0 %vm643_vm0, %v5420_v23  ;;  %2551 = vmatpush.xpose.msk.msra.mxu2 %vm643_vm0, %v5420_v23  ;;  %v5468_v23 = vld [vmem:[#allocation81_spill] sm:$0xff] }
 0x1bf   :  { %2469 = vmatpush.xpose.msk.msra.mxu1 %vm643_vm0, %v5421_v24  ;;  %2567 = vmatpush.xpose.msk.msra.mxu3 %vm643_vm0, %v5421_v24  ;;  %v5469_v24 = vld [vmem:[#allocation35_spill] sm:$0xff] }
 0x1c0   :  { %1825 = vperm.xlu0 %2693, %v5425_v33  }
 0x1c2   :  { %2438 = vmatpush.xpose.msk.msra.mxu0 %vm643_vm0, %v5423_v26  ;;  %2552 = vmatpush.xpose.msk.msra.mxu2 %vm643_vm0, %v5423_v26 }
 0x1c3   :  { %2470 = vmatpush.xpose.msk.msra.mxu1 %vm643_vm0, %v5424_v27  ;;  %2568 = vmatpush.xpose.msk.msra.mxu3 %vm643_vm0, %v5424_v27 }
 0x1c4   :  { %1835 = vperm.xlu2 %2695, %v5429_v28  }
 0x1c6   :  { %2439 = vmatpush.xpose.msk.msra.mxu0 %vm643_vm0, %v5427_v59  ;;  %2553 = vmatpush.xpose.msk.msra.mxu2 %vm643_vm0, %v5427_v59 }
 0x1c7   :  { %2471 = vmatpush.xpose.msk.msra.mxu1 %vm643_vm0, %v5428_v50  ;;  %2569 = vmatpush.xpose.msk.msra.mxu3 %vm643_vm0, %v5428_v50 }
 0x1c8   :  { %1840 = vperm.xlu0 %2693, %v5432_v35  }
 0x1ca   :  { %2440 = vmatpush.xpose.msk.msra.mxu0 %vm643_vm0, %v5430_v51  ;;  %2554 = vmatpush.xpose.msk.msra.mxu2 %vm643_vm0, %v5430_v51 }
 0x1cb   :  { %2472 = vmatpush.xpose.msk.msra.mxu1 %vm643_vm0, %v5431_v63  ;;  %2570 = vmatpush.xpose.msk.msra.mxu3 %vm643_vm0, %v5431_v63 }
 0x1ce   :  { %2441 = vmatpush.xpose.msk.msra.mxu0 %vm643_vm0, %v5433_v47  ;;  %2555 = vmatpush.xpose.msk.msra.mxu2 %vm643_vm0, %v5433_v47  ;;  %v5471_v47 = vld [vmem:[#allocation13_spill] sm:$0xff] }
 0x1cf   :  { %2473 = vmatpush.xpose.msk.msra.mxu1 %vm643_vm0, %v5434_v57  ;;  %2571 = vmatpush.xpose.msk.msra.mxu3 %vm643_vm0, %v5434_v57  ;;  %v4414_v57 = vperm.slane %v5471_v47, 0 }
 0x1d2   :  { %2442 = vmatpush.xpose.msk.msra.mxu0 %vm643_vm0, %v5435_v7  ;;  %2556 = vmatpush.xpose.msk.msra.mxu2 %vm643_vm0, %v5435_v7 }
 0x1d3   :  { %2474 = vmatpush.xpose.msk.msra.mxu1 %vm643_vm0, %v5436_v45  ;;  %2572 = vmatpush.xpose.msk.msra.mxu3 %vm643_vm0, %v5436_v45 }
 0x1d6   :  { %2443 = vmatpush.xpose.msk.msra.mxu0 %vm643_vm0, %v5437_v4  ;;  %2557 = vmatpush.xpose.msk.msra.mxu2 %vm643_vm0, %v5437_v4  ;;  %v5472_v4 = vld [vmem:[#allocation82_spill] sm:$0xff] }
 0x1d7   :  { %2475 = vmatpush.xpose.msk.msra.mxu1 %vm643_vm0, %v5438_v52  ;;  %2573 = vmatpush.xpose.msk.msra.mxu3 %vm643_vm0, %v5438_v52  ;;  %v1394_v52 = vadd.f32 %v4414_v57, %v5472_v4 }
 0x1d9   :  { %2444 = vmatmul.msk.f32.vlgmr.msra.gmra.mxu0 %vm643_vm0, %v5439_v37  ;;  %2452 = vmatmul.msk.f32.vlgmr.msra.gmra.mxu2 %vm643_vm0, %v5440_v34  ;;  %v5473_v34 = vld [vmem:[#allocation91_spill] sm:$0xff] }
 0x1da   :  { %2476 = vmatmul.msk.f32.vlgmr.msra.gmra.mxu1 %vm643_vm0, %v5441_v55  ;;  %2484 = vmatmul.msk.f32.vlgmr.msra.gmra.mxu3 %vm643_vm0, %v5442_v61 }
 0x1e1   :  { %2445 = vmatmul.msk.f32.gmra.mxu0 %vm643_vm0, %v5443_v30  ;;  %2453 = vmatmul.msk.f32.gmra.mxu2 %vm643_vm0, %v5444_v0 }
 0x1e2   :  { %2477 = vmatmul.msk.f32.gmra.mxu1 %vm643_vm0, %v5445_v39  ;;  %2485 = vmatmul.msk.f32.gmra.mxu3 %vm643_vm0, %v5446_v60 }
 0x1e9   :  { %2446 = vmatmul.msk.f32.gmra.mxu0 %vm643_vm0, %v5447_v48  ;;  %2454 = vmatmul.msk.f32.gmra.mxu2 %vm643_vm0, %v5448_v49 }
 0x1ea   :  { %2478 = vmatmul.msk.f32.gmra.mxu1 %vm643_vm0, %v5449_v40  ;;  %2486 = vmatmul.msk.f32.gmra.mxu3 %vm643_vm0, %v5450_v56 }
 0x1f1   :  { %2447 = vmatmul.msk.f32.gmra.mxu0 %vm643_vm0, %v5451_v62  ;;  %2455 = vmatmul.msk.f32.gmra.mxu2 %vm643_vm0, %v5452_v46 }
 0x1f2   :  { %2479 = vmatmul.msk.f32.gmra.mxu1 %vm643_vm0, %v5453_v3  ;;  %2487 = vmatmul.msk.f32.gmra.mxu3 %vm643_vm0, %v5454_v36  ;;  %v5474_v3 = vld [vmem:[#allocation89_spill] sm:$0xff] }
 0x1f3   :  { %v1402_v36 = vadd.f32 %v4414_v57, %v5474_v3  ;;  %v5479_v3 = vld [vmem:[#allocation88_spill] sm:$0xff] }
 0x1f9   :  { %2448 = vmatmul.msk.f32.gmra.mxu0 %vm643_vm0, %v5455_v20  ;;  %2456 = vmatmul.msk.f32.gmra.mxu2 %vm643_vm0, %v5456_v18 }
 0x1fa   :  { %2480 = vmatmul.msk.f32.gmra.mxu1 %vm643_vm0, %v5457_v16  ;;  %2488 = vmatmul.msk.f32.gmra.mxu3 %vm643_vm0, %v5458_v12 }
 0x1fb   :  { %v1786_v27 = vpop.permute.xlu2 %1785 }
 0x1fc   :  { %v4420_v48 = vadd.f32 %v5473_v34, %v1786_v27 }
 0x201   :  { %2449 = vmatmul.msk.f32.gmra.mxu0 %vm643_vm0, %v5459_v11  ;;  %2457 = vmatmul.msk.f32.gmra.mxu2 %vm643_vm0, %v5460_v13  ;;  %v2116_v13 = vlaneseq }
 0x202   :  { %2481 = vmatmul.msk.f32.gmra.mxu1 %vm643_vm0, %v5461_v14  ;;  %2489 = vmatmul.msk.f32.gmra.mxu3 %vm643_vm0, %v5462_v15 }
 0x203   :  { %v1791_v59 = vpop.permute.xlu2 %1790 }
 0x204   :  { %v4423_v49 = vadd.f32 %v5473_v34, %v1791_v59 }
 0x209   :  { %2450 = vmatmul.msk.f32.gmra.mxu0 %vm643_vm0, %v5463_v10  ;;  %2458 = vmatmul.msk.f32.gmra.mxu2 %vm643_vm0, %v5464_v17 }
 0x20a   :  { %2482 = vmatmul.msk.f32.gmra.mxu1 %vm643_vm0, %v5465_v19  ;;  %2490 = vmatmul.msk.f32.gmra.mxu3 %vm643_vm0, %v5466_v21 }
 0x20e   :  { %v1806_v51 = vpop.permute.xlu2 %1805 }
 0x20f   :  { %v1766_v26 = vpop.permute.xlu0 %1765  ;;  %v1776_v54 = vpop.permute.xlu1 %1775  ;;  %v1851_v62 = vadd.f32 %v5473_v34, %v1806_v51 }
 0x210   :  { %v1843_v55 = vadd.f32 %v5473_v34, %v1766_v26  ;;  %v4426_v56 = vadd.f32 %v5473_v34, %v1776_v54 }
 0x211   :  { %2451 = vmatmul.msk.f32.gmra.mxu0 %vm643_vm0, %v5467_v22  ;;  %2459 = vmatmul.msk.f32.gmra.mxu2 %vm643_vm0, %v5468_v23 }
 0x212   :  { %2483 = vmatmul.msk.f32.gmra.mxu1 %vm643_vm0, %v5469_v24  ;;  %2491 = vmatmul.msk.f32.gmra.mxu3 %vm643_vm0, %v5470_v25 }
 0x216   :  { %v1821_v7 = vpop.permute.xlu2 %1820 }
 0x217   :  { %v1771_v33 = vpop.permute.xlu0 %1770  ;;  %v1781_v28 = vpop.permute.xlu1 %1780  ;;  %v4437_v18 = vadd.f32 %v5473_v34, %v1821_v7 }
 0x218   :  { %v4434_v20 = vadd.f32 %v5473_v34, %v1771_v33  ;;  %v4445_v15 = vadd.f32 %v5473_v34, %v1781_v28  ;;  %v5475_v33 = vld [vmem:[#allocation84_spill] sm:$0xff] }
 0x219   :  { %v1395_v54 = vadd.f32 %v4414_v57, %v5475_v33 }
 0x21e   :  { %v1836_v11 = vpop.permute.xlu2 %1835 }
 0x21f   :  { %v1801_v35 = vpop.permute.xlu1 %1800  ;;  %v4462_v27 = vadd.f32 %v5473_v34, %v1836_v11 }
 0x220   :  { %v4452_v22 = vadd.f32 %v5473_v34, %v1801_v35  ;;  %v4472_v35 = vshrl.u32 %v2116_v13, 7 }
 0x222   :  { %v1796_v50 = vpop.permute.xlu0 %1795 }
 0x223   :  { %v4442_v14 = vadd.f32 %v5473_v34, %v1796_v50 }
 0x227   :  { %v1816_v37 = vpop.permute.xlu1 %1815 }
 0x228   :  { %v4467_v51 = vadd.f32 %v5473_v34, %v1816_v37  ;;  %v2125_v37 = vadd.s32 64, %v4472_v35 }
 0x22a   :  { %v1811_v63 = vpop.permute.xlu0 %1810 }
 0x22b   :  { %v4449_v21 = vadd.f32 %v5473_v34, %v1811_v63 }
 0x22f   :  { %v1831_v50 = vpop.permute.xlu1 %1830 }
 0x232   :  { %v1826_v45 = vpop.permute.xlu0 %1825 }
 0x233   :  { %v4459_v25 = vadd.f32 %v5473_v34, %v1826_v45  ;;  %v5476_v45 = vld [vmem:[#allocation90_spill] sm:$0xff] }
 0x234   :  { %v1403_v4 = vadd.f32 %v4414_v57, %v5476_v45 }
 0x23a   :  { %v1841_v19 = vpop.permute.xlu0 %1840 }
 0x23b   :  { %v4470_v63 = vadd.f32 %v5473_v34, %v1841_v19 }
 0x256   :  { %v1343_v61 = vpop.f32.mrf.mxu0 }
 0x257   :  { %v1410_v30 = vmul.f32 2.0, %v1343_v61  ;;  %v1715_v0 = vpop.f32.mrf.mxu1 }
 0x258   :  { %v1859_v39 = vmul.f32 2.0, %v1715_v0 }
 0x259   :  { %v1426_v60 = vsub.f32 %v1394_v52, %v1410_v30  ;;  %v4478_v52 = vstv %s2492_s3  ;;  %v4483_v30 = vadd.f32 %v5473_v34, %v1831_v50 }
 0x25a   :  { %v1875_v40 = vsub.f32 %v1843_v55, %v1859_v39  ;;  %v5477_v39 = vld [vmem:[#allocation85_spill] sm:$0xff] }
 0x25b   :  { %v4429_v46 = vmax.f32 %v1426_v60, 0.0  ;;  %v4489_v60 = vadd.f32 %v4414_v57, %v5477_v39  ;;  %v5481_v39 = vld [vmem:[#allocation83_spill] sm:$0xff] }
 0x25c   :  { %v4439_v16 = vmax.f32 %v1875_v40, 0.0  ;;  %v1367_v12 = vpop.f32.mrf.mxu2  ;;  %v5478_v40 = vld [vmem:[#allocation95_spill] sm:$0xff] }
 0x25d   :  { %2696 = vrsqrt.f32 %v4429_v46  ;;  %v1418_v10 = vmul.f32 2.0, %v1367_v12  ;;  %v1739_v17 = vpop.f32.mrf.mxu3  ;;  %vm1465_vm0 = vcmp.eq.f32.partialorder %v4429_v46, inf  ;;  %vm1467_vm10 = vcmp.eq.f32.partialorder %v4429_v46, 0.0 }
 0x25e   :  { %2698 = vrsqrt.f32 %v4439_v16  ;;  %v1867_v23 = vmul.f32 2.0, %v1739_v17  ;;  %v1346_v24 = vpop.f32.mrf.mxu0  ;;  %v4505_v17 = vand.u32 127, %v2116_v13  ;;  %v4518_v13 = vadd.s32 %v4478_v52, %v2125_v37 }
 0x25f   :  { %v1434_v26 = vsub.f32 %v1402_v36, %v1418_v10  ;;  %v1718_v59 = vpop.f32.mrf.mxu1  ;;  %v1411_v7 = vmul.f32 2.0, %v1346_v24  ;;  %v4497_v36 = vadd.f32 %v4414_v57, %v5479_v3  ;;  %v4503_v10 = vadd.s32 %v4478_v52, %v4472_v35 }
 0x260   :  { %v1883_v28 = vsub.f32 %v1851_v62, %v1867_v23  ;;  %v1860_v61 = vmul.f32 2.0, %v1718_v59  ;;  %v4493_v62 = vadd.f32 %v4414_v57, %v5478_v40  ;;  %v4515_v40 = vadd.f32 %v4414_v57, %v5481_v39 }
 0x261   :  { %v4474_v47 = vmax.f32 %v1434_v26, 0.0  ;;  %v1427_v19 = vsub.f32 %v1395_v54, %v1411_v7  ;;  %v5480_v26 = vld [vmem:[#allocation93_spill] sm:$0xff]  ;;  %vm1914_vm12 = vcmp.eq.f32.partialorder %v4439_v16, inf  ;;  %vm1916_vm13 = vcmp.eq.f32.partialorder %v4439_v16, 0.0 }
 0x262   :  { %v4480_v55 = vmax.f32 %v1883_v28, 0.0  ;;  %v4509_v33 = vadd.f32 %v4414_v57, %v5480_v26  ;;  %v1876_v50 = vsub.f32 %v4434_v20, %v1860_v61  ;;  %v1917_v20 = vand.u32 2147483648, %v4439_v16  ;;  %v5482_v61 = vld [vmem:[#allocation94_spill] sm:$0xff] }
 0x263   :  { %v2697_v0 = vpop.eup %2696  ;;  %2700 = vrsqrt.f32 %v4474_v47  ;;  %vm2155_vm14 = vcmp.ne.s32.totalorder %v4503_v10, %v4505_v17  ;;  %vm1561_vm15 = vcmp.eq.f32.partialorder %v4474_v47, inf  ;;  %vm1563_vm1 = vcmp.eq.f32.partialorder %v4474_v47, 0.0 }
 0x264   :  { %v2699_v12 = vpop.eup %2698  ;;  %2702 = vrsqrt.f32 %v4480_v55  ;;  %v1370_v34 = vpop.f32.mrf.mxu2  ;;  %v1459_v11 = vmul.f32 %v2697_v0, %v4429_v46  ;;  %v4540_v32 = vmax.f32 %v1876_v50, 0.0  ;;  %vm2010_vm2 = vcmp.eq.f32.partialorder %v4480_v55, inf }
 0x265   :  { %v1419_v23 = vmul.f32 2.0, %v1370_v34  ;;  %v1742_v24 = vpop.f32.mrf.mxu3  ;;  %v1908_v59 = vmul.f32 %v2699_v12, %v4439_v16  ;;  %v1468_v34 = vand.u32 2147483648, %v4429_v46  ;;  %vm2012_vm3 = vcmp.eq.f32.partialorder %v4480_v55, 0.0 }
 0x266   :  { %v1349_v28 = vpop.f32.mrf.mxu0  ;;  %v1460_v45 = vmul.f32 %v2697_v0, %v1459_v11  ;;  %v1868_v7 = vmul.f32 2.0, %v1742_v24  ;;  %v4527_v11 = vadd.f32 %v4414_v57, %v5482_v61  ;;  %vm2163_vm4 = vcmp.ne.s32.totalorder %v4518_v13, %v4505_v17 }
 0x267   :  { %v1435_v54 = vsub.f32 %v1403_v4, %v1419_v23  ;;  %v1721_v3 = vpop.f32.mrf.mxu1  ;;  %v1909_v26 = vmul.f32 %v2699_v12, %v1908_v59  ;;  %v4529_v4 = vmax.f32 %v1427_v19, 0.0  ;;  %v5483_v59 = vld [vmem:[#allocation86_spill] sm:$0xff]  ;;  %v1412_v42 = vmul.f32 2.0, %v1349_v28 }
 0x268   :  { %v1461_v38 = vmul.f32 0.5, %v1460_v45  ;;  %v4536_v45 = vadd.f32 %v4414_v57, %v5483_v59  ;;  %v1861_v59 = vmul.f32 2.0, %v1721_v3  ;;  %v1564_v28 = vand.u32 2147483648, %v4474_v47 }
 0x269   :  { %v2701_v37 = vpop.eup %2700  ;;  %v4531_v23 = vmax.f32 %v1435_v54, 0.0  ;;  %v1910_v24 = vmul.f32 0.5, %v1909_v26  ;;  %v1884_v54 = vsub.f32 %v4449_v21, %v1868_v7  ;;  %v1428_v21 = vsub.f32 %v4489_v60, %v1412_v42 }
 0x26a   :  { %v4538_v39 = vpop.eup %2702  ;;  %v1462_v5 = vsub.f32 1.5, %v1461_v38  ;;  %v1555_v19 = vmul.f32 %v2701_v37, %v4474_v47  ;;  %vm1477_vm9 = vcmp.eq.f32.partialorder %v4529_v4, inf }
 0x26b   :  { %2704 = vrsqrt.f32 %v4531_v23  ;;  %v1911_v26 = vsub.f32 1.5, %v1910_v24  ;;  %v2004_v61 = vmul.f32 %v4538_v39, %v4480_v55  ;;  %vm1573_vm5 = vcmp.eq.f32.partialorder %v4531_v23, inf }
 0x26c   :  { %v1373_v1 = vpop.f32.mrf.mxu2  ;;  %v1463_v44 = vmul.f32 %v2697_v0, %v1462_v5  ;;  %v1556_v50 = vmul.f32 %v2701_v37, %v1555_v19  ;;  %2706 = vrsqrt.f32 %v4529_v4  ;;  %v4556_v0 = vmax.f32 %v1884_v54, 0.0 }
 0x26d   :  { %v1420_v38 = vmul.f32 2.0, %v1373_v1  ;;  %v1745_v6 = vpop.f32.mrf.mxu3  ;;  %v1912_v41 = vmul.f32 %v2699_v12, %v1911_v26  ;;  %v2005_v9 = vmul.f32 %v4538_v39, %v2004_v61  ;;  %2708 = vrsqrt.f32 %v4540_v32 }
 0x26e   :  { %v1352_v7 = vpop.f32.mrf.mxu0  ;;  %v1464_v3 = vmul.f32 %v1463_v44, %v4429_v46  ;;  %v1557_v5 = vmul.f32 0.5, %v1556_v50  ;;  %v1869_v24 = vmul.f32 2.0, %v1745_v6  ;;  %v1877_v26 = vsub.f32 %v4426_v56, %v1861_v59 }
 0x26f   :  { %v1724_v19 = vpop.f32.mrf.mxu1  ;;  %v1913_v1 = vmul.f32 %v1912_v41, %v4439_v16  ;;  %v2006_v12 = vmul.f32 0.5, %v2005_v9  ;;  %v1436_v61 = vsub.f32 %v4493_v62, %v1420_v38  ;;  %v1413_v54 = vmul.f32 2.0, %v1352_v7 }
 0x270   :  { %v1466_v42 = vsel %vm1465_vm0, %v4429_v46, %v1464_v3  ;;  %v1558_v60 = vsub.f32 1.5, %v1557_v5  ;;  %v2013_v9 = vand.u32 2147483648, %v4480_v55  ;;  %v4573_v56 = vmax.f32 %v1428_v21, 0.0 }
 0x271   :  { %v2705_v44 = vpop.eup %2704  ;;  %v1469_v6 = vsel %vm1467_vm10, %v1468_v34, %v1466_v42  ;;  %v1915_v41 = vsel %vm1914_vm12, %v4439_v16, %v1913_v1  ;;  %v1862_v62 = vmul.f32 2.0, %v1724_v19  ;;  %2710 = vrsqrt.f32 %v4556_v0 }
 0x272   :  { %v1918_v59 = vsel %vm1916_vm13, %v1917_v20, %v1915_v41  ;;  %v1559_v50 = vmul.f32 %v2701_v37, %v1558_v60  ;;  %v4579_v46 = vpop.eup %2706  ;;  %v1885_v34 = vsub.f32 %v4467_v51, %v1869_v24  ;;  %v2007_v7 = vsub.f32 1.5, %v2006_v12 }
 0x273   :  { %v2099_v38 = vadd.f32 %v1918_v59, %v1469_v6  ;;  %v4583_v3 = vpop.eup %2708  ;;  %v4585_v21 = vmax.f32 %v1877_v26, 0.0  ;;  %v4587_v5 = vmax.f32 %v1436_v61, 0.0  ;;  %v1567_v37 = vmul.f32 %v2705_v44, %v4531_v23 }
 0x274   :  { %v1376_v16 = vpop.f32.mrf.mxu2  ;;  %v1560_v20 = vmul.f32 %v1559_v50, %v4474_v47  ;;  %v1429_v19 = vsub.f32 %v4497_v36, %v1413_v54  ;;  %v2008_v24 = vmul.f32 %v4538_v39, %v2007_v7  ;;  %v1878_v12 = vsub.f32 %v4445_v15, %v1862_v62 }
 0x275   :  { %v1421_v1 = vmul.f32 2.0, %v1376_v16  ;;  %v1748_v42 = vpop.f32.mrf.mxu3  ;;  %v2171_v51 = vsel %vm2155_vm14, %v2099_v38, 0.0  ;;  %v1568_v6 = vmul.f32 %v2705_v44, %v1567_v37  ;;  %v4600_v41 = vmax.f32 %v1885_v34, 0.0 }
 0x276   :  { %v1870_v26 = vmul.f32 2.0, %v1748_v42  ;;  %2187 = vadd.xlane.f32.xlu1 %v2171_v51  ;;  %v1355_v61 = vpop.f32.mrf.mxu0  ;;  %v1562_v60 = vsel %vm1561_vm15, %v4474_v47, %v1560_v20  ;;  %v2009_v10 = vmul.f32 %v2008_v24, %v4480_v55  ;;  %2712 = vrsqrt.f32 %v4573_v56 }
 0x277   :  { %v1437_v36 = vsub.f32 %v4509_v33, %v1421_v1  ;;  %v1414_v54 = vmul.f32 2.0, %v1355_v61  ;;  %v1727_v59 = vpop.f32.mrf.mxu1  ;;  %v1565_v15 = vsel %vm1563_vm1, %v1564_v28, %v1562_v60  ;;  %v1569_v62 = vmul.f32 0.5, %v1568_v6  ;;  %v2711_v38 = vpop.eup %2710 }
 0x278   :  { %v1886_v39 = vsub.f32 %v4437_v18, %v1870_v26  ;;  %v1863_v50 = vmul.f32 2.0, %v1727_v59  ;;  %v4610_v34 = vmax.f32 %v1429_v19, 0.0  ;;  %v2011_v7 = vsel %vm2010_vm2, %v4480_v55, %v2009_v10 }
 0x279   :  { %v1430_v33 = vsub.f32 %v4515_v40, %v1414_v54  ;;  %2714 = vrsqrt.f32 %v4585_v21  ;;  %v4617_v18 = vmax.f32 %v1878_v12, 0.0  ;;  %v2014_v47 = vsel %vm2012_vm3, %v2013_v9, %v2011_v7 }
 0x27a   :  { %v1570_v28 = vsub.f32 1.5, %v1569_v62  ;;  %2716 = vrsqrt.f32 %v4587_v5  ;;  %v4622_v16 = vmax.f32 %v1437_v36, 0.0  ;;  %v1879_v20 = vsub.f32 %v4420_v48, %v1863_v50 }
 0x27b   :  { %v2107_v37 = vadd.f32 %v2014_v47, %v1565_v15  ;;  %2718 = vrsqrt.f32 %v4600_v41  ;;  %v4626_v40 = vmax.f32 %v1886_v39, 0.0  ;;  %v2016_v42 = vmul.f32 %v2711_v38, %v4556_v0 }
 0x27c   :  { %v1379_v19 = vpop.f32.mrf.mxu2  ;;  %v1571_v1 = vmul.f32 %v2705_v44, %v1570_v28  ;;  %2720 = vrsqrt.f32 %v4610_v34  ;;  %v4630_v55 = vmax.f32 %v1430_v33, 0.0  ;;  %v4637_v61 = vpop.eup %2712  ;;  %v4640_v60 = vmax.f32 %v1879_v20, 0.0 }
 0x27d   :  { %v2179_v9 = vsel %vm2163_vm4, %v2107_v37, 0.0  ;;  %v1422_v51 = vmul.f32 2.0, %v1379_v19  ;;  %v1751_v24 = vpop.f32.mrf.mxu3  ;;  %2722 = vrsqrt.f32 %v4617_v18  ;;  %v2017_v44 = vmul.f32 %v2711_v38, %v2016_v42 }
 0x27e   :  { %2203 = vadd.xlane.f32.xlu2 %v2179_v9  ;;  %v1871_v48 = vmul.f32 2.0, %v1751_v24  ;;  %v1358_v12 = vpop.f32.mrf.mxu0  ;;  %v1572_v26 = vmul.f32 %v1571_v1, %v4531_v23  ;;  %2724 = vrsqrt.f32 %v4622_v16  ;;  %vm1575_vm6 = vcmp.eq.f32.partialorder %v4531_v23, 0.0 }
 0x27f   :  { %v1438_v6 = vsub.f32 %v4527_v11, %v1422_v51  ;;  %v1415_v13 = vmul.f32 2.0, %v1358_v12  ;;  %v1730_v36 = vpop.f32.mrf.mxu1  ;;  %v4643_v54 = vpop.eup %2714  ;;  %2726 = vrsqrt.f32 %v4626_v40  ;;  %v2018_v59 = vmul.f32 0.5, %v2017_v44 }
 0x280   :  { %v4648_v10 = vpop.eup %2716  ;;  %2728 = vrsqrt.f32 %v4630_v55  ;;  %v1887_v39 = vsub.f32 %v4459_v25, %v1871_v48  ;;  %v1864_v50 = vmul.f32 2.0, %v1730_v36  ;;  %v2126_v11 = vadd.s32 72, %v4472_v35 }
 0x281   :  { %v4653_v15 = vpop.eup %2718  ;;  %v4655_v62 = vmax.f32 %v1438_v6, 0.0  ;;  %v1574_v33 = vsel %vm1573_vm5, %v4531_v23, %v1572_v26  ;;  %v2019_v7 = vsub.f32 1.5, %v2018_v59  ;;  %v1471_v47 = vmul.f32 %v4579_v46, %v4529_v4 }
 0x282   :  { %v4660_v28 = vpop.eup %2720  ;;  %2730 = vrsqrt.f32 %v4640_v60  ;;  %v1431_v20 = vsub.f32 %v4536_v45, %v1415_v13  ;;  %v1576_v25 = vand.u32 2147483648, %v4531_v23  ;;  %vm2022_vm7 = vcmp.eq.f32.partialorder %v4556_v0, inf }
 0x283   :  { %v4666_v37 = vpop.eup %2722  ;;  %v2020_v19 = vmul.f32 %v2711_v38, %v2019_v7  ;;  %vm2024_vm8 = vcmp.eq.f32.partialorder %v4556_v0, 0.0  ;;  %v2025_v1 = vand.u32 2147483648, %v4556_v0  ;;  %v1472_v42 = vmul.f32 %v4579_v46, %v1471_v47 }
 0x284   :  { %v4671_v9 = vpop.eup %2724  ;;  %v4673_v51 = vmax.f32 %v1887_v39, 0.0  ;;  %v1577_v45 = vsel %vm1575_vm6, %v1576_v25, %v1574_v33  ;;  %v2143_v24 = vadd.s32 %v4478_v52, %v2126_v11  ;;  %v1920_v38 = vmul.f32 %v4583_v3, %v4540_v32  ;;  %v1382_v48 = vpop.f32.mrf.mxu2  ;;  %v5484_v11 = vld [vmem:[#allocation98_spill] sm:$0xff] }
 0x285   :  { %v4681_v12 = vpop.eup %2726  ;;  %2732 = vrsqrt.f32 %v4655_v62  ;;  %v1880_v26 = vsub.f32 %v4423_v49, %v1864_v50  ;;  %v2021_v44 = vmul.f32 %v2020_v19, %v4556_v0  ;;  %v1473_v6 = vmul.f32 0.5, %v1472_v42  ;;  %v1754_v13 = vpop.f32.mrf.mxu3 }
 0x286   :  { %v4686_v23 = vpop.eup %2728  ;;  %v4688_v36 = vmax.f32 %v1431_v20, 0.0  ;;  %vm1479_vm0 = vcmp.eq.f32.partialorder %v4529_v4, 0.0  ;;  %v1480_v59 = vand.u32 2147483648, %v4529_v4  ;;  %v1921_v39 = vmul.f32 %v4583_v3, %v1920_v38  ;;  %v1361_v25 = vpop.f32.mrf.mxu0 }
 0x287   :  { %v1407_v33 = vadd.f32 %v4414_v57, %v5484_v11  ;;  %v2023_v49 = vsel %vm2022_vm7, %v4556_v0, %v2021_v44  ;;  %v1474_v50 = vsub.f32 1.5, %v1473_v6  ;;  %v2118_v7 = vadd.s32 8, %v4472_v35  ;;  %v1733_v20 = vpop.f32.mrf.mxu1  ;;  %v5485_v44 = vld [vmem:[#allocation87_spill] sm:$0xff] }
 0x288   :  { %v1423_v47 = vmul.f32 2.0, %v1382_v48  ;;  %v4699_v19 = vpop.eup %2730  ;;  %v2026_v42 = vsel %vm2024_vm8, %v2025_v1, %v2023_v49  ;;  %vm2164_vm10 = vcmp.ne.s32.totalorder %v2143_v24, %v4505_v17  ;;  %v1922_v38 = vmul.f32 0.5, %v1921_v39 }
 0x289   :  { %v1872_v29 = vmul.f32 2.0, %v1754_v13  ;;  %v2108_v11 = vadd.f32 %v2026_v42, %v1577_v45  ;;  %v1475_v53 = vmul.f32 %v4579_v46, %v1474_v50  ;;  %v1400_v6 = vadd.f32 %v4414_v57, %v5485_v44 }
 0x28a   :  { %v1439_v43 = vsub.f32 %v1407_v33, %v1423_v47  ;;  %v4707_v8 = vmax.f32 %v1880_v26, 0.0  ;;  %v1923_v48 = vsub.f32 1.5, %v1922_v38  ;;  %v1416_v31 = vmul.f32 2.0, %v1361_v25 }
 0x28b   :  { %v1865_v2 = vmul.f32 2.0, %v1733_v20  ;;  %v4709_v58 = vpop.eup %2732  ;;  %2734 = vrsqrt.f32 %v4673_v51  ;;  %v2180_v0 = vsel %vm2164_vm10, %v2108_v11, 0.0  ;;  %v1476_v1 = vmul.f32 %v1475_v53, %v4529_v4 }
 0x28c   :  { %v2135_v45 = vadd.s32 %v4478_v52, %v2118_v7  ;;  %2205 = vadd.xlane.f32.xlu0 %v2180_v0  ;;  %v1924_v46 = vmul.f32 %v4583_v3, %v1923_v48  ;;  %v4715_v24 = vmax.f32 %v1439_v43, 0.0  ;;  %v1888_v26 = vsub.f32 %v4483_v30, %v1872_v29 }
 0x28d   :  { %v1579_v13 = vmul.f32 %v4648_v10, %v4587_v5  ;;  %2736 = vrsqrt.f32 %v4688_v36  ;;  %v1478_v39 = vsel %vm1477_vm9, %v4529_v4, %v1476_v1  ;;  %vm1926_vm12 = vcmp.eq.f32.partialorder %v4540_v32, inf }
 0x28e   :  { %v1432_v53 = vsub.f32 %v1400_v6, %v1416_v31  ;;  %2738 = vrsqrt.f32 %v4707_v8  ;;  %v1925_v3 = vmul.f32 %v1924_v46, %v4540_v32  ;;  %vm1928_vm13 = vcmp.eq.f32.partialorder %v4540_v32, 0.0 }
 0x28f   :  { %v1881_v43 = vsub.f32 %v4442_v14, %v1865_v2  ;;  %v1481_v29 = vsel %vm1479_vm0, %v1480_v59, %v1478_v39  ;;  %v1929_v30 = vand.u32 2147483648, %v4540_v32  ;;  %v1580_v33 = vmul.f32 %v4648_v10, %v1579_v13  ;;  %v1385_v13 = vpop.f32.mrf.mxu2 }
 0x290   :  { %v2028_v49 = vmul.f32 %v4653_v15, %v4600_v41  ;;  %v1927_v31 = vsel %vm1926_vm12, %v4540_v32, %v1925_v3  ;;  %vm2156_vm14 = vcmp.ne.s32.totalorder %v2135_v45, %v4505_v17  ;;  %2740 = vrsqrt.f32 %v4715_v24 }
 0x291   :  { %v4738_v50 = vmax.f32 %v1888_v26, 0.0  ;;  %v4740_v7 = vpop.eup %2734  ;;  %v1930_v2 = vsel %vm1928_vm13, %v1929_v30, %v1927_v31  ;;  %v4742_v14 = vmax.f32 %v1432_v53, 0.0  ;;  %v1581_v4 = vmul.f32 0.5, %v1580_v33  ;;  %v1757_v53 = vpop.f32.mrf.mxu3 }
 0x292   :  { %v2029_v59 = vmul.f32 %v4653_v15, %v2028_v49  ;;  %v2100_v47 = vadd.f32 %v1930_v2, %v1481_v29  ;;  %v4745_v25 = vmax.f32 %v1881_v43, 0.0  ;;  %vm1585_vm15 = vcmp.eq.f32.partialorder %v4587_v5, inf  ;;  %v5486_v49 = vld [vmem:[#allocation96_spill] sm:$0xff] }
 0x293   :  { %v1483_v32 = vmul.f32 %v4637_v61, %v4573_v56  ;;  %v4750_v20 = vpop.eup %2736  ;;  %v1582_v42 = vsub.f32 1.5, %v1581_v4  ;;  %vm1587_vm1 = vcmp.eq.f32.partialorder %v4587_v5, 0.0  ;;  %v2127_v11 = vadd.s32 80, %v4472_v35 }
 0x294   :  { %v2030_v38 = vmul.f32 0.5, %v2029_v59  ;;  %v4754_v44 = vpop.eup %2738  ;;  %v2172_v6 = vsel %vm2156_vm14, %v2100_v47, 0.0  ;;  %2742 = vrsqrt.f32 %v4738_v50  ;;  %v1588_v48 = vand.u32 2147483648, %v4587_v5 }
 0x295   :  { %v1484_v0 = vmul.f32 %v4637_v61, %v1483_v32  ;;  %2189 = vadd.xlane.f32.xlu2 %v2172_v6  ;;  %2744 = vrsqrt.f32 %v4742_v14  ;;  %v1583_v1 = vmul.f32 %v4648_v10, %v1582_v42  ;;  %v1932_v26 = vmul.f32 %v4643_v54, %v4585_v21 }
 0x296   :  { %v2031_v46 = vsub.f32 1.5, %v2030_v38  ;;  %v4765_v39 = vpop.eup %2740  ;;  %2746 = vrsqrt.f32 %v4745_v25  ;;  %vm2034_vm2 = vcmp.eq.f32.partialorder %v4600_v41, inf  ;;  %vm2036_vm3 = vcmp.eq.f32.partialorder %v4600_v41, 0.0 }
 0x297   :  { %v1485_v45 = vmul.f32 0.5, %v1484_v0  ;;  %v1584_v3 = vmul.f32 %v1583_v1, %v4587_v5  ;;  %v2144_v10 = vadd.s32 %v4478_v52, %v2127_v11  ;;  %v1933_v29 = vmul.f32 %v4643_v54, %v1932_v26 }
 0x298   :  { %v2032_v43 = vmul.f32 %v4653_v15, %v2031_v46  ;;  %v2119_v33 = vadd.s32 16, %v4472_v35  ;;  %v1408_v31 = vadd.f32 %v4414_v57, %v5486_v49  ;;  %v1424_v2 = vmul.f32 2.0, %v1385_v13 }
 0x299   :  { %v1486_v30 = vsub.f32 1.5, %v1485_v45  ;;  %v1586_v4 = vsel %vm1585_vm15, %v4587_v5, %v1584_v3  ;;  %v1934_v47 = vmul.f32 0.5, %v1933_v29  ;;  %v1873_v32 = vmul.f32 2.0, %v1757_v53 }
 0x29a   :  { %v2033_v59 = vmul.f32 %v2032_v43, %v4600_v41  ;;  %v4781_v15 = vpop.eup %2742  ;;  %v1589_v42 = vsel %vm1587_vm1, %v1588_v48, %v1586_v4  ;;  %v2037_v38 = vand.u32 2147483648, %v4600_v41  ;;  %vm1489_vm4 = vcmp.eq.f32.partialorder %v4573_v56, inf }
 0x29b   :  { %v1487_v11 = vmul.f32 %v4637_v61, %v1486_v30  ;;  %v4788_v6 = vpop.eup %2744  ;;  %vm2165_vm5 = vcmp.ne.s32.totalorder %v2144_v10, %v4505_v17  ;;  %v1935_v1 = vsub.f32 1.5, %v1934_v47  ;;  %v1495_v46 = vmul.f32 %v4660_v28, %v4610_v34  ;;  %v5487_v47 = vld [vmem:[#allocation92_spill] sm:$0xff] }
 0x29c   :  { %v2035_v0 = vsel %vm2034_vm2, %v4600_v41, %v2033_v59  ;;  %v4796_v5 = vpop.eup %2746  ;;  %v2136_v26 = vadd.s32 %v4478_v52, %v2119_v33  ;;  %v1440_v13 = vsub.f32 %v1408_v31, %v1424_v2  ;;  %v1889_v3 = vsub.f32 %v4462_v27, %v1873_v32  ;;  %v1364_v27 = vpop.f32.mrf.mxu0 }
 0x29d   :  { %v2038_v48 = vsel %vm2036_vm3, %v2037_v38, %v2035_v0  ;;  %v1488_v61 = vmul.f32 %v1487_v11, %v4573_v56  ;;  %v1936_v53 = vmul.f32 %v4643_v54, %v1935_v1  ;;  %v1496_v43 = vmul.f32 %v4660_v28, %v1495_v46  ;;  %v1736_v2 = vpop.f32.mrf.mxu1  ;;  %v1760_v46 = vpop.f32.mrf.mxu3 }
 0x29e   :  { %v2109_v45 = vadd.f32 %v2038_v48, %v1589_v42  ;;  %vm1491_vm6 = vcmp.eq.f32.partialorder %v4573_v56, 0.0  ;;  %v1492_v30 = vand.u32 2147483648, %v4573_v56  ;;  %vm1938_vm7 = vcmp.eq.f32.partialorder %v4585_v21, inf  ;;  %v1388_v42 = vpop.f32.mrf.mxu2 }
 0x29f   :  { %v1490_v29 = vsel %vm1489_vm4, %v4573_v56, %v1488_v61  ;;  %v1937_v33 = vmul.f32 %v1936_v53, %v4585_v21  ;;  %vm1940_vm8 = vcmp.eq.f32.partialorder %v4585_v21, 0.0  ;;  %v1941_v54 = vand.u32 2147483648, %v4585_v21  ;;  %v5488_v53 = vld [vmem:[#allocation97_spill] sm:$0xff] }
 0x2a0   :  { %v2181_v41 = vsel %vm2165_vm5, %v2109_v45, 0.0  ;;  %v1493_v49 = vsel %vm1491_vm6, %v1492_v30, %v1490_v29  ;;  %vm2157_vm9 = vcmp.ne.s32.totalorder %v2136_v26, %v4505_v17  ;;  %v1497_v31 = vmul.f32 0.5, %v1496_v43 }
 0x2a1   :  { %2207 = vadd.xlane.f32.xlu1 %v2181_v41  ;;  %v1944_v56 = vmul.f32 %v4666_v37, %v4617_v18  ;;  %v1939_v4 = vsel %vm1938_vm7, %v4585_v21, %v1937_v33  ;;  %v4818_v10 = vmax.f32 %v1440_v13, 0.0  ;;  %v4820_v59 = vmax.f32 %v1889_v3, 0.0 }
 0x2a2   :  { %v1401_v32 = vadd.f32 %v4414_v57, %v5487_v47  ;;  %v1942_v38 = vsel %vm1940_vm8, %v1941_v54, %v1939_v4  ;;  %v1498_v11 = vsub.f32 1.5, %v1497_v31  ;;  %v1417_v1 = vmul.f32 2.0, %v1364_v27 }
 0x2a3   :  { %v1945_v0 = vmul.f32 %v4666_v37, %v1944_v56  ;;  %v2101_v48 = vadd.f32 %v1942_v38, %v1493_v49  ;;  %v2120_v61 = vadd.s32 24, %v4472_v35  ;;  %v1866_v45 = vmul.f32 2.0, %v1736_v2 }
 0x2a4   :  { %v1409_v21 = vadd.f32 %v4414_v57, %v5488_v53  ;;  %v1499_v13 = vmul.f32 %v4660_v28, %v1498_v11  ;;  %v1433_v43 = vsub.f32 %v1401_v32, %v1417_v1  ;;  %v1425_v29 = vmul.f32 2.0, %v1388_v42 }
 0x2a5   :  { %v1946_v3 = vmul.f32 0.5, %v1945_v0  ;;  %v2173_v30 = vsel %vm2157_vm9, %v2101_v48, 0.0  ;;  %vm1501_vm0 = vcmp.eq.f32.partialorder %v4610_v34, inf  ;;  %v1882_v41 = vsub.f32 %v4452_v22, %v1866_v45 }
 0x2a6   :  { %v1874_v33 = vmul.f32 2.0, %v1760_v46  ;;  %2191 = vadd.xlane.f32.xlu0 %v2173_v30  ;;  %2748 = vrsqrt.f32 %v4818_v10  ;;  %v1500_v54 = vmul.f32 %v1499_v13, %v4610_v34  ;;  %v1441_v57 = vsub.f32 %v1409_v21, %v1425_v29 }
 0x2a7   :  { %v1947_v27 = vsub.f32 1.5, %v1946_v3  ;;  %vm1503_vm10 = vcmp.eq.f32.partialorder %v4610_v34, 0.0  ;;  %v2137_v28 = vadd.s32 %v4478_v52, %v2120_v61  ;;  %v4837_v49 = vmax.f32 %v1433_v43, 0.0 }
 0x2a8   :  { %v1591_v26 = vmul.f32 %v4671_v9, %v4622_v16  ;;  %v1502_v31 = vsel %vm1501_vm0, %v4610_v34, %v1500_v54  ;;  %v4843_v56 = vmax.f32 %v1882_v41, 0.0  ;;  %v1890_v2 = vsub.f32 %v4470_v63, %v1874_v33 }
 0x2a9   :  { %v1948_v22 = vmul.f32 %v4666_v37, %v1947_v27  ;;  %2750 = vrsqrt.f32 %v4820_v59  ;;  %v1504_v4 = vand.u32 2147483648, %v4610_v34  ;;  %vm1950_vm12 = vcmp.eq.f32.partialorder %v4617_v18, inf }
 0x2aa   :  { %v1592_v47 = vmul.f32 %v4671_v9, %v1591_v26  ;;  %vm1952_vm13 = vcmp.eq.f32.partialorder %v4617_v18, 0.0  ;;  %v1953_v42 = vand.u32 2147483648, %v4617_v18  ;;  %v4853_v38 = vmax.f32 %v1441_v57, 0.0 }
 0x2ab   :  { %v1949_v32 = vmul.f32 %v1948_v22, %v4617_v18  ;;  %v1505_v37 = vsel %vm1503_vm10, %v1504_v4, %v1502_v31  ;;  %2752 = vrsqrt.f32 %v4837_v49  ;;  %v2040_v11 = vmul.f32 %v4681_v12, %v4626_v40 }
 0x2ac   :  { %v1593_v63 = vmul.f32 0.5, %v1592_v47  ;;  %v4860_v0 = vpop.eup %2748  ;;  %vm2158_vm14 = vcmp.ne.s32.totalorder %v2137_v28, %v4505_v17  ;;  %2754 = vrsqrt.f32 %v4843_v56  ;;  %v4865_v46 = vmax.f32 %v1890_v2, 0.0 }
 0x2ad   :  { %v1951_v1 = vsel %vm1950_vm12, %v4617_v18, %v1949_v32  ;;  %v2041_v34 = vmul.f32 %v4681_v12, %v2040_v11  ;;  %v1507_v45 = vmul.f32 %v4686_v23, %v4630_v55  ;;  %2756 = vrsqrt.f32 %v4853_v38 }
 0x2ae   :  { %v1954_v48 = vsel %vm1952_vm13, %v1953_v42, %v1951_v1  ;;  %v1594_v61 = vsub.f32 1.5, %v1593_v63  ;;  %vm1597_vm15 = vcmp.eq.f32.partialorder %v4622_v16, inf  ;;  %vm1599_vm1 = vcmp.eq.f32.partialorder %v4622_v16, 0.0 }
 0x2af   :  { %v2102_v53 = vadd.f32 %v1954_v48, %v1505_v37  ;;  %v4873_v18 = vpop.eup %2750  ;;  %v2042_v13 = vmul.f32 0.5, %v2041_v34  ;;  %v2128_v3 = vadd.s32 88, %v4472_v35  ;;  %v1508_v43 = vmul.f32 %v4686_v23, %v1507_v45 }
 0x2b0   :  { %v1595_v21 = vmul.f32 %v4671_v9, %v1594_v61  ;;  %2758 = vrsqrt.f32 %v4865_v46  ;;  %v1600_v30 = vand.u32 2147483648, %v4622_v16  ;;  %v1956_v41 = vmul.f32 %v4699_v19, %v4640_v60 }
 0x2b1   :  { %v2174_v29 = vsel %vm2158_vm14, %v2102_v53, 0.0  ;;  %v4884_v33 = vpop.eup %2752  ;;  %v2043_v54 = vsub.f32 1.5, %v2042_v13  ;;  %vm2046_vm2 = vcmp.eq.f32.partialorder %v4626_v40, inf  ;;  %v1509_v27 = vmul.f32 0.5, %v1508_v43 }
 0x2b2   :  { %2193 = vadd.xlane.f32.xlu2 %v2174_v29  ;;  %v1596_v9 = vmul.f32 %v1595_v21, %v4622_v16  ;;  %v4888_v57 = vpop.eup %2754  ;;  %vm2048_vm3 = vcmp.eq.f32.partialorder %v4626_v40, 0.0  ;;  %v2049_v28 = vand.u32 2147483648, %v4626_v40  ;;  %v1957_v26 = vmul.f32 %v4699_v19, %v1956_v41 }
 0x2b3   :  { %v1603_v31 = vmul.f32 %v4709_v58, %v4655_v62  ;;  %v2044_v2 = vmul.f32 %v4681_v12, %v2043_v54  ;;  %v2145_v4 = vadd.s32 %v4478_v52, %v2128_v3  ;;  %v1510_v47 = vsub.f32 1.5, %v1509_v27  ;;  %v4900_v32 = vpop.eup %2756 }
 0x2b4   :  { %v1598_v22 = vsel %vm1597_vm15, %v4622_v16, %v1596_v9  ;;  %vm1513_vm4 = vcmp.eq.f32.partialorder %v4630_v55, inf  ;;  %vm1515_vm5 = vcmp.eq.f32.partialorder %v4630_v55, 0.0  ;;  %v1958_v42 = vmul.f32 0.5, %v1957_v26 }
 0x2b5   :  { %v1604_v37 = vmul.f32 %v4709_v58, %v1603_v31  ;;  %v2045_v63 = vmul.f32 %v2044_v2, %v4626_v40  ;;  %v1511_v11 = vmul.f32 %v4686_v23, %v1510_v47  ;;  %v1516_v1 = vand.u32 2147483648, %v4630_v55 }
 0x2b6   :  { %v2121_v12 = vadd.s32 32, %v4472_v35  ;;  %v4909_v48 = vpop.eup %2758  ;;  %v1601_v61 = vsel %vm1599_vm1, %v1600_v30, %v1598_v22  ;;  %v1959_v34 = vsub.f32 1.5, %v1958_v42  ;;  %v2052_v53 = vmul.f32 %v4740_v7, %v4673_v51 }
 0x2b7   :  { %v1605_v45 = vmul.f32 0.5, %v1604_v37  ;;  %v2047_v21 = vsel %vm2046_vm2, %v4626_v40, %v2045_v63  ;;  %vm2166_vm6 = vcmp.ne.s32.totalorder %v2145_v4, %v4505_v17  ;;  %v1512_v23 = vmul.f32 %v1511_v11, %v4630_v55 }
 0x2b8   :  { %vm1962_vm7 = vcmp.eq.f32.partialorder %v4640_v60, inf  ;;  %v2050_v13 = vsel %vm2048_vm3, %v2049_v28, %v2047_v21  ;;  %v1960_v16 = vmul.f32 %v4699_v19, %v1959_v34  ;;  %v2053_v43 = vmul.f32 %v4740_v7, %v2052_v53 }
 0x2b9   :  { %v1606_v3 = vsub.f32 1.5, %v1605_v45  ;;  %v2110_v29 = vadd.f32 %v2050_v13, %v1601_v61  ;;  %v1514_v30 = vsel %vm1513_vm4, %v4630_v55, %v1512_v23  ;;  %v2138_v41 = vadd.s32 %v4478_v52, %v2121_v12 }
 0x2ba   :  { %v2129_v9 = vadd.s32 96, %v4472_v35  ;;  %v1961_v54 = vmul.f32 %v1960_v16, %v4640_v60  ;;  %vm1964_vm8 = vcmp.eq.f32.partialorder %v4640_v60, 0.0  ;;  %v2054_v27 = vmul.f32 0.5, %v2053_v43 }
 0x2bb   :  { %v1607_v40 = vmul.f32 %v4709_v58, %v1606_v3  ;;  %v2182_v19 = vsel %vm2166_vm6, %v2110_v29, 0.0  ;;  %v1517_v28 = vsel %vm1515_vm5, %v1516_v1, %v1514_v30  ;;  %v1965_v26 = vand.u32 2147483648, %v4640_v60 }
 0x2bc   :  { %v1519_v31 = vmul.f32 %v4750_v20, %v4688_v36  ;;  %2209 = vadd.xlane.f32.xlu2 %v2182_v19  ;;  %v1963_v22 = vsel %vm1962_vm7, %v4640_v60, %v1961_v54  ;;  %vm1609_vm9 = vcmp.eq.f32.partialorder %v4655_v62, inf  ;;  %v2055_v58 = vsub.f32 1.5, %v2054_v27 }
 0x2bd   :  { %v1608_v2 = vmul.f32 %v1607_v40, %v4655_v62  ;;  %v1966_v4 = vsel %vm1964_vm8, %v1965_v26, %v1963_v22  ;;  %vm2159_vm0 = vcmp.ne.s32.totalorder %v2138_v41, %v4505_v17  ;;  %v2146_v55 = vadd.s32 %v4478_v52, %v2129_v9 }
 0x2be   :  { %v1520_v47 = vmul.f32 %v4750_v20, %v1519_v31  ;;  %v2103_v42 = vadd.f32 %v1966_v4, %v1517_v28  ;;  %v2056_v63 = vmul.f32 %v4740_v7, %v2055_v58  ;;  %v1968_v60 = vmul.f32 %v4754_v44, %v4707_v8 }
 0x2bf   :  { %v1610_v37 = vsel %vm1609_vm9, %v4655_v62, %v1608_v2  ;;  %vm1611_vm10 = vcmp.eq.f32.partialorder %v4655_v62, 0.0  ;;  %v1612_v11 = vand.u32 2147483648, %v4655_v62  ;;  %vm2058_vm12 = vcmp.eq.f32.partialorder %v4673_v51, inf }
 0x2c0   :  { %v1521_v1 = vmul.f32 0.5, %v1520_v47  ;;  %v2175_v12 = vsel %vm2159_vm0, %v2103_v42, 0.0  ;;  %v2057_v61 = vmul.f32 %v2056_v63, %v4673_v51  ;;  %vm2060_vm13 = vcmp.eq.f32.partialorder %v4673_v51, 0.0 }
 0x2c1   :  { %v1969_v34 = vmul.f32 %v4754_v44, %v1968_v60  ;;  %2195 = vadd.xlane.f32.xlu1 %v2175_v12  ;;  %v1613_v45 = vsel %vm1611_vm10, %v1612_v11, %v1610_v37  ;;  %v2061_v7 = vand.u32 2147483648, %v4673_v51  ;;  %v1531_v21 = vmul.f32 %v4788_v6, %v4742_v14 }
 0x2c2   :  { %v1522_v53 = vsub.f32 1.5, %v1521_v1  ;;  %v2059_v62 = vsel %vm2058_vm12, %v4673_v51, %v2057_v61  ;;  %vm2167_vm14 = vcmp.ne.s32.totalorder %v2146_v55, %v4505_v17  ;;  %vm1525_vm15 = vcmp.eq.f32.partialorder %v4688_v36, inf }
 0x2c3   :  { %v1970_v23 = vmul.f32 0.5, %v1969_v34  ;;  %v2062_v13 = vsel %vm2060_vm13, %v2061_v7, %v2059_v62  ;;  %v2122_v3 = vadd.s32 40, %v4472_v35  ;;  %v1532_v43 = vmul.f32 %v4788_v6, %v1531_v21 }
 0x2c4   :  { %v1523_v16 = vmul.f32 %v4750_v20, %v1522_v53  ;;  %v2111_v29 = vadd.f32 %v2062_v13, %v1613_v45  ;;  %vm1527_vm1 = vcmp.eq.f32.partialorder %v4688_v36, 0.0  ;;  %v1980_v41 = vmul.f32 %v4796_v5, %v4745_v25 }
 0x2c5   :  { %v1971_v30 = vsub.f32 1.5, %v1970_v23  ;;  %v1528_v9 = vand.u32 2147483648, %v4688_v36  ;;  %vm1974_vm2 = vcmp.eq.f32.partialorder %v4707_v8, inf  ;;  %v1533_v54 = vmul.f32 0.5, %v1532_v43 }
 0x2c6   :  { %v1524_v51 = vmul.f32 %v1523_v16, %v4688_v36  ;;  %v2183_v40 = vsel %vm2167_vm14, %v2111_v29, 0.0  ;;  %vm1976_vm3 = vcmp.eq.f32.partialorder %v4707_v8, 0.0  ;;  %v1981_v27 = vmul.f32 %v4796_v5, %v1980_v41 }
 0x2c7   :  { %v1972_v20 = vmul.f32 %v4754_v44, %v1971_v30  ;;  %2211 = vadd.xlane.f32.xlu0 %v2183_v40  ;;  %v2139_v28 = vadd.s32 %v4478_v52, %v2122_v3  ;;  %v1534_v26 = vsub.f32 1.5, %v1533_v54  ;;  %v1627_v31 = vmul.f32 %v4860_v0, %v4818_v10 }
 0x2c8   :  { %v1526_v19 = vsel %vm1525_vm15, %v4688_v36, %v1524_v51  ;;  %v1977_v2 = vand.u32 2147483648, %v4707_v8  ;;  %vm1537_vm4 = vcmp.eq.f32.partialorder %v4742_v14, inf  ;;  %v1982_v44 = vmul.f32 0.5, %v1981_v27 }
 0x2c9   :  { %v1973_v22 = vmul.f32 %v1972_v20, %v4707_v8  ;;  %v1529_v58 = vsel %vm1527_vm1, %v1528_v9, %v1526_v19  ;;  %v1535_v4 = vmul.f32 %v4788_v6, %v1534_v26  ;;  %v2123_v55 = vadd.s32 48, %v4472_v35 }
 0x2ca   :  { %v1628_v47 = vmul.f32 %v4860_v0, %v1627_v31  ;;  %vm1539_vm5 = vcmp.eq.f32.partialorder %v4742_v14, 0.0  ;;  %v1983_v37 = vsub.f32 1.5, %v1982_v44  ;;  %v2076_v63 = vmul.f32 %v4873_v18, %v4820_v59 }
 0x2cb   :  { %v1975_v42 = vsel %vm1974_vm2, %v4707_v8, %v1973_v22  ;;  %vm2160_vm6 = vcmp.ne.s32.totalorder %v2139_v28, %v4505_v17  ;;  %v1536_v6 = vmul.f32 %v1535_v4, %v4742_v14  ;;  %v1540_v1 = vand.u32 2147483648, %v4742_v14 }
 0x2cc   :  { %v1978_v36 = vsel %vm1976_vm3, %v1977_v2, %v1975_v42  ;;  %v1629_v60 = vmul.f32 0.5, %v1628_v47  ;;  %v1984_v12 = vmul.f32 %v4796_v5, %v1983_v37  ;;  %v2077_v61 = vmul.f32 %v4873_v18, %v2076_v63 }
 0x2cd   :  { %v2104_v11 = vadd.f32 %v1978_v36, %v1529_v58  ;;  %v1538_v34 = vsel %vm1537_vm4, %v4742_v14, %v1536_v6  ;;  %vm1986_vm7 = vcmp.eq.f32.partialorder %v4745_v25, inf  ;;  %v2140_v8 = vadd.s32 %v4478_v52, %v2123_v55 }
 0x2ce   :  { %v1630_v45 = vsub.f32 1.5, %v1629_v60  ;;  %v1985_v53 = vmul.f32 %v1984_v12, %v4745_v25  ;;  %v1989_v21 = vand.u32 2147483648, %v4745_v25  ;;  %v2078_v62 = vmul.f32 0.5, %v2077_v61 }
 0x2cf   :  { %v2176_v7 = vsel %vm2160_vm6, %v2104_v11, 0.0  ;;  %v1541_v5 = vsel %vm1539_vm5, %v1540_v1, %v1538_v34  ;;  %v2131_v13 = vadd.s32 112, %v4472_v35  ;;  %v1543_v16 = vmul.f32 %v4884_v33, %v4837_v49 }
 0x2d0   :  { %2197 = vadd.xlane.f32.xlu2 %v2176_v7  ;;  %v1631_v23 = vmul.f32 %v4860_v0, %v1630_v45  ;;  %v1987_v3 = vsel %vm1986_vm7, %v4745_v25, %v1985_v53  ;;  %vm1988_vm8 = vcmp.eq.f32.partialorder %v4745_v25, 0.0  ;;  %vm1633_vm9 = vcmp.eq.f32.partialorder %v4818_v10, inf }
 0x2d1   :  { %v2079_v43 = vsub.f32 1.5, %v2078_v62  ;;  %v1990_v29 = vsel %vm1988_vm8, %v1989_v21, %v1987_v3  ;;  %vm2161_vm0 = vcmp.ne.s32.totalorder %v2140_v8, %v4505_v17  ;;  %v1544_v30 = vmul.f32 %v4884_v33, %v1543_v16 }
 0x2d2   :  { %v1632_v14 = vmul.f32 %v1631_v23, %v4818_v10  ;;  %v2105_v0 = vadd.f32 %v1990_v29, %v1541_v5  ;;  %v2148_v51 = vadd.s32 %v4478_v52, %v2131_v13  ;;  %v1992_v9 = vmul.f32 %v4888_v57, %v4843_v56 }
 0x2d3   :  { %v2080_v41 = vmul.f32 %v4873_v18, %v2079_v43  ;;  %vm1635_vm10 = vcmp.eq.f32.partialorder %v4818_v10, 0.0  ;;  %v1636_v54 = vand.u32 2147483648, %v4818_v10  ;;  %v1545_v40 = vmul.f32 0.5, %v1544_v30 }
 0x2d4   :  { %v1634_v25 = vsel %vm1633_vm9, %v4818_v10, %v1632_v14  ;;  %v2177_v20 = vsel %vm2161_vm0, %v2105_v0, 0.0  ;;  %vm2082_vm12 = vcmp.eq.f32.partialorder %v4820_v59, inf  ;;  %v1993_v19 = vmul.f32 %v4888_v57, %v1992_v9  ;;  %v5489_v9 = vld [vmem:[#allocation99_spill] sm:$0xff] }
 0x2d5   :  { %v2081_v27 = vmul.f32 %v2080_v41, %v4820_v59  ;;  %2199 = vadd.xlane.f32.xlu0 %v2177_v20  ;;  %v1637_v18 = vsel %vm1635_vm10, %v1636_v54, %v1634_v25  ;;  %v2085_v28 = vand.u32 2147483648, %v4820_v59  ;;  %v1546_v26 = vsub.f32 1.5, %v1545_v40  ;;  %v5490_v25 = vld [vmem:[#allocation19_spill] sm:$0xff] }
 0x2d6   :  { %v1639_v31 = vmul.f32 %v4900_v32, %v4853_v38  ;;  %vm2084_vm13 = vcmp.eq.f32.partialorder %v4820_v59, 0.0  ;;  %vm2169_vm14 = vcmp.ne.s32.totalorder %v2148_v51, %v4505_v17  ;;  %v1994_v10 = vmul.f32 0.5, %v1993_v19 }
 0x2d7   :  { %v2083_v22 = vsel %vm2082_vm12, %v4820_v59, %v2081_v27  ;;  %v1547_v44 = vmul.f32 %v4884_v33, %v1546_v26  ;;  %v2124_v58 = vadd.s32 56, %v4472_v35  ;;  %v2088_v42 = vmul.f32 %v4909_v48, %v4865_v46 }
 0x2d8   :  { %v2086_v2 = vsel %vm2084_vm13, %v2085_v28, %v2083_v22  ;;  %v1640_v4 = vmul.f32 %v4900_v32, %v1639_v31  ;;  %v1995_v47 = vsub.f32 1.5, %v1994_v10  ;;  %vm1549_vm15 = vcmp.eq.f32.partialorder %v4837_v49, inf }
 0x2d9   :  { %v2113_v55 = vadd.f32 %v2086_v2, %v1637_v18  ;;  %v1548_v37 = vmul.f32 %v1547_v44, %v4837_v49  ;;  %vm1551_vm1 = vcmp.eq.f32.partialorder %v4837_v49, 0.0  ;;  %v1552_v36 = vand.u32 2147483648, %v4837_v49 }
 0x2da   :  { %v1641_v59 = vmul.f32 0.5, %v1640_v4  ;;  %v1996_v33 = vmul.f32 %v4888_v57, %v1995_v47  ;;  %v2089_v6 = vmul.f32 %v4909_v48, %v2088_v42  ;;  %vm1998_vm2 = vcmp.eq.f32.partialorder %v4843_v56, inf  ;;  %v5491_v4 = vld [vmem:[#allocation101_spill] sm:$0xff] }
 0x2db   :  { %v2185_v63 = vsel %vm2169_vm14, %v2113_v55, 0.0  ;;  %v1550_v60 = vsel %vm1549_vm15, %v4837_v49, %v1548_v37  ;;  %v2141_v11 = vadd.s32 %v4478_v52, %v2124_v58  ;;  %vm2000_vm3 = vcmp.eq.f32.partialorder %v4843_v56, 0.0  ;;  %v5492_v55 = vld [vmem:[#allocation53_spill] sm:$0xff] }
 0x2dc   :  { %2215 = vadd.xlane.f32.xlu2 %v2185_v63  ;;  %v1642_v1 = vsub.f32 1.5, %v1641_v59  ;;  %v1997_v12 = vmul.f32 %v1996_v33, %v4843_v56  ;;  %v2090_v61 = vmul.f32 0.5, %v2089_v6  ;;  %v1615_v34 = vmul.f32 %v4765_v39, %v4715_v24 }
 0x2dd   :  { %v1553_v8 = vsel %vm1551_vm1, %v1552_v36, %v1550_v60  ;;  %v2001_v57 = vand.u32 2147483648, %v4843_v56  ;;  %v2132_v49 = vadd.s32 120, %v4472_v35  ;;  %vm1645_vm4 = vcmp.eq.f32.partialorder %v4853_v38, inf }
 0x2de   :  { %v1643_v45 = vmul.f32 %v4900_v32, %v1642_v1  ;;  %v1999_v7 = vsel %vm1998_vm2, %v4843_v56, %v1997_v12  ;;  %v2091_v53 = vsub.f32 1.5, %v2090_v61  ;;  %v1616_v21 = vmul.f32 %v4765_v39, %v1615_v34  ;;  %v2277_v1 = vld [vmem:[%s3853_s23 + $0x40] sm:$0xff]  ;;  %v5493_v61 = vld [vmem:[#allocation103_spill] sm:$0xff] }
 0x2df   :  { %v2002_v62 = vsel %vm2000_vm3, %v2001_v57, %v1999_v7  ;;  %vm2162_vm5 = vcmp.ne.s32.totalorder %v2141_v11, %v4505_v17  ;;  %v2064_v23 = vmul.f32 %v4781_v15, %v4738_v50  ;;  %vm1647_vm6 = vcmp.eq.f32.partialorder %v4853_v38, 0.0  ;;  %v5495_v7 = vld [vmem:[#allocation104_spill] sm:$0xff] }
 0x2e0   :  { %v1644_v5 = vmul.f32 %v1643_v45, %v4853_v38  ;;  %v2106_v13 = vadd.f32 %v2002_v62, %v1553_v8  ;;  %v2092_v32 = vmul.f32 %v4909_v48, %v2091_v53  ;;  %v1617_v16 = vmul.f32 0.5, %v1616_v21  ;;  %v5496_v53 = vld [vmem:[#allocation21_spill] sm:$0xff] }
 0x2e1   :  { %v1648_v3 = vand.u32 2147483648, %v4853_v38  ;;  %v2149_v43 = vadd.s32 %v4478_v52, %v2132_v49  ;;  %v2065_v29 = vmul.f32 %v4781_v15, %v2064_v23  ;;  %vm2094_vm7 = vcmp.eq.f32.partialorder %v4865_v46, inf  ;;  %v2278_v49 = vld [vmem:[%s3853_s23 + $0x48] sm:$0xff] }
 0x2e2   :  { %v1646_v56 = vsel %vm1645_vm4, %v4853_v38, %v1644_v5  ;;  %v2178_v14 = vsel %vm2162_vm5, %v2106_v13, 0.0  ;;  %v2093_v30 = vmul.f32 %v2092_v32, %v4865_v46  ;;  %v1618_v0 = vsub.f32 1.5, %v1617_v16  ;;  %v2270_v16 = vld [vmem:[%s3853_s23 + $0x8] sm:$0xff] }
 0x2e3   :  { %2201 = vadd.xlane.f32.xlu1 %v2178_v14  ;;  %v1649_v48 = vsel %vm1647_vm6, %v1648_v3, %v1646_v56  ;;  %v2097_v41 = vand.u32 2147483648, %v4865_v46  ;;  %v2066_v51 = vmul.f32 0.5, %v2065_v29  ;;  %v2219_v54 = vadd.f32 %v5490_v25, %v5489_v9  ;;  %v5497_v3 = vld [vmem:[#allocation105_spill] sm:$0xff]  ;;  %v2279_v25 = vld [vmem:[%s3853_s23 + $0x50] sm:$0xff] }
 0x2e4   :  { %v2095_v38 = vsel %vm2094_vm7, %v4865_v46, %v2093_v30  ;;  %vm2096_vm8 = vcmp.eq.f32.partialorder %v4865_v46, 0.0  ;;  %v1619_v40 = vmul.f32 %v4765_v39, %v1618_v0  ;;  %v2130_v20 = vadd.s32 104, %v4472_v35  ;;  %v5499_v0 = vld [vmem:[#allocation107_spill] sm:$0xff] }
 0x2e5   :  { %v2098_v27 = vsel %vm2096_vm8, %v2097_v41, %v2095_v38  ;;  %vm2170_vm9 = vcmp.ne.s32.totalorder %v2149_v43, %v4505_v17  ;;  %v2067_v19 = vsub.f32 1.5, %v2066_v51  ;;  %v2235_v18 = vmul.f32 120.0, %v2219_v54  ;;  %v5498_v43 = vld [vmem:[#allocation57_spill] sm:$0xff] }
 0x2e6   :  { %v2114_v28 = vadd.f32 %v2098_v27, %v1649_v48  ;;  %v1620_v26 = vmul.f32 %v1619_v40, %v4715_v24  ;;  %vm1621_vm0 = vcmp.eq.f32.partialorder %v4715_v24, inf  ;;  %v1624_v39 = vand.u32 2147483648, %v4715_v24  ;;  %v5500_v48 = vld [vmem:[#allocation24_spill] sm:$0xff] }
 0x2e7   :  { %v2068_v35 = vmul.f32 %v4781_v15, %v2067_v19  ;;  %v2147_v22 = vadd.s32 %v4478_v52, %v2130_v20  ;;  %v5093_v10 = vstv %s2268_s29  ;;  %vm1623_vm10 = vcmp.eq.f32.partialorder %v4715_v24, 0.0  ;;  %v2269_v52 = vld [vmem:[%s3853_s23] sm:$0xff]  ;;  %v2271_v19 = vld [vmem:[%s3853_s23 + $0x10] sm:$0xff] }
 0x2e8   :  { %v2186_v46 = vsel %vm2170_vm9, %v2114_v28, 0.0  ;;  %v1622_v31 = vsel %vm1621_vm0, %v4715_v24, %v1620_v26  ;;  %v2227_v47 = vadd.f32 %v5492_v55, %v5491_v4  ;;  %vm2070_vm12 = vcmp.eq.f32.partialorder %v4738_v50, inf  ;;  %v5501_v28 = vld [vmem:[#allocation110_spill] sm:$0xff]  ;;  %v5502_v26 = vld [vmem:[#allocation28_spill] sm:$0xff] }
 0x2e9   :  { %v2188_v2 = vpop.xlane.xlu1 %2187  ;;  %2217 = vadd.xlane.f32.xlu0 %v2186_v46  ;;  %v2069_v44 = vmul.f32 %v2068_v35, %v4738_v50  ;;  %v1625_v42 = vsel %vm1623_vm10, %v1624_v39, %v1622_v31  ;;  %v2073_v15 = vand.u32 2147483648, %v4738_v50  ;;  %vm2072_vm13 = vcmp.eq.f32.partialorder %v4738_v50, 0.0  ;;  %v5504_v4 = vld [vmem:[#allocation58_spill] sm:$0xff] }
 0x2ea   :  { %v2251_v58 = vsub.f32 %v2188_v2, %v2235_v18  ;;  %vm2168_vm14 = vcmp.ne.s32.totalorder %v2147_v22, %v4505_v17  ;;  %v2243_v33 = vmul.f32 120.0, %v2227_v47  ;;  %v5494_v17 = vld [vmem:[#allocation54_spill] sm:$0xff]  ;;  %v2220_v21 = vadd.f32 %v5496_v53, %v5495_v7  ;;  %v2272_v2 = vld [vmem:[%s3853_s23 + $0x18] sm:$0xff]  ;;  %v5510_v7 = vld [vmem:[#allocation37_spill] sm:$0xff] }
 0x2eb   :  { %v2071_v37 = vsel %vm2070_vm12, %v4738_v50, %v2069_v44  ;;  %v2228_v34 = vadd.f32 %v5494_v17, %v5493_v61  ;;  %v2229_v29 = vadd.f32 %v5498_v43, %v5497_v3  ;;  %v2221_v41 = vadd.f32 %v5500_v48, %v5499_v0  ;;  %v2273_v61 = vld [vmem:[%s3853_s23 + $0x20] sm:$0xff]  ;;  %v2274_v43 = vld [vmem:[%s3853_s23 + $0x28] sm:$0xff]  ;;  %v5513_v0 = vld [vmem:[#allocation114_spill] sm:$0xff] }
 0x2ec   :  { %v2286_v24 = vmul.f32 %v5093_v10, %v2251_v58  ;;  %v2074_v59 = vsel %vm2072_vm13, %v2073_v15, %v2071_v37  ;;  %v2236_v23 = vmul.f32 120.0, %v2220_v21  ;;  %v2222_v39 = vadd.f32 %v5502_v26, %v5501_v28  ;;  %v5503_v58 = vld [vmem:[#allocation113_spill] sm:$0xff]  ;;  %v5505_v15 = vld [vmem:[#allocation102_spill] sm:$0xff]  ;;  %v2281_v21 = vld [vmem:[%s3853_s23 + $0x60] sm:$0xff] }
 0x2ed   :  { %v2112_v63 = vadd.f32 %v2074_v59, %v1625_v42  ;;  %v2244_v8 = vmul.f32 120.0, %v2228_v34  ;;  %v2245_v30 = vmul.f32 120.0, %v2229_v29  ;;  %v2237_v38 = vmul.f32 120.0, %v2221_v41  ;;  %v5514_v48 = vld [vmem:[#allocation63_spill] sm:$0xff]  ;;  %v2283_v26 = vld [vmem:[%s3853_s23 + $0x70] sm:$0xff] }
 0x2ee   :  { %v2302_v36 = vadd.f32 %v2286_v24, %v2269_v52  ;;  %v2238_v46 = vmul.f32 120.0, %v2222_v39  ;;  %v2230_v55 = vadd.f32 %v5504_v4, %v5503_v58  ;;  %v5506_v52 = vld [vmem:[#allocation33_spill] sm:$0xff]  ;;  %v2233_v41 = vadd.f32 %v5514_v48, %v5513_v0  ;;  %v2276_v4 = vld [vmem:[%s3853_s23 + $0x38] sm:$0xff] }
 0x2ef   :  { %v2184_v6 = vsel %vm2168_vm14, %v2112_v63, 0.0  ;;  %v2223_v37 = vadd.f32 %v5506_v52, %v5505_v15  ;;  %v2280_v63 = vld [vmem:[%s3853_s23 + $0x58] sm:$0xff] }
 0x2f0   :  { %2318 = vst.msk [vmem:[%s3853_s23] sm:$0xff] %vm138_vm11, %v2302_v36  ;;  %2213 = vadd.xlane.f32.xlu1 %v2184_v6  ;;  %v2246_v42 = vmul.f32 120.0, %v2230_v55  ;;  %v5507_v6 = vld [vmem:[#allocation100_spill] sm:$0xff]  ;;  %v5519_v52 = vld [vmem:[#allocation111_spill] sm:$0xff] }
 0x2f1   :  { %v2204_v60 = vpop.xlane.xlu2 %2203  ;;  %v2239_v36 = vmul.f32 120.0, %v2223_v37  ;;  %v5520_v37 = vld [vmem:[#allocation61_spill] sm:$0xff] }
 0x2f2   :  { %v2259_v11 = vsub.f32 %v2204_v60, %v2243_v33  ;;  %v5508_v60 = vld [vmem:[#allocation60_spill] sm:$0xff] }
 0x2f4   :  { %v2294_v50 = vmul.f32 %v5093_v10, %v2259_v11  ;;  %v2231_v11 = vadd.f32 %v5508_v60, %v5507_v6 }
 0x2f6   :  { %v2310_v12 = vadd.f32 %v2294_v50, %v2277_v1  ;;  %v2247_v34 = vmul.f32 120.0, %v2231_v11 }
 0x2f8   :  { %2326 = vst.msk [vmem:[%s3853_s23 + $0x40] sm:$0xff] %vm138_vm11, %v2310_v12 }
 0x2ff   :  { %v2206_v57 = vpop.xlane.xlu0 %2205 }
 0x300   :  { %v2260_v45 = vsub.f32 %v2206_v57, %v2244_v8 }
 0x302   :  { %v2295_v62 = vmul.f32 %v5093_v10, %v2260_v45 }
 0x304   :  { %v2311_v5 = vadd.f32 %v2295_v62, %v2278_v49  ;;  %v5509_v49 = vld [vmem:[#allocation106_spill] sm:$0xff] }
 0x305   :  { %v2224_v53 = vadd.f32 %v5510_v7, %v5509_v49 }
 0x306   :  { %2327 = vst.msk [vmem:[%s3853_s23 + $0x48] sm:$0xff] %vm138_vm11, %v2311_v5 }
 0x308   :  { %v2190_v13 = vpop.xlane.xlu2 %2189 }
 0x309   :  { %v2252_v32 = vsub.f32 %v2190_v13, %v2236_v23  ;;  %v2240_v23 = vmul.f32 120.0, %v2224_v53  ;;  %v5511_v13 = vld [vmem:[#allocation109_spill] sm:$0xff] }
 0x30b   :  { %v2287_v56 = vmul.f32 %v5093_v10, %v2252_v32  ;;  %v5512_v32 = vld [vmem:[#allocation41_spill] sm:$0xff] }
 0x30d   :  { %v2303_v14 = vadd.f32 %v2287_v56, %v2270_v16  ;;  %v2225_v16 = vadd.f32 %v5512_v32, %v5511_v13 }
 0x30f   :  { %2319 = vst.msk [vmem:[%s3853_s23 + $0x8] sm:$0xff] %vm138_vm11, %v2303_v14  ;;  %v2241_v14 = vmul.f32 120.0, %v2225_v16 }
 0x314   :  { %v2208_v51 = vpop.xlane.xlu1 %2207 }
 0x315   :  { %v2261_v9 = vsub.f32 %v2208_v51, %v2245_v30 }
 0x317   :  { %v2296_v54 = vmul.f32 %v5093_v10, %v2261_v9 }
 0x319   :  { %v2312_v40 = vadd.f32 %v2296_v54, %v2279_v25  ;;  %v2192_v20 = vpop.xlane.xlu0 %2191  ;;  %v2275_v25 = vld [vmem:[%s3853_s23 + $0x30] sm:$0xff] }
 0x31a   :  { %v2253_v27 = vsub.f32 %v2192_v20, %v2237_v38  ;;  %v2249_v38 = vmul.f32 120.0, %v2233_v41 }
 0x31b   :  { %2328 = vst.msk [vmem:[%s3853_s23 + $0x50] sm:$0xff] %vm138_vm11, %v2312_v40 }
 0x31c   :  { %v2288_v18 = vmul.f32 %v5093_v10, %v2253_v27 }
 0x31e   :  { %v2304_v35 = vadd.f32 %v2288_v18, %v2271_v19  ;;  %v5515_v19 = vld [vmem:[#allocation108_spill] sm:$0xff]  ;;  %v5516_v18 = vld [vmem:[#allocation49_spill] sm:$0xff] }
 0x31f   :  { %v2226_v28 = vadd.f32 %v5516_v18, %v5515_v19 }
 0x320   :  { %2320 = vst.msk [vmem:[%s3853_s23 + $0x10] sm:$0xff] %vm138_vm11, %v2304_v35 }
 0x325   :  { %v2194_v31 = vpop.xlane.xlu2 %2193 }
 0x326   :  { %v2254_v22 = vsub.f32 %v2194_v31, %v2238_v46  ;;  %v2242_v46 = vmul.f32 120.0, %v2226_v28  ;;  %v5517_v31 = vld [vmem:[#allocation112_spill] sm:$0xff] }
 0x328   :  { %v2289_v44 = vmul.f32 %v5093_v10, %v2254_v22  ;;  %v5518_v22 = vld [vmem:[#allocation64_spill] sm:$0xff] }
 0x32a   :  { %v2305_v47 = vadd.f32 %v2289_v44, %v2272_v2  ;;  %v2234_v2 = vadd.f32 %v5518_v22, %v5517_v31 }
 0x32c   :  { %2321 = vst.msk [vmem:[%s3853_s23 + $0x18] sm:$0xff] %vm138_vm11, %v2305_v47  ;;  %v2250_v47 = vmul.f32 120.0, %v2234_v2 }
 0x32f   :  { %v2210_v24 = vpop.xlane.xlu2 %2209 }
 0x330   :  { %v2262_v59 = vsub.f32 %v2210_v24, %v2246_v42  ;;  %v2232_v24 = vadd.f32 %v5520_v37, %v5519_v52 }
 0x332   :  { %v2297_v33 = vmul.f32 %v5093_v10, %v2262_v59 }
 0x334   :  { %v2313_v1 = vadd.f32 %v2297_v33, %v2280_v63  ;;  %v2196_v50 = vpop.xlane.xlu1 %2195  ;;  %v2284_v63 = vld [vmem:[%s3853_s23 + $0x78] sm:$0xff]  ;;  %v2248_v33 = vmul.f32 120.0, %v2232_v24 }
 0x335   :  { %v2255_v12 = vsub.f32 %v2196_v50, %v2239_v36 }
 0x336   :  { %2329 = vst.msk [vmem:[%s3853_s23 + $0x58] sm:$0xff] %vm138_vm11, %v2313_v1  ;;  %v2282_v1 = vld [vmem:[%s3853_s23 + $0x68] sm:$0xff] }
 0x337   :  { %v2290_v17 = vmul.f32 %v5093_v10, %v2255_v12 }
 0x339   :  { %v2306_v8 = vadd.f32 %v2290_v17, %v2273_v61 }
 0x33a   :  { %v2212_v57 = vpop.xlane.xlu0 %2211 }
 0x33b   :  { %2322 = vst.msk [vmem:[%s3853_s23 + $0x20] sm:$0xff] %vm138_vm11, %v2306_v8  ;;  %v2263_v45 = vsub.f32 %v2212_v57, %v2247_v34 }
 0x33d   :  { %v2298_v62 = vmul.f32 %v5093_v10, %v2263_v45 }
 0x33f   :  { %v2314_v5 = vadd.f32 %v2298_v62, %v2281_v21 }
 0x341   :  { %2330 = vst.msk [vmem:[%s3853_s23 + $0x60] sm:$0xff] %vm138_vm11, %v2314_v5 }
 0x343   :  { %v2198_v56 = vpop.xlane.xlu2 %2197 }
 0x344   :  { %v2256_v3 = vsub.f32 %v2198_v56, %v2240_v23 }
 0x346   :  { %v2291_v29 = vmul.f32 %v5093_v10, %v2256_v3 }
 0x348   :  { %v2307_v30 = vadd.f32 %v2291_v29, %v2274_v43  ;;  %v2200_v51 = vpop.xlane.xlu0 %2199 }
 0x349   :  { %v2257_v9 = vsub.f32 %v2200_v51, %v2241_v14 }
 0x34a   :  { %2323 = vst.msk [vmem:[%s3853_s23 + $0x28] sm:$0xff] %vm138_vm11, %v2307_v30 }
 0x34b   :  { %v2292_v54 = vmul.f32 %v5093_v10, %v2257_v9 }
 0x34d   :  { %v2308_v40 = vadd.f32 %v2292_v54, %v2275_v25 }
 0x34f   :  { %v2216_v20 = vpop.xlane.xlu2 %2215  ;;  %2324 = vst.msk [vmem:[%s3853_s23 + $0x30] sm:$0xff] %vm138_vm11, %v2308_v40 }
 0x350   :  { %v2265_v27 = vsub.f32 %v2216_v20, %v2249_v38 }
 0x352   :  { %v2300_v39 = vmul.f32 %v5093_v10, %v2265_v27 }
 0x354   :  { %v2316_v35 = vadd.f32 %v2300_v39, %v2283_v26 }
 0x356   :  { %2332 = vst.msk [vmem:[%s3853_s23 + $0x70] sm:$0xff] %vm138_vm11, %v2316_v35  ;;  %v2202_v44 = vpop.xlane.xlu1 %2201 }
 0x357   :  { %v2258_v58 = vsub.f32 %v2202_v44, %v2242_v46 }
 0x359   :  { %v2293_v55 = vmul.f32 %v5093_v10, %v2258_v58 }
 0x35b   :  { %v2309_v42 = vadd.f32 %v2293_v55, %v2276_v4 }
 0x35c   :  { %v2218_v15 = vpop.xlane.xlu0 %2217 }
 0x35d   :  { %2325 = vst.msk [vmem:[%s3853_s23 + $0x38] sm:$0xff] %vm138_vm11, %v2309_v42  ;;  %v2266_v59 = vsub.f32 %v2218_v15, %v2250_v47 }
 0x35f   :  { %v2301_v36 = vmul.f32 %v5093_v10, %v2266_v59 }
 0x361   :  { %v2317_v6 = vadd.f32 %v2301_v36, %v2284_v63 }
 0x363   :  { %2333 = vst.msk [vmem:[%s3853_s23 + $0x78] sm:$0xff] %vm138_vm11, %v2317_v6  ;;  %v2214_v60 = vpop.xlane.xlu1 %2213 }
 0x364   :  { %v2264_v11 = vsub.f32 %v2214_v60, %v2248_v33 }
 0x366   :  { %v2299_v50 = vmul.f32 %v5093_v10, %v2264_v11 }
 0x368   :  { %v2315_v12 = vadd.f32 %v2299_v50, %v2282_v1 }
 0x36a   :  { %2331 = vst.msk [vmem:[%s3853_s23 + $0x68] sm:$0xff] %vm138_vm11, %v2315_v12 }
 0x36b PF:  {}

</bundles_post_ra>
